<compile_context>
chip_gen: v7x
topology: tpu7x:2x2x1
jax: 0.10.0
libtpu: 0.0.40
codegen_flags: <defaults>
</compile_context>

<pallas_src>
import jax
import jax.numpy as jnp
from jax.experimental import pallas as pl
from jax.experimental.pallas import tpu as pltpu

_PADL = 8  # left halo columns in the dw-conv scratch (sublane-aligned)


# ----------------------------- fused Pallas kernel ---------------------------

def _bottleneck_dwp_kernel(x_ref, w1_ref, w2_ref, w3_ref,
                           s1_ref, b1_ref, s2_ref, b2_ref, s3_ref, b3_ref,
                           o_ref, y1p_ref):
    _, H, W, cin = x_ref.shape
    p = w1_ref.shape[1]
    c4 = w3_ref.shape[1]

    x = x_ref[0]                                   # (H, W, Cin) f32
    xm = x.reshape(H * W, cin)

    # ---- conv1 (1x1) + BN1 + ReLU : MXU with bf16 inputs, f32 accumulate ----
    y1 = jnp.dot(xm.astype(jnp.bfloat16), w1_ref[...],
                 preferred_element_type=jnp.float32)          # (H*W, P)
    y1 = jnp.maximum(y1 * s1_ref[...] + b1_ref[...], 0.0)

    # ---- depthwise 3x3 conv (stride 1, pad 1) via padded VMEM scratch -------
    # scratch layout: rows [1, H+1), cols [_PADL, _PADL+W) hold y1, rest zero.
    y1p_ref[...] = jnp.zeros_like(y1p_ref)
    y1p_ref[pl.ds(1, H), pl.ds(_PADL, W), :] = y1.reshape(H, W, p)

    w2_all = w2_ref[...]                           # (9, P) f32
    acc = jnp.zeros((H, W, p), jnp.float32)
    for k in range(9):                             # unrolled: 9 shifted MACs
        dy, dx = k // 3, k % 3
        win = y1p_ref[pl.ds(dy, H), pl.ds(_PADL - 1 + dx, W), :]
        acc = acc + win * w2_all[k]
    y2 = jnp.maximum(acc * s2_ref[0] + b2_ref[0], 0.0)        # (H, W, P) f32

    # ---- conv3 (1x1) + BN3 + residual + ReLU (fused epilogue) ---------------
    y3 = jnp.dot(y2.reshape(H * W, p).astype(jnp.bfloat16), w3_ref[...],
                 preferred_element_type=jnp.float32)          # (H*W, C4)
    y3 = y3 * s3_ref[...] + b3_ref[...]
    out = jnp.maximum(y3 + xm, 0.0)                           # residual in f32
    o_ref[0] = out.reshape(H, W, c4)


# --------------------------------- wrapper -----------------------------------

def _bn_fold(gamma, beta, mean, var, eps=1e-5):
    scale = gamma.astype(jnp.float32) / jnp.sqrt(var.astype(jnp.float32) + eps)
    shift = beta.astype(jnp.float32) - mean.astype(jnp.float32) * scale
    return scale, shift


@jax.jit
def bottleneck_dwp_forward(x_nchw, params):
    """Forward pass of BottleneckDWP (stride=1, downsample=None, eval-mode BN)."""
    n, cin, h, w = x_nchw.shape
    p = params["w1"].shape[1]
    c4 = params["w3"].shape[1]
    if cin != c4:
        raise ValueError("residual add requires inplanes == planes * expansion")
    if w % 8 != 0:
        raise ValueError("W must be a multiple of 8 for layout-trivial reshapes")

    x_nhwc = jnp.transpose(x_nchw, (0, 2, 3, 1)).astype(jnp.float32)

    s1, b1 = _bn_fold(*params["bn1"])
    s2, b2 = _bn_fold(*params["bn2"])
    s3, b3 = _bn_fold(*params["bn3"])

    # cast weights once (bf16 for the MXU operands, f32 for the depthwise VPU)
    w1 = params["w1"].astype(jnp.bfloat16)          # (Cin, P)
    w2 = params["w2"].astype(jnp.float32)           # (9, P)   depthwise taps
    w3 = params["w3"].astype(jnp.bfloat16)          # (P, C4)

    vec = lambda t: t.reshape(1, -1).astype(jnp.float32)

    def const_spec(*shape):
        return pl.BlockSpec(shape, lambda i, _s=len(shape): (0,) * _s)

    flops = 2 * n * h * w * (cin * p + 9 * p + p * c4)
    bytes_accessed = (x_nhwc.size + n * h * w * c4) * 4 \
        + w1.size * 2 + w3.size * 2 + w2.size * 4 + 4 * (2 * p + c4) * 4

    out_nhwc = pl.pallas_call(
        _bottleneck_dwp_kernel,
        grid=(n,),
        in_specs=[
            pl.BlockSpec((1, h, w, cin), lambda i: (i, 0, 0, 0)),   # x
            const_spec(cin, p),                                     # w1 (bf16)
            const_spec(9, p),                                       # w2 (f32)
            const_spec(p, c4),                                      # w3 (bf16)
            const_spec(1, p), const_spec(1, p),                     # bn1 scale/shift
            const_spec(1, p), const_spec(1, p),                     # bn2 scale/shift
            const_spec(1, c4), const_spec(1, c4),                   # bn3 scale/shift
        ],
        out_specs=pl.BlockSpec((1, h, w, c4), lambda i: (i, 0, 0, 0)),
        out_shape=jax.ShapeDtypeStruct((n, h, w, c4), jnp.float32),
        scratch_shapes=[pltpu.VMEM((h + 2, w + 2 * _PADL, p), jnp.float32)],
        compiler_params=pltpu.CompilerParams(
            dimension_semantics=("parallel",)),
        cost_estimate=pl.CostEstimate(
            flops=flops, transcendentals=0, bytes_accessed=bytes_accessed),
    )(x_nhwc, w1, w2, w3, vec(s1), vec(b1), vec(s2), vec(b2), vec(s3), vec(b3))

    return jnp.transpose(out_nhwc, (0, 3, 1, 2))


# --------------------------------- reference ---------------------------------

def _reference(x_nchw, params, eps=1e-5, mirror_kernel_precision=True):
    """Plain-JAX reference. Optionally mirrors the kernel's bf16 MXU-input
    rounding (conv1/conv3 inputs & weights) so the comparison is tight."""
    f32 = jnp.float32
    rnd = (lambda t: t.astype(jnp.bfloat16).astype(f32)) \
        if mirror_kernel_precision else (lambda t: t)

    def conv(x, w_oihw, pad, groups=1):
        return jax.lax.conv_general_dilated(
            x, w_oihw, (1, 1), [(pad, pad), (pad, pad)],
            dimension_numbers=("NCHW", "OIHW", "NCHW"),
            feature_group_count=groups,
            precision=jax.lax.Precision.HIGHEST)

    def bn(x, pbn):
        g, b, m, v = (t.reshape(1, -1, 1, 1).astype(f32) for t in pbn)
        return (x - m) / jnp.sqrt(v + eps) * g + b

    cin = params["w1"].shape[0]
    p = params["w1"].shape[1]
    c4 = params["w3"].shape[1]
    w1_oihw = params["w1"].T.reshape(p, cin, 1, 1)
    w2_oihw = params["w2"].reshape(3, 3, p).transpose(2, 0, 1).reshape(p, 1, 3, 3)
    w3_oihw = params["w3"].T.reshape(c4, p, 1, 1)

    x = x_nchw.astype(f32)
    out = jax.nn.relu(bn(conv(rnd(x), rnd(w1_oihw), 0), params["bn1"]))
    out = jax.nn.relu(bn(conv(out, w2_oihw, 1, groups=p), params["bn2"]))
    out = bn(conv(rnd(out), rnd(w3_oihw), 0), params["bn3"])
    return jax.nn.relu(out + x)


# ----------------------------------- main -------------------------------------

if __name__ == "__main__":
    key = jax.random.PRNGKey(0)
    ks = jax.random.split(key, 8)

    n, planes, h, w = 2, 64, 16, 16
    expansion = 4
    inplanes = planes * expansion     # required for residual add w/o downsample

    x = jax.random.normal(ks[0], (n, inplanes, h, w), jnp.float32)

    def bn_params(k, c):
        kg, kb, km, kv = jax.random.split(k, 4)
        return (1.0 + 0.1 * jax.random.normal(kg, (c,), jnp.float32),
                0.1 * jax.random.normal(kb, (c,), jnp.float32),
                0.05 * jax.random.normal(km, (c,), jnp.float32),
                1.0 + 0.1 * jnp.abs(jax.random.normal(kv, (c,), jnp.float32)))

    params = {
        # conv1: 1x1 (inplanes -> planes), stored as (K=inplanes, Cout=planes)
        "w1": 0.1 * jax.random.normal(ks[1], (inplanes, planes), jnp.float32),
        # conv2: depthwise 3x3 (groups=planes), stored as (ky*3+kx, channel)
        "w2": 0.2 * jax.random.normal(ks[2], (9, planes), jnp.float32),
        # conv3: 1x1 (planes -> planes*expansion)
        "w3": 0.1 * jax.random.normal(ks[3], (planes, planes * expansion),
                                      jnp.float32),
        "bn1": bn_params(ks[4], planes),
        "bn2": bn_params(ks[5], planes),
        "bn3": bn_params(ks[6], planes * expansion),
    }

    out = jax.block_until_ready(bottleneck_dwp_forward(x, params))
    assert out.shape == (n, inplanes, h, w), out.shape

    ref = _reference(x, params)       # mirrors the kernel's bf16 MXU rounding
    err = float(jnp.max(jnp.abs(out - ref)))
    if not (err < 1e-2):
        raise AssertionError(f"Pallas BottleneckDWP mismatch vs reference: {err}")

    print("KERNEL_OK")
</pallas_src>

<mosaic_0001>
module attributes {stable_mosaic.version = 11 : i64} {
  func.func @_bottleneck_dwp_kernel(%arg0: i32, %arg1: memref<1x16x16x256xf32, #tpu.memory_space<vmem>>, %arg2: memref<256x64xbf16, #tpu.memory_space<vmem>>, %arg3: memref<9x64xf32, #tpu.memory_space<vmem>>, %arg4: memref<64x256xbf16, #tpu.memory_space<vmem>>, %arg5: memref<1x64xf32, #tpu.memory_space<vmem>>, %arg6: memref<1x64xf32, #tpu.memory_space<vmem>>, %arg7: memref<1x64xf32, #tpu.memory_space<vmem>>, %arg8: memref<1x64xf32, #tpu.memory_space<vmem>>, %arg9: memref<1x256xf32, #tpu.memory_space<vmem>>, %arg10: memref<1x256xf32, #tpu.memory_space<vmem>>, %arg11: memref<1x16x16x256xf32, #tpu.memory_space<vmem>>, %arg12: memref<18x32x64xf32, #tpu.memory_space<vmem>>) attributes {dimension_semantics = [#tpu.dimension_semantics<parallel>], iteration_bounds = array<i64: 2>, scalar_prefetch = 0 : i64, scratch_operands = 1 : i64, tpu.core_type = #tpu.core_type<tc>, window_params = [{transform_indices = @transform_0, window_bounds = array<i64: 1, 16, 16, 256>}, {pipeline_mode = #tpu.pipeline_mode<synchronous>, transform_indices = @transform_1, window_bounds = array<i64: 256, 64>}, {pipeline_mode = #tpu.pipeline_mode<synchronous>, transform_indices = @transform_2, window_bounds = array<i64: 9, 64>}, {pipeline_mode = #tpu.pipeline_mode<synchronous>, transform_indices = @transform_3, window_bounds = array<i64: 64, 256>}, {pipeline_mode = #tpu.pipeline_mode<synchronous>, transform_indices = @transform_4, window_bounds = array<i64: 1, 64>}, {pipeline_mode = #tpu.pipeline_mode<synchronous>, transform_indices = @transform_5, window_bounds = array<i64: 1, 64>}, {pipeline_mode = #tpu.pipeline_mode<synchronous>, transform_indices = @transform_6, window_bounds = array<i64: 1, 64>}, {pipeline_mode = #tpu.pipeline_mode<synchronous>, transform_indices = @transform_7, window_bounds = array<i64: 1, 64>}, {pipeline_mode = #tpu.pipeline_mode<synchronous>, transform_indices = @transform_8, window_bounds = array<i64: 1, 256>}, {pipeline_mode = #tpu.pipeline_mode<synchronous>, transform_indices = @transform_9, window_bounds = array<i64: 1, 256>}, {transform_indices = @transform_10, window_bounds = array<i64: 1, 16, 16, 256>}]} {
    %c0 = arith.constant 0 : index
    %c0_0 = arith.constant 0 : index
    %c0_1 = arith.constant 0 : index
    %c0_2 = arith.constant 0 : index
    %0 = vector.load %arg1[%c0, %c0_0, %c0_1, %c0_2] : memref<1x16x16x256xf32, #tpu.memory_space<vmem>>, vector<1x16x16x256xf32>
    %1 = vector.shape_cast %0 : vector<1x16x16x256xf32> to vector<16x16x256xf32>
    %2 = vector.shape_cast %1 : vector<16x16x256xf32> to vector<256x256xf32>
    %3 = arith.truncf %2 : vector<256x256xf32> to vector<256x256xbf16>
    %c0_3 = arith.constant 0 : index
    %c0_4 = arith.constant 0 : index
    %4 = vector.load %arg2[%c0_3, %c0_4] : memref<256x64xbf16, #tpu.memory_space<vmem>>, vector<256x64xbf16>
    %cst = arith.constant dense<0.000000e+00> : vector<256x64xf32>
    %5 = tpu.matmul %3, %4, %cst {dimension_numbers = #tpu.dot_dimension_numbers<[1], [0], [0], [1], [0, 0, 1, 1], [], []>} : vector<256x256xbf16>, vector<256x64xbf16>, vector<256x64xf32> -> vector<256x64xf32>
    %c0_5 = arith.constant 0 : index
    %c0_6 = arith.constant 0 : index
    %6 = vector.load %arg5[%c0_5, %c0_6] : memref<1x64xf32, #tpu.memory_space<vmem>>, vector<1x64xf32>
    %7 = vector.broadcast %6 : vector<1x64xf32> to vector<256x64xf32>
    %8 = arith.mulf %5, %7 : vector<256x64xf32>
    %c0_7 = arith.constant 0 : index
    %c0_8 = arith.constant 0 : index
    %9 = vector.load %arg6[%c0_7, %c0_8] : memref<1x64xf32, #tpu.memory_space<vmem>>, vector<1x64xf32>
    %10 = vector.broadcast %9 : vector<1x64xf32> to vector<256x64xf32>
    %11 = arith.addf %8, %10 : vector<256x64xf32>
    %cst_9 = arith.constant 0.000000e+00 : f32
    %12 = vector.broadcast %cst_9 : f32 to vector<256x64xf32>
    %13 = arith.maximumf %11, %12 : vector<256x64xf32>
    %cst_10 = arith.constant 0.000000e+00 : f32
    %14 = vector.broadcast %cst_10 : f32 to vector<18x32x64xf32>
    %c0_11 = arith.constant 0 : index
    %c0_12 = arith.constant 0 : index
    %c0_13 = arith.constant 0 : index
    %15 = vector.load %arg12[%c0_11, %c0_12, %c0_13] : memref<18x32x64xf32, #tpu.memory_space<vmem>>, vector<18x32x64xf32>
    tpu.vector_store %arg12[%c0_11, %c0_12, %c0_13], %14 {strides = array<i32>} : memref<18x32x64xf32, #tpu.memory_space<vmem>>, vector<18x32x64xf32>,
    %16 = vector.shape_cast %13 : vector<256x64xf32> to vector<16x16x64xf32>
    %c1 = arith.constant 1 : index
    %c8 = arith.constant 8 : index
    %c0_14 = arith.constant 0 : index
    %17 = vector.load %arg12[%c1, %c8, %c0_14] : memref<18x32x64xf32, #tpu.memory_space<vmem>>, vector<16x16x64xf32>
    tpu.vector_store %arg12[%c1, %c8, %c0_14], %16 {strides = array<i32>} : memref<18x32x64xf32, #tpu.memory_space<vmem>>, vector<16x16x64xf32>,
    %c0_15 = arith.constant 0 : index
    %c0_16 = arith.constant 0 : index
    %18 = vector.load %arg3[%c0_15, %c0_16] : memref<9x64xf32, #tpu.memory_space<vmem>>, vector<9x64xf32>
    %cst_17 = arith.constant 0.000000e+00 : f32
    %19 = vector.broadcast %cst_17 : f32 to vector<16x16x64xf32>
    %c0_18 = arith.constant 0 : index
    %c7 = arith.constant 7 : index
    %c0_19 = arith.constant 0 : index
    %20 = vector.load %arg12[%c0_18, %c7, %c0_19] : memref<18x32x64xf32, #tpu.memory_space<vmem>>, vector<16x16x64xf32>
    %21 = vector.extract_strided_slice %18 {offsets = [0, 0], sizes = [1, 64], strides = [1, 1]} : vector<9x64xf32> to vector<1x64xf32>
    %22 = vector.shape_cast %21 : vector<1x64xf32> to vector<64xf32>
    %23 = vector.shape_cast %22 : vector<64xf32> to vector<1x1x64xf32>
    %24 = vector.broadcast %23 : vector<1x1x64xf32> to vector<16x16x64xf32>
    %25 = arith.mulf %20, %24 : vector<16x16x64xf32>
    %26 = arith.addf %19, %25 : vector<16x16x64xf32>
    %c0_20 = arith.constant 0 : index
    %c8_21 = arith.constant 8 : index
    %c0_22 = arith.constant 0 : index
    %27 = vector.load %arg12[%c0_20, %c8_21, %c0_22] : memref<18x32x64xf32, #tpu.memory_space<vmem>>, vector<16x16x64xf32>
    %28 = vector.extract_strided_slice %18 {offsets = [1, 0], sizes = [1, 64], strides = [1, 1]} : vector<9x64xf32> to vector<1x64xf32>
    %29 = vector.shape_cast %28 : vector<1x64xf32> to vector<64xf32>
    %30 = vector.shape_cast %29 : vector<64xf32> to vector<1x1x64xf32>
    %31 = vector.broadcast %30 : vector<1x1x64xf32> to vector<16x16x64xf32>
    %32 = arith.mulf %27, %31 : vector<16x16x64xf32>
    %33 = arith.addf %26, %32 : vector<16x16x64xf32>
    %c0_23 = arith.constant 0 : index
    %c9 = arith.constant 9 : index
    %c0_24 = arith.constant 0 : index
    %34 = vector.load %arg12[%c0_23, %c9, %c0_24] : memref<18x32x64xf32, #tpu.memory_space<vmem>>, vector<16x16x64xf32>
    %35 = vector.extract_strided_slice %18 {offsets = [2, 0], sizes = [1, 64], strides = [1, 1]} : vector<9x64xf32> to vector<1x64xf32>
    %36 = vector.shape_cast %35 : vector<1x64xf32> to vector<64xf32>
    %37 = vector.shape_cast %36 : vector<64xf32> to vector<1x1x64xf32>
    %38 = vector.broadcast %37 : vector<1x1x64xf32> to vector<16x16x64xf32>
    %39 = arith.mulf %34, %38 : vector<16x16x64xf32>
    %40 = arith.addf %33, %39 : vector<16x16x64xf32>
    %c1_25 = arith.constant 1 : index
    %c7_26 = arith.constant 7 : index
    %c0_27 = arith.constant 0 : index
    %41 = vector.load %arg12[%c1_25, %c7_26, %c0_27] : memref<18x32x64xf32, #tpu.memory_space<vmem>>, vector<16x16x64xf32>
    %42 = vector.extract_strided_slice %18 {offsets = [3, 0], sizes = [1, 64], strides = [1, 1]} : vector<9x64xf32> to vector<1x64xf32>
    %43 = vector.shape_cast %42 : vector<1x64xf32> to vector<64xf32>
    %44 = vector.shape_cast %43 : vector<64xf32> to vector<1x1x64xf32>
    %45 = vector.broadcast %44 : vector<1x1x64xf32> to vector<16x16x64xf32>
    %46 = arith.mulf %41, %45 : vector<16x16x64xf32>
    %47 = arith.addf %40, %46 : vector<16x16x64xf32>
    %c1_28 = arith.constant 1 : index
    %c8_29 = arith.constant 8 : index
    %c0_30 = arith.constant 0 : index
    %48 = vector.load %arg12[%c1_28, %c8_29, %c0_30] : memref<18x32x64xf32, #tpu.memory_space<vmem>>, vector<16x16x64xf32>
    %49 = vector.extract_strided_slice %18 {offsets = [4, 0], sizes = [1, 64], strides = [1, 1]} : vector<9x64xf32> to vector<1x64xf32>
    %50 = vector.shape_cast %49 : vector<1x64xf32> to vector<64xf32>
    %51 = vector.shape_cast %50 : vector<64xf32> to vector<1x1x64xf32>
    %52 = vector.broadcast %51 : vector<1x1x64xf32> to vector<16x16x64xf32>
    %53 = arith.mulf %48, %52 : vector<16x16x64xf32>
    %54 = arith.addf %47, %53 : vector<16x16x64xf32>
    %c1_31 = arith.constant 1 : index
    %c9_32 = arith.constant 9 : index
    %c0_33 = arith.constant 0 : index
    %55 = vector.load %arg12[%c1_31, %c9_32, %c0_33] : memref<18x32x64xf32, #tpu.memory_space<vmem>>, vector<16x16x64xf32>
    %56 = vector.extract_strided_slice %18 {offsets = [5, 0], sizes = [1, 64], strides = [1, 1]} : vector<9x64xf32> to vector<1x64xf32>
    %57 = vector.shape_cast %56 : vector<1x64xf32> to vector<64xf32>
    %58 = vector.shape_cast %57 : vector<64xf32> to vector<1x1x64xf32>
    %59 = vector.broadcast %58 : vector<1x1x64xf32> to vector<16x16x64xf32>
    %60 = arith.mulf %55, %59 : vector<16x16x64xf32>
    %61 = arith.addf %54, %60 : vector<16x16x64xf32>
    %c2 = arith.constant 2 : index
    %c7_34 = arith.constant 7 : index
    %c0_35 = arith.constant 0 : index
    %62 = vector.load %arg12[%c2, %c7_34, %c0_35] : memref<18x32x64xf32, #tpu.memory_space<vmem>>, vector<16x16x64xf32>
    %63 = vector.extract_strided_slice %18 {offsets = [6, 0], sizes = [1, 64], strides = [1, 1]} : vector<9x64xf32> to vector<1x64xf32>
    %64 = vector.shape_cast %63 : vector<1x64xf32> to vector<64xf32>
    %65 = vector.shape_cast %64 : vector<64xf32> to vector<1x1x64xf32>
    %66 = vector.broadcast %65 : vector<1x1x64xf32> to vector<16x16x64xf32>
    %67 = arith.mulf %62, %66 : vector<16x16x64xf32>
    %68 = arith.addf %61, %67 : vector<16x16x64xf32>
    %c2_36 = arith.constant 2 : index
    %c8_37 = arith.constant 8 : index
    %c0_38 = arith.constant 0 : index
    %69 = vector.load %arg12[%c2_36, %c8_37, %c0_38] : memref<18x32x64xf32, #tpu.memory_space<vmem>>, vector<16x16x64xf32>
    %70 = vector.extract_strided_slice %18 {offsets = [7, 0], sizes = [1, 64], strides = [1, 1]} : vector<9x64xf32> to vector<1x64xf32>
    %71 = vector.shape_cast %70 : vector<1x64xf32> to vector<64xf32>
    %72 = vector.shape_cast %71 : vector<64xf32> to vector<1x1x64xf32>
    %73 = vector.broadcast %72 : vector<1x1x64xf32> to vector<16x16x64xf32>
    %74 = arith.mulf %69, %73 : vector<16x16x64xf32>
    %75 = arith.addf %68, %74 : vector<16x16x64xf32>
    %c2_39 = arith.constant 2 : index
    %c9_40 = arith.constant 9 : index
    %c0_41 = arith.constant 0 : index
    %76 = vector.load %arg12[%c2_39, %c9_40, %c0_41] : memref<18x32x64xf32, #tpu.memory_space<vmem>>, vector<16x16x64xf32>
    %77 = vector.extract_strided_slice %18 {offsets = [8, 0], sizes = [1, 64], strides = [1, 1]} : vector<9x64xf32> to vector<1x64xf32>
    %78 = vector.shape_cast %77 : vector<1x64xf32> to vector<64xf32>
    %79 = vector.shape_cast %78 : vector<64xf32> to vector<1x1x64xf32>
    %80 = vector.broadcast %79 : vector<1x1x64xf32> to vector<16x16x64xf32>
    %81 = arith.mulf %76, %80 : vector<16x16x64xf32>
    %82 = arith.addf %75, %81 : vector<16x16x64xf32>
    %c0_42 = arith.constant 0 : index
    %c0_43 = arith.constant 0 : index
    %83 = vector.load %arg7[%c0_42, %c0_43] : memref<1x64xf32, #tpu.memory_space<vmem>>, vector<1x64xf32>
    %84 = vector.shape_cast %83 : vector<1x64xf32> to vector<64xf32>
    %85 = vector.shape_cast %84 : vector<64xf32> to vector<1x1x64xf32>
    %86 = vector.broadcast %85 : vector<1x1x64xf32> to vector<16x16x64xf32>
    %87 = arith.mulf %82, %86 : vector<16x16x64xf32>
    %c0_44 = arith.constant 0 : index
    %c0_45 = arith.constant 0 : index
    %88 = vector.load %arg8[%c0_44, %c0_45] : memref<1x64xf32, #tpu.memory_space<vmem>>, vector<1x64xf32>
    %89 = vector.shape_cast %88 : vector<1x64xf32> to vector<64xf32>
    %90 = vector.shape_cast %89 : vector<64xf32> to vector<1x1x64xf32>
    %91 = vector.broadcast %90 : vector<1x1x64xf32> to vector<16x16x64xf32>
    %92 = arith.addf %87, %91 : vector<16x16x64xf32>
    %cst_46 = arith.constant 0.000000e+00 : f32
    %93 = vector.broadcast %cst_46 : f32 to vector<16x16x64xf32>
    %94 = arith.maximumf %92, %93 : vector<16x16x64xf32>
    %95 = vector.shape_cast %94 : vector<16x16x64xf32> to vector<256x64xf32>
    %96 = arith.truncf %95 : vector<256x64xf32> to vector<256x64xbf16>
    %c0_47 = arith.constant 0 : index
    %c0_48 = arith.constant 0 : index
    %97 = vector.load %arg4[%c0_47, %c0_48] : memref<64x256xbf16, #tpu.memory_space<vmem>>, vector<64x256xbf16>
    %cst_49 = arith.constant dense<0.000000e+00> : vector<256x256xf32>
    %98 = tpu.matmul %96, %97, %cst_49 {dimension_numbers = #tpu.dot_dimension_numbers<[1], [0], [0], [1], [0, 0, 1, 1], [], []>} : vector<256x64xbf16>, vector<64x256xbf16>, vector<256x256xf32> -> vector<256x256xf32>
    %c0_50 = arith.constant 0 : index
    %c0_51 = arith.constant 0 : index
    %99 = vector.load %arg9[%c0_50, %c0_51] : memref<1x256xf32, #tpu.memory_space<vmem>>, vector<1x256xf32>
    %100 = vector.broadcast %99 : vector<1x256xf32> to vector<256x256xf32>
    %101 = arith.mulf %98, %100 : vector<256x256xf32>
    %c0_52 = arith.constant 0 : index
    %c0_53 = arith.constant 0 : index
    %102 = vector.load %arg10[%c0_52, %c0_53] : memref<1x256xf32, #tpu.memory_space<vmem>>, vector<1x256xf32>
    %103 = vector.broadcast %102 : vector<1x256xf32> to vector<256x256xf32>
    %104 = arith.addf %101, %103 : vector<256x256xf32>
    %105 = arith.addf %104, %2 : vector<256x256xf32>
    %cst_54 = arith.constant 0.000000e+00 : f32
    %106 = vector.broadcast %cst_54 : f32 to vector<256x256xf32>
    %107 = arith.maximumf %105, %106 : vector<256x256xf32>
    %108 = vector.shape_cast %107 : vector<256x256xf32> to vector<16x16x256xf32>
    %c0_55 = arith.constant 0 : index
    %c0_56 = arith.constant 0 : index
    %c0_57 = arith.constant 0 : index
    %c0_58 = arith.constant 0 : index
    %109 = vector.load %arg11[%c0_55, %c0_56, %c0_57, %c0_58] : memref<1x16x16x256xf32, #tpu.memory_space<vmem>>, vector<1x16x16x256xf32>
    %110 = vector.shape_cast %109 : vector<1x16x16x256xf32> to vector<16x16x256xf32>
    %111 = vector.shape_cast %108 : vector<16x16x256xf32> to vector<1x16x16x256xf32>
    tpu.vector_store %arg11[%c0_55, %c0_56, %c0_57, %c0_58], %111 {strides = array<i32>} : memref<1x16x16x256xf32, #tpu.memory_space<vmem>>, vector<1x16x16x256xf32>,
    return
  }
  func.func @transform_0(%arg0: i32) -> (i32, i32, i32, i32) {
    %c0_i32 = arith.constant 0 : i32
    %c0_i32_0 = arith.constant 0 : i32
    %c0_i32_1 = arith.constant 0 : i32
    %c0_i32_2 = arith.constant 0 : i32
    return %arg0, %c0_i32, %c0_i32_0, %c0_i32_1 : i32, i32, i32, i32
  }
  func.func @transform_1(%arg0: i32) -> (i32, i32) {
    %c0_i32 = arith.constant 0 : i32
    %c0_i32_0 = arith.constant 0 : i32
    %c0_i32_1 = arith.constant 0 : i32
    return %c0_i32, %c0_i32_0 : i32, i32
  }
  func.func @transform_2(%arg0: i32) -> (i32, i32) {
    %c0_i32 = arith.constant 0 : i32
    %c0_i32_0 = arith.constant 0 : i32
    %c0_i32_1 = arith.constant 0 : i32
    return %c0_i32, %c0_i32_0 : i32, i32
  }
  func.func @transform_3(%arg0: i32) -> (i32, i32) {
    %c0_i32 = arith.constant 0 : i32
    %c0_i32_0 = arith.constant 0 : i32
    %c0_i32_1 = arith.constant 0 : i32
    return %c0_i32, %c0_i32_0 : i32, i32
  }
  func.func @transform_4(%arg0: i32) -> (i32, i32) {
    %c0_i32 = arith.constant 0 : i32
    %c0_i32_0 = arith.constant 0 : i32
    %c0_i32_1 = arith.constant 0 : i32
    return %c0_i32, %c0_i32_0 : i32, i32
  }
  func.func @transform_5(%arg0: i32) -> (i32, i32) {
    %c0_i32 = arith.constant 0 : i32
    %c0_i32_0 = arith.constant 0 : i32
    %c0_i32_1 = arith.constant 0 : i32
    return %c0_i32, %c0_i32_0 : i32, i32
  }
  func.func @transform_6(%arg0: i32) -> (i32, i32) {
    %c0_i32 = arith.constant 0 : i32
    %c0_i32_0 = arith.constant 0 : i32
    %c0_i32_1 = arith.constant 0 : i32
    return %c0_i32, %c0_i32_0 : i32, i32
  }
  func.func @transform_7(%arg0: i32) -> (i32, i32) {
    %c0_i32 = arith.constant 0 : i32
    %c0_i32_0 = arith.constant 0 : i32
    %c0_i32_1 = arith.constant 0 : i32
    return %c0_i32, %c0_i32_0 : i32, i32
  }
  func.func @transform_8(%arg0: i32) -> (i32, i32) {
    %c0_i32 = arith.constant 0 : i32
    %c0_i32_0 = arith.constant 0 : i32
    %c0_i32_1 = arith.constant 0 : i32
    return %c0_i32, %c0_i32_0 : i32, i32
  }
  func.func @transform_9(%arg0: i32) -> (i32, i32) {
    %c0_i32 = arith.constant 0 : i32
    %c0_i32_0 = arith.constant 0 : i32
    %c0_i32_1 = arith.constant 0 : i32
    return %c0_i32, %c0_i32_0 : i32, i32
  }
  func.func @transform_10(%arg0: i32) -> (i32, i32, i32, i32) {
    %c0_i32 = arith.constant 0 : i32
    %c0_i32_0 = arith.constant 0 : i32
    %c0_i32_1 = arith.constant 0 : i32
    %c0_i32_2 = arith.constant 0 : i32
    return %arg0, %c0_i32, %c0_i32_0, %c0_i32_1 : i32, i32, i32, i32
  }
}

</mosaic_0001>

<bundles_post_ra>
// kernel: bottleneck_dwp_forward.1
= control target key start
LH: loop header
LB: loop body
LE: loop exit
PB: predicated region body
PF: predicated region fallthrough
CT: control target
= control target key end

     0   :  { %15 = vsyncpa [#allocation4], 0  ;;  %s4962_s0 = inlined_call_operand.hbm [shape: f32[2,16,16,256], index: 0, kind: input, shape index: {}]   ;;  %s4963_s1 = inlined_call_operand.vmem [shape: bf16[256,64], index: 1, kind: input, shape index: {}]   ;;  %s4964_s2 = inlined_call_operand.vmem [shape: f32[9,64], index: 2, kind: input, shape index: {}]   ;;  %s4965_s3 = inlined_call_operand.vmem [shape: bf16[64,256], index: 3, kind: input, shape index: {}]   ;;  %s4966_s4 = inlined_call_operand.vmem [shape: f32[1,64], index: 4, kind: input, shape index: {}]   ;;  %s4967_s5 = inlined_call_operand.vmem [shape: f32[1,64], index: 5, kind: input, shape index: {}]   ;;  %s4968_s6 = inlined_call_operand.vmem [shape: f32[1,64], index: 6, kind: input, shape index: {}]   ;;  %s4969_s7 = inlined_call_operand.vmem [shape: f32[1,64], index: 7, kind: input, shape index: {}]   ;;  %s4970_s8 = inlined_call_operand.vmem [shape: f32[1,256], index: 8, kind: input, shape index: {}]   ;;  %s4971_s9 = inlined_call_operand.vmem [shape: f32[1,256], index: 9, kind: input, shape index: {}]   ;;  %s4972_s10 = inlined_call_operand.hbm [shape: f32[2,16,16,256], index: 10, kind: output, shape index: {}]  }
   0x1   :  { %17 = vsyncpa [#allocation4 + $0x1], 0 }
   0x2   :  { %18 = vsyncpa [#allocation5], 0 }
   0x3   :  { %20 = vsyncpa [#allocation5 + $0x1], 0  ;;  %s3210_s13 = smov 0   ;;  %s3212_s14 = smov 0  }
   0x4   :  { %s3214_s15 = smov 0   ;;  %s3216_s16 = smov 0  }
   0x5 LB: > { %s3231_s17 = sadd.s32 4294967295, %s3145_s16   ;;  %s2729_s18 = sadd.s32 4294967294, %s3145_s16   ;;  %s3145_s16 = sphi %s3216_s16, %s4989_s16   ;;  %s3141_s15 = sphi %s3214_s15, %s4988_s15   ;;  %s3137_s14 = sphi %s3212_s14, %s4987_s14   ;;  %s3133_s13 = sphi %s3210_s13, %s4986_s13  }
   0x6   : > { %s3235_s19 = sadd.s32 1, %s3145_s16   ;;  %s33_s20 = sadd.s32 1, %s3141_s15 }
   0x7   : > { %s30_s21 = ssub.s32 %s3145_s16, %s3235_s19  ;;  %p40_p0 = scmp.ne.s32.totalorder %s3141_s15, %s3137_s14 }
   0x8   : > { %p31_p1 = scmp.eq.s32.totalorder %s30_s21, 0  ;;  %p41_p2 = scmp.eq.s32.totalorder %s3145_s16, 0 }
   0x9   : > { %p46_p3 = scmp.ne.s32.totalorder %s3137_s14, %s3133_s13  ;;  %p47_p4 = scmp.eq.s32.totalorder %s3231_s17, 0 }
   0xa   : > { %s3247_s22 = scalar_select %p31_p1, %s3141_s15, %s33_s20  }
   0xb   : > { %p3249_p5 = por %p41_p2, %p40_p0  ;;  %p3253_p6 = por %p47_p4, %p46_p3 }
   0xc   : > { %4975 = sst [smem:[#allocation9_spill]] %s3247_s22  ;;  %p259_p7 = scmp.eq.s32.totalorder %s3231_s17, 1 }
   0xd   : > { %p265_p8 = scmp.eq.s32.totalorder %s2729_s18, 1  ;;  %p2914_p10 = scmp.lt.s32.totalorder %s3145_s16, 2 }
   0xe   : > { %p3260_p11 = por %p259_p7, %p40_p0  ;;  %s312_s27 = sand.u32 1, %s3141_s15  }
   0xf   : > { %p3264_p12 = por %p265_p8, %p46_p3  ;;  %s2788_s28 = sshll.u32 %s3145_s16, 13 }
  0x10   : > { %s4978_s25 = scalar_select %p3260_p11, 1, 0 }
  0x11   : > { %s4979_s26 = scalar_select %p3264_p12, 1, 0 }
  0x12   : > { %s2732_s29 = sshll.u32 %s312_s27, 9  ;;  %s3273_s12 = scalar_lea.hbm %s4962_s0, %s2788_s28 }
  0x13   : > { %s316_s18 = scalar_lea.vmem [#allocation3], %s2732_s29  ;;  %p3277_p13 = pnand %p2914_p10, %p3249_p5 }
  0x14   : > { %s323_s20 = sshll.u32 %s316_s18, 4  ;;  %s3283_s22 = scalar_lea.sflag [#allocation4], %s312_s27  ;;  %s3281_s20 = int_to_ptr.vmem [resolvable:$true] %s323_s20 }
  0x15   : > { %s3049_s30 = scalar_lea.hbm %s3273_s12, 8192  ;;  %p3051_p1 = pneg %p3277_p13 }
  0x16   : > { %p3050_p0 = scmp.ne.s32.totalorder %s3273_s12, %s3049_s30  ;;  %s3054_s29 = scalar_lea.hbm %s4962_s0, 16384 }
  0x17   : > { %p3055_p4 = scmp.lt.u32.totalorder %s3273_s12, %s4962_s0  ;;  %p3056_p5 = scmp.lt.u32.totalorder %s3054_s29, %s3049_s30 }
  0x18   : > { %p3052_p2 = pnand %p3051_p1, %p3050_p0  ;;  %p3058_p8 = scmp.lt.u32.totalorder %s3049_s30, %s3273_s12 }
  0x19   : > { %p3057_p7 = por %p3056_p5, %p3055_p4 }
  0x1a   : > { %p3053_p3 = pneg %p3052_p2 }
  0x1b   : > { %p3059_p10 = por %p3058_p8, %p3057_p7 }
  0x1d   : > { %p3060_p9 = pnand %p3059_p10, %p3053_p3 }
  0x1f   : > { %3063 = shalt.err (!%p3060_p9)
}
  0x20   : > { %s3064_s27 = scalar_lea.vmem %s3281_s20, 8192  ;;  %s3147_s28 = smov [#allocation3]  }
  0x21   : > { %p3065_p0 = scmp.ne.s32.totalorder %s3281_s20, %s3064_s27  ;;  %s3069_s23 = sshll.u32 %s3147_s28, 4  ;;  %s3070_s23 = int_to_ptr.vmem [resolvable:$false] %s3069_s23 }
  0x22   : > { %s3071_s11 = scalar_lea.vmem %s3070_s23, 16384  ;;  %p3072_p11 = scmp.lt.s32.totalorder %s3281_s20, %s3070_s23 }
  0x23   : > { %p3067_p2 = pnand %p3065_p0, %p3051_p1  ;;  %p3073_p4 = scmp.lt.s32.totalorder %s3071_s11, %s3064_s27 }
  0x25   : > { %p3068_p12 = pneg %p3067_p2  ;;  %p3074_p5 = por %p3073_p4, %p3072_p11 }
  0x27   : > { %p3075_p7 = pnand %p3074_p5, %p3068_p12 }
  0x29   : > { %3078 = shalt.err (!%p3075_p7)
}
  0x2a   : > { %s3148_s30 = smov 256   ;;  %s3149_s29 = smov 16  }
  0x2b   : > { %2909 = dma.hbm_to_vmem [thread:$0]  (!%p3277_p13), %s3273_s12, 8192, %s3281_s20, %s3283_s22, %s3148_s30, %s3148_s30, %s3149_s29  }
  0x2c   : > { %p2735_p9 = scmp.ge.s32.totalorder %s3145_s16, 1  ;;  %p331_p1 = scmp.lt.s32.totalorder %s3145_s16, 3 }
  0x2e   : > { %p332_p3 = pnand %p2735_p9, %p331_p1 }
  0x2f   : > { %s3314_s18 = sand.u32 (!%p332_p3), 1, %s3137_s14  }
  0x30   : > { %335 = sbr.rel (%p332_p3) target bundleno = 760 (0x2f8), region = 60  ;;  %s4974_s27 = sshll.u32 (!%p332_p3), %s3314_s18, 9 }
  0x31   : > { %s338_s28 = scalar_lea.sflag (!%p332_p3), [#allocation4], %s3314_s18  ;;  %s3320_s23 = scalar_lea.vmem (!%p332_p3), [#allocation3], %s4974_s27 }
  0x37   : > { %3124 = dma.done.wait (%p3253_p6), %s338_s28, 8192  }
  0x38   : > { %3126 = vsyncadd (%p3253_p6), %s338_s28, 4294959104  ;;  %v2954_v0 = vld [vmem:[%s4963_s1 + $0x40] sm:$0xff]   ;;  %v2956_v2 = vld [vmem:[%s4963_s1 + $0x48] sm:$0xff]   ;;  %vm874_vm0 = vcmask 523264   ;;  %s4981_s24 = sshll.u32 %s3314_s18, 9  ;;  %s2789_s22 = sshll.u32 %s3231_s17, 13 }
  0x39   : > { %v2955_v1 = vld [vmem:[%s4963_s1] sm:$0xff]   ;;  %2790 = vmatprep.subr.bf16.mxu0 %v2954_v0  ;;  %v2957_v3 = vld [vmem:[%s4963_s1 + $0x8] sm:$0xff]   ;;  %v2958_v4 = vld [vmem:[%s4963_s1 + $0x50] sm:$0xff]   ;;  %s4665_s28 = scalar_lea.vmem [#allocation6], %s4981_s24  ;;  %s4913_s27 = scalar_lea.hbm %s4972_s10, %s2789_s22 }
  0x3a   : > { %2791 = vmatpush3.bf16.msra.mxu0 %v2955_v1  ;;  %v2959_v5 = vld [vmem:[%s4963_s1 + $0x10] sm:$0xff]   ;;  %v2960_v6 = vld [vmem:[%s4963_s1 + $0x58] sm:$0xff]   ;;  %v2962_v8 = vld [vmem:[%s4963_s1 + $0x60] sm:$0xff]   ;;  %s2656_s12 = sshll.u32 %s4665_s28, 4  ;;  %s2643_s17 = scalar_lea.sflag [#allocation5], %s3314_s18  ;;  %s4915_s12 = int_to_ptr.vmem [resolvable:$true] %s2656_s12 }
  0x3b   : > { %2792 = vmatprep.subr.bf16.mxu0 %v2956_v2  ;;  %v2961_v7 = vld [vmem:[%s4963_s1 + $0x18] sm:$0xff]   ;;  %v2963_v9 = vld [vmem:[%s4963_s1 + $0x20] sm:$0xff]   ;;  %v2964_v10 = vld [vmem:[%s4963_s1 + $0x68] sm:$0xff]   ;;  %s3079_s11 = scalar_lea.vmem %s4915_s12, 8192  ;;  %p4982_p11 = scmp.ne.s32.totalorder %s4978_s25, 0 }
  0x3c   : > { %v380_v11 = vld [vmem:[%s3320_s23 + $0x8] sm:$0xff]  ;;  %v382_v12 = vld [vmem:[%s3320_s23 + $0x18] sm:$0xff]  ;;  %v2966_v15 = vld [vmem:[%s4963_s1 + $0x70] sm:$0xff]   ;;  %p3080_p6 = scmp.ne.s32.totalorder %s4915_s12, %s3079_s11 }
  0x3d   : > { %v444_v13 = vpack.c.bf16 %v382_v12, %v380_v11  ;;  %v2965_v14 = vld [vmem:[%s4963_s1 + $0x28] sm:$0xff]   ;;  %v2967_v16 = vld [vmem:[%s4963_s1 + $0x30] sm:$0xff]   ;;  %v2968_v17 = vld [vmem:[%s4963_s1 + $0x78] sm:$0xff]  }
  0x3e   : > { %2793 = vmatpush3.bf16.msra.mxu0 %v2957_v3  ;;  %v2969_v18 = vld [vmem:[%s4963_s1 + $0x38] sm:$0xff]   ;;  %v379_v19 = vld [vmem:[%s3320_s23] sm:$0xff]  ;;  %v381_v20 = vld [vmem:[%s3320_s23 + $0x10] sm:$0xff]  ;;  %p3081_p12 = pnand %p3080_p6, %p4982_p11 }
  0x3f   : > { %2794 = vmatprep.subr.bf16.mxu0 %v2958_v4  ;;  %635 = vmatprep.mubr.bf16.mxu0 %v444_v13  ;;  %v384_v21 = vld [vmem:[%s3320_s23 + $0x28] sm:$0xff]  ;;  %v386_v22 = vld [vmem:[%s3320_s23 + $0x38] sm:$0xff]  ;;  %v443_v23 = vpack.c.bf16 %v381_v20, %v379_v19  ;;  %v383_v25 = vld [vmem:[%s3320_s23 + $0x20] sm:$0xff] }
  0x40   : > { %v446_v24 = vpack.c.bf16 %v386_v22, %v384_v21  ;;  %v385_v26 = vld [vmem:[%s3320_s23 + $0x30] sm:$0xff]  ;;  %v388_v27 = vld [vmem:[%s3320_s23 + $0x48] sm:$0xff]  ;;  %v390_v28 = vld [vmem:[%s3320_s23 + $0x58] sm:$0xff]  ;;  %p3082_p13 = pneg %p3081_p12 }
  0x41   : > { %v445_v29 = vpack.c.bf16 %v385_v26, %v383_v25  ;;  %v448_v30 = vpack.c.bf16 %v390_v28, %v388_v27  ;;  %v387_v31 = vld [vmem:[%s3320_s23 + $0x40] sm:$0xff]  ;;  %v389_v32 = vld [vmem:[%s3320_s23 + $0x50] sm:$0xff]  ;;  %v392_v33 = vld [vmem:[%s3320_s23 + $0x68] sm:$0xff] }
  0x42   : > { %2795 = vmatpush3.bf16.msra.mxu0 %v2959_v5  ;;  %v394_v34 = vld [vmem:[%s3320_s23 + $0x78] sm:$0xff]  ;;  %v447_v35 = vpack.c.bf16 %v389_v32, %v387_v31  ;;  %v391_v37 = vld [vmem:[%s3320_s23 + $0x60] sm:$0xff]  ;;  %v393_v38 = vld [vmem:[%s3320_s23 + $0x70] sm:$0xff] }
  0x43   : > { %2796 = vmatprep.subr.bf16.mxu0 %v2960_v6  ;;  %v450_v36 = vpack.c.bf16 %v394_v34, %v392_v33  ;;  %v396_v39 = vld [vmem:[%s3320_s23 + $0x88] sm:$0xff]  ;;  %v398_v40 = vld [vmem:[%s3320_s23 + $0x98] sm:$0xff]  ;;  %v449_v41 = vpack.c.bf16 %v393_v38, %v391_v37  ;;  %v395_v43 = vld [vmem:[%s3320_s23 + $0x80] sm:$0xff] }
  0x44   : > { %v452_v42 = vpack.c.bf16 %v398_v40, %v396_v39  ;;  %v397_v44 = vld [vmem:[%s3320_s23 + $0x90] sm:$0xff]  ;;  %v400_v45 = vld [vmem:[%s3320_s23 + $0xa8] sm:$0xff]  ;;  %v402_v46 = vld [vmem:[%s3320_s23 + $0xb8] sm:$0xff] }
  0x45   : > { %v451_v47 = vpack.c.bf16 %v397_v44, %v395_v43  ;;  %v454_v48 = vpack.c.bf16 %v402_v46, %v400_v45  ;;  %v399_v49 = vld [vmem:[%s3320_s23 + $0xa0] sm:$0xff]  ;;  %v401_v50 = vld [vmem:[%s3320_s23 + $0xb0] sm:$0xff]  ;;  %v404_v51 = vld [vmem:[%s3320_s23 + $0xc8] sm:$0xff] }
  0x46   : > { %2797 = vmatpush3.bf16.msra.mxu0 %v2961_v7  ;;  %v406_v52 = vld [vmem:[%s3320_s23 + $0xd8] sm:$0xff]  ;;  %v453_v53 = vpack.c.bf16 %v401_v50, %v399_v49  ;;  %v403_v55 = vld [vmem:[%s3320_s23 + $0xc0] sm:$0xff]  ;;  %v405_v56 = vld [vmem:[%s3320_s23 + $0xd0] sm:$0xff] }
  0x47   : > { %2798 = vmatprep.subr.bf16.mxu0 %v2962_v8  ;;  %v456_v54 = vpack.c.bf16 %v406_v52, %v404_v51  ;;  %v408_v57 = vld [vmem:[%s3320_s23 + $0xe8] sm:$0xff]  ;;  %v410_v58 = vld [vmem:[%s3320_s23 + $0xf8] sm:$0xff]  ;;  %v455_v59 = vpack.c.bf16 %v405_v56, %v403_v55  ;;  %v407_v61 = vld [vmem:[%s3320_s23 + $0xe0] sm:$0xff] }
  0x48   : > { %v458_v60 = vpack.c.bf16 %v410_v58, %v408_v57  ;;  %v409_v62 = vld [vmem:[%s3320_s23 + $0xf0] sm:$0xff]  ;;  %v412_v63 = vld [vmem:[%s3320_s23 + $0x108] sm:$0xff]  ;;  %v414_v0 = vld [vmem:[%s3320_s23 + $0x118] sm:$0xff] }
  0x49   : > { %v457_v1 = vpack.c.bf16 %v409_v62, %v407_v61  ;;  %v460_v2 = vpack.c.bf16 %v414_v0, %v412_v63  ;;  %v411_v3 = vld [vmem:[%s3320_s23 + $0x100] sm:$0xff]  ;;  %v413_v4 = vld [vmem:[%s3320_s23 + $0x110] sm:$0xff]  ;;  %v416_v5 = vld [vmem:[%s3320_s23 + $0x128] sm:$0xff]  ;;  %v3151_v61 = vmov 0   ;;  %v1014_v62 = vlaneseq }
  0x4a   : > { %2799 = vmatpush3.bf16.msra.mxu0 %v2963_v9  ;;  %v418_v6 = vld [vmem:[%s3320_s23 + $0x138] sm:$0xff]  ;;  %v459_v7 = vpack.c.bf16 %v413_v4, %v411_v3  ;;  %v415_v9 = vld [vmem:[%s3320_s23 + $0x120] sm:$0xff]  ;;  %v420_v11 = vld [vmem:[%s3320_s23 + $0x148] sm:$0xff]  ;;  %2137 = vmatprep.mubr.bf16.mxu1 %v3151_v61 }
  0x4b   : > { %2800 = vmatprep.subr.bf16.mxu0 %v2964_v10  ;;  %v462_v8 = vpack.c.bf16 %v418_v6, %v416_v5  ;;  %v417_v10 = vld [vmem:[%s3320_s23 + $0x130] sm:$0xff]  ;;  %v422_v12 = vld [vmem:[%s3320_s23 + $0x158] sm:$0xff]  ;;  %v423_v21 = vld [vmem:[%s3320_s23 + $0x160] sm:$0xff]  ;;  %v3619_v63 = vshrl.u32 %v1014_v62, 7 }
  0x4c   : > { %v461_v13 = vpack.c.bf16 %v417_v10, %v415_v9  ;;  %v425_v22 = vld [vmem:[%s3320_s23 + $0x170] sm:$0xff]  ;;  %v3425_v27 = vld [vmem:[%s3320_s23 + $0x180] sm:$0xff]  ;;  %v434_v31 = vld [vmem:[%s3320_s23 + $0x1b8] sm:$0xff] }
  0x4d   : > { %v465_v25 = vpack.c.bf16 %v425_v22, %v423_v21  ;;  %v3428_v28 = vld [vmem:[%s3320_s23 + $0x190] sm:$0xff]  ;;  %v431_v34 = vld [vmem:[%s3320_s23 + $0x1a0] sm:$0xff]  ;;  %v438_v37 = vld [vmem:[%s3320_s23 + $0x1d8] sm:$0xff]  ;;  %v3622_v0 = vsub.s32 0, %v3619_v63  ;;  %v3630_v3 = vsub.s32 1, %v3619_v63 }
  0x4e   : > { %2801 = vmatpush3.bf16.msra.mxu0 %v2965_v14  ;;  %v464_v14 = vpack.c.bf16 %v422_v12, %v420_v11  ;;  %v467_v32 = vpack.c.bf16 %v3428_v28, %v3425_v27  ;;  %v435_v40 = vld [vmem:[%s3320_s23 + $0x1c0] sm:$0xff]  ;;  %v442_v43 = vld [vmem:[%s3320_s23 + $0x1f8] sm:$0xff]  ;;  %v441_v49 = vld [vmem:[%s3320_s23 + $0x1f0] sm:$0xff] }
  0x4f   : > { %2802 = vmatprep.subr.bf16.mxu0 %v2966_v15  ;;  %v419_v15 = vld [vmem:[%s3320_s23 + $0x140] sm:$0xff]  ;;  %v2011_v50 = vld [vmem:[%s4965_s3 + $0x10] sm:$0xff]  ;;  %v2012_v51 = vld [vmem:[%s4965_s3 + $0x18] sm:$0xff] }
  0x50   : > { %v2970_v46 = vld [vmem:[%s4965_s3 + $0x4] ss:$8 sps:$4 sm:$0xff]   ;;  %v2973_v52 = vld [vmem:[%s4965_s3 + $0x14] ss:$8 sps:$4 sm:$0xff]   ;;  %v2977_v56 = vld [vmem:[%s4965_s3 + $0x20] ss:$8 sps:$4 sm:$0xff]  }
  0x51   : > { %2105 = vmatprep.subr.bf16.mxu1 %v2970_v46  ;;  %v2975_v55 = vld [vmem:[%s4965_s3 + $0x24] ss:$8 sps:$4 sm:$0xff]   ;;  %v2015_v57 = vld [vmem:[%s4965_s3 + $0x30] sm:$0xff]  ;;  %v2016_v58 = vld [vmem:[%s4965_s3 + $0x38] sm:$0xff] }
  0x52   : > { %2803 = vmatpush3.bf16.msra.mxu0 %v2967_v16  ;;  %v421_v16 = vld [vmem:[%s3320_s23 + $0x150] sm:$0xff]  ;;  %v3635_v5 = vld [vmem:[%s4966_s4] ss:$0 sm:$0xff] }
  0x53   : > { %2804 = vmatprep.subr.bf16.mxu0 %v2968_v17  ;;  %v424_v17 = vld [vmem:[%s3320_s23 + $0x168] sm:$0xff]  ;;  %v463_v19 = vpack.c.bf16 %v421_v16, %v419_v15  ;;  %v1216_v15 = vsub.s32 2, %v3619_v63 }
  0x56   : > { %2805 = vmatpush3.bf16.msra.mxu0 %v2969_v18  ;;  %v426_v18 = vld [vmem:[%s3320_s23 + $0x178] sm:$0xff] }
  0x57   : > { %v466_v20 = vpack.c.bf16 %v426_v18, %v424_v17 }
  0x59   : > { %636 = vmatmul.mubr.bf16.vlgmr.msra.gmra.mrb[0].mxu0 %v443_v23  ;;  %v428_v23 = vld [vmem:[%s3320_s23 + $0x188] sm:$0xff] }
  0x5a   : > { %643 = vmatprep.mubr.bf16.mxu0 %v446_v24  ;;  %v430_v24 = vld [vmem:[%s3320_s23 + $0x198] sm:$0xff] }
  0x5b   : > { %v468_v26 = vpack.c.bf16 %v430_v24, %v428_v23 }
  0x61   : > { %644 = vmatmul.mubr.bf16.gmra.mrb[4].mxu0 %v445_v29  ;;  %v3150_v29 = vmov 0.0  }
  0x62   : > { %651 = vmatprep.mubr.bf16.mxu0 %v448_v30  ;;  %880 = vst.msk [vmem:[#allocation2 + $0x28] sm:$0xff] %vm874_vm0, %v3150_v29  ;;  %875 = vst.msk [vmem:[#allocation2] sm:$0xff] %vm874_vm0, %v3150_v29  ;;  %v432_v30 = vld [vmem:[%s3320_s23 + $0x1a8] sm:$0xff] }
  0x63   : > { %876 = vst.msk [vmem:[#allocation2 + $0x8] sm:$0xff] %vm874_vm0, %v3150_v29  ;;  %877 = vst.msk [vmem:[#allocation2 + $0x10] sm:$0xff] %vm874_vm0, %v3150_v29  ;;  %v470_v33 = vpack.c.bf16 %v434_v31, %v432_v30 }
  0x64   : > { %878 = vst.msk [vmem:[#allocation2 + $0x18] sm:$0xff] %vm874_vm0, %v3150_v29  ;;  %879 = vst.msk [vmem:[#allocation2 + $0x20] sm:$0xff] %vm874_vm0, %v3150_v29 }
  0x65   : > { %881 = vst.msk [vmem:[#allocation2 + $0x30] sm:$0xff] %vm874_vm0, %v3150_v29  ;;  %882 = vst.msk [vmem:[#allocation2 + $0x38] sm:$0xff] %vm874_vm0, %v3150_v29 }
  0x66   : > { %883 = vst.msk [vmem:[#allocation2 + $0x40] sm:$0xff] %vm874_vm0, %v3150_v29  ;;  %884 = vst.msk [vmem:[#allocation2 + $0x48] sm:$0xff] %vm874_vm0, %v3150_v29 }
  0x67   : > { %885 = vst.msk [vmem:[#allocation2 + $0x50] sm:$0xff] %vm874_vm0, %v3150_v29  ;;  %886 = vst.msk [vmem:[#allocation2 + $0x58] sm:$0xff] %vm874_vm0, %v3150_v29 }
  0x68   : > { %887 = vst.msk [vmem:[#allocation2 + $0x60] sm:$0xff] %vm874_vm0, %v3150_v29  ;;  %888 = vst.msk [vmem:[#allocation2 + $0x68] sm:$0xff] %vm874_vm0, %v3150_v29 }
  0x69   : > { %652 = vmatmul.mubr.bf16.gmra.mrb[8].mxu0 %v447_v35  ;;  %889 = vst.msk [vmem:[#allocation2 + $0x70] sm:$0xff] %vm874_vm0, %v3150_v29  ;;  %890 = vst.msk [vmem:[#allocation2 + $0x78] sm:$0xff] %vm874_vm0, %v3150_v29  ;;  %v433_v35 = vld [vmem:[%s3320_s23 + $0x1b0] sm:$0xff] }
  0x6a   : > { %659 = vmatprep.mubr.bf16.mxu0 %v450_v36  ;;  %891 = vst.msk [vmem:[#allocation2 + $0x80] sm:$0xff] %vm874_vm0, %v3150_v29  ;;  %892 = vst.msk [vmem:[#allocation2 + $0x88] sm:$0xff] %vm874_vm0, %v3150_v29  ;;  %v436_v36 = vld [vmem:[%s3320_s23 + $0x1c8] sm:$0xff]  ;;  %v469_v38 = vpack.c.bf16 %v433_v35, %v431_v34  ;;  %v1083_v21 = vld [vmem:[#allocation2 + $0x10] sm:$0xff] }
  0x6b   : > { %893 = vst.msk [vmem:[#allocation2 + $0x90] sm:$0xff] %vm874_vm0, %v3150_v29  ;;  %894 = vst.msk [vmem:[#allocation2 + $0x98] sm:$0xff] %vm874_vm0, %v3150_v29  ;;  %v472_v39 = vpack.c.bf16 %v438_v37, %v436_v36  ;;  %v1082_v16 = vld [vmem:[#allocation2 + $0x8] sm:$0xff]  ;;  %v1183_v36 = vld [vmem:[#allocation2 + $0x11] sm:$0xff]  ;;  %v1416_v37 = vsub.s32 4, %v3619_v63 }
  0x6c   : > { %895 = vst.msk [vmem:[#allocation2 + $0xa0] sm:$0xff] %vm874_vm0, %v3150_v29  ;;  %896 = vst.msk [vmem:[#allocation2 + $0xa8] sm:$0xff] %vm874_vm0, %v3150_v29  ;;  %v1182_v28 = vld [vmem:[#allocation2 + $0x9] sm:$0xff] }
  0x6d   : > { %897 = vst.msk [vmem:[#allocation2 + $0xb0] sm:$0xff] %vm874_vm0, %v3150_v29  ;;  %898 = vst.msk [vmem:[#allocation2 + $0xb8] sm:$0xff] %vm874_vm0, %v3150_v29 }
  0x6e   : > { %899 = vst.msk [vmem:[#allocation2 + $0xc0] sm:$0xff] %vm874_vm0, %v3150_v29  ;;  %900 = vst.msk [vmem:[#allocation2 + $0xc8] sm:$0xff] %vm874_vm0, %v3150_v29 }
  0x6f   : > { %901 = vst.msk [vmem:[#allocation2 + $0xd0] sm:$0xff] %vm874_vm0, %v3150_v29  ;;  %902 = vst.msk [vmem:[#allocation2 + $0xd8] sm:$0xff] %vm874_vm0, %v3150_v29 }
  0x70   : > { %903 = vst.msk [vmem:[#allocation2 + $0xe0] sm:$0xff] %vm874_vm0, %v3150_v29  ;;  %904 = vst.msk [vmem:[#allocation2 + $0xe8] sm:$0xff] %vm874_vm0, %v3150_v29 }
  0x71   : > { %660 = vmatmul.mubr.bf16.gmra.mrb[12].mxu0 %v449_v41  ;;  %905 = vst.msk [vmem:[#allocation2 + $0xf0] sm:$0xff] %vm874_vm0, %v3150_v29  ;;  %906 = vst.msk [vmem:[#allocation2 + $0xf8] sm:$0xff] %vm874_vm0, %v3150_v29  ;;  %v437_v41 = vld [vmem:[%s3320_s23 + $0x1d0] sm:$0xff] }
  0x72   : > { %667 = vmatprep.mubr.bf16.mxu0 %v452_v42  ;;  %907 = vst.msk [vmem:[#allocation2 + $0x100] sm:$0xff] %vm874_vm0, %v3150_v29  ;;  %908 = vst.msk [vmem:[#allocation2 + $0x108] sm:$0xff] %vm874_vm0, %v3150_v29  ;;  %v440_v42 = vld [vmem:[%s3320_s23 + $0x1e8] sm:$0xff]  ;;  %v471_v44 = vpack.c.bf16 %v437_v41, %v435_v40 }
  0x73   : > { %909 = vst.msk [vmem:[#allocation2 + $0x110] sm:$0xff] %vm874_vm0, %v3150_v29  ;;  %910 = vst.msk [vmem:[#allocation2 + $0x118] sm:$0xff] %vm874_vm0, %v3150_v29  ;;  %v474_v45 = vpack.c.bf16 %v442_v43, %v440_v42 }
  0x74   : > { %911 = vst.msk [vmem:[#allocation2 + $0x120] sm:$0xff] %vm874_vm0, %v3150_v29  ;;  %912 = vst.msk [vmem:[#allocation2 + $0x128] sm:$0xff] %vm874_vm0, %v3150_v29 }
  0x75   : > { %913 = vst.msk [vmem:[#allocation2 + $0x130] sm:$0xff] %vm874_vm0, %v3150_v29  ;;  %914 = vst.msk [vmem:[#allocation2 + $0x138] sm:$0xff] %vm874_vm0, %v3150_v29 }
  0x76   : > { %915 = vst.msk [vmem:[#allocation2 + $0x140] sm:$0xff] %vm874_vm0, %v3150_v29  ;;  %916 = vst.msk [vmem:[#allocation2 + $0x148] sm:$0xff] %vm874_vm0, %v3150_v29 }
  0x77   : > { %917 = vst.msk [vmem:[#allocation2 + $0x150] sm:$0xff] %vm874_vm0, %v3150_v29  ;;  %918 = vst.msk [vmem:[#allocation2 + $0x158] sm:$0xff] %vm874_vm0, %v3150_v29 }
  0x78   : > { %919 = vst.msk [vmem:[#allocation2 + $0x160] sm:$0xff] %vm874_vm0, %v3150_v29  ;;  %920 = vst.msk [vmem:[#allocation2 + $0x168] sm:$0xff] %vm874_vm0, %v3150_v29 }
  0x79   : > { %668 = vmatmul.mubr.bf16.gmra.mrb[16].mxu0 %v451_v47  ;;  %921 = vst.msk [vmem:[#allocation2 + $0x170] sm:$0xff] %vm874_vm0, %v3150_v29  ;;  %922 = vst.msk [vmem:[#allocation2 + $0x178] sm:$0xff] %vm874_vm0, %v3150_v29  ;;  %v2972_v47 = vld [vmem:[%s4965_s3] ss:$8 sps:$4 sm:$0xff]  }
  0x7a   : > { %675 = vmatprep.mubr.bf16.mxu0 %v454_v48  ;;  %923 = vst.msk [vmem:[#allocation2 + $0x180] sm:$0xff] %vm874_vm0, %v3150_v29  ;;  %924 = vst.msk [vmem:[#allocation2 + $0x188] sm:$0xff] %vm874_vm0, %v3150_v29  ;;  %v439_v48 = vld [vmem:[%s3320_s23 + $0x1e0] sm:$0xff]  ;;  %2106 = vmatpush1.bf16.msra.mxu1 %v2972_v47 }
  0x7b   : > { %925 = vst.msk [vmem:[#allocation2 + $0x190] sm:$0xff] %vm874_vm0, %v3150_v29  ;;  %926 = vst.msk [vmem:[#allocation2 + $0x198] sm:$0xff] %vm874_vm0, %v3150_v29  ;;  %2107 = vmatprep.subr.bf16.mxu1 %v2973_v52 }
  0x7c   : > { %927 = vst.msk [vmem:[#allocation2 + $0x1a0] sm:$0xff] %vm874_vm0, %v3150_v29  ;;  %928 = vst.msk [vmem:[#allocation2 + $0x1a8] sm:$0xff] %vm874_vm0, %v3150_v29 }
  0x7d   : > { %929 = vst.msk [vmem:[#allocation2 + $0x1b0] sm:$0xff] %vm874_vm0, %v3150_v29  ;;  %930 = vst.msk [vmem:[#allocation2 + $0x1b8] sm:$0xff] %vm874_vm0, %v3150_v29 }
  0x7e   : > { %931 = vst.msk [vmem:[#allocation2 + $0x1c0] sm:$0xff] %vm874_vm0, %v3150_v29  ;;  %932 = vst.msk [vmem:[#allocation2 + $0x1c8] sm:$0xff] %vm874_vm0, %v3150_v29 }
  0x7f   : > { %933 = vst.msk [vmem:[#allocation2 + $0x1d0] sm:$0xff] %vm874_vm0, %v3150_v29  ;;  %934 = vst.msk [vmem:[#allocation2 + $0x1d8] sm:$0xff] %vm874_vm0, %v3150_v29 }
  0x80   : > { %935 = vst.msk [vmem:[#allocation2 + $0x1e0] sm:$0xff] %vm874_vm0, %v3150_v29  ;;  %936 = vst.msk [vmem:[#allocation2 + $0x1e8] sm:$0xff] %vm874_vm0, %v3150_v29 }
  0x81   : > { %676 = vmatmul.mubr.bf16.gmra.mrb[20].mxu0 %v453_v53  ;;  %937 = vst.msk [vmem:[#allocation2 + $0x1f0] sm:$0xff] %vm874_vm0, %v3150_v29  ;;  %938 = vst.msk [vmem:[#allocation2 + $0x1f8] sm:$0xff] %vm874_vm0, %v3150_v29  ;;  %v2761_v53 = vcombine.low %v2011_v50, %v2012_v51 }
  0x82   : > { %683 = vmatprep.mubr.bf16.mxu0 %v456_v54  ;;  %939 = vst.msk [vmem:[#allocation2 + $0x200] sm:$0xff] %vm874_vm0, %v3150_v29  ;;  %940 = vst.msk [vmem:[#allocation2 + $0x208] sm:$0xff] %vm874_vm0, %v3150_v29  ;;  %v473_v54 = vpack.c.bf16 %v441_v49, %v439_v48  ;;  %v1516_v48 = vsub.s32 5, %v3619_v63 }
  0x83   : > { %941 = vst.msk [vmem:[#allocation2 + $0x210] sm:$0xff] %vm874_vm0, %v3150_v29  ;;  %942 = vst.msk [vmem:[#allocation2 + $0x218] sm:$0xff] %vm874_vm0, %v3150_v29  ;;  %2108 = vmatpush1.bf16.msra.mxu1 %v2761_v53 }
  0x84   : > { %943 = vst.msk [vmem:[#allocation2 + $0x220] sm:$0xff] %vm874_vm0, %v3150_v29  ;;  %944 = vst.msk [vmem:[#allocation2 + $0x228] sm:$0xff] %vm874_vm0, %v3150_v29  ;;  %2109 = vmatprep.subr.bf16.mxu1 %v2975_v55 }
  0x85   : > { %945 = vst.msk [vmem:[#allocation2 + $0x230] sm:$0xff] %vm874_vm0, %v3150_v29  ;;  %946 = vst.msk [vmem:[#allocation2 + $0x238] sm:$0xff] %vm874_vm0, %v3150_v29  ;;  %v1316_v29 = vsub.s32 3, %v3619_v63 }
  0x87   : > { %2110 = vmatpush1.bf16.msra.mxu1 %v2977_v56  ;;  %v1617_v56 = vsub.s32 6, %v3619_v63 }
  0x89   : > { %684 = vmatmul.mubr.bf16.gmra.mrb[24].mxu0 %v455_v59  ;;  %v2978_v59 = vld [vmem:[%s4965_s3 + $0x34] ss:$8 sps:$4 sm:$0xff]  }
  0x8a   : > { %691 = vmatprep.mubr.bf16.mxu0 %v458_v60  ;;  %v2765_v60 = vcombine.low %v2015_v57, %v2016_v58  ;;  %2111 = vmatprep.subr.bf16.mxu1 %v2978_v59  ;;  %v1717_v57 = vsub.s32 7, %v3619_v63 }
  0x8c   : > { %2112 = vmatpush1.bf16.msra.mxu1 %v2765_v60 }
  0x91   : > { %692 = vmatmul.mubr.bf16.gmra.mrb[28].mxu0 %v457_v1 }
  0x92   : > { %699 = vmatprep.mubr.bf16.mxu0 %v460_v2  ;;  %v3627_v2 = vld [vmem:[%s4964_s2] sm:$0xff] }
  0x93   : > { %v3644_v10 = vrot.slane %v3627_v2, %v3622_v0  ;;  %v3669_v42 = vrot.slane %v3627_v2, %v1316_v29  ;;  %v3675_v47 = vrot.slane %v3627_v2, %v1416_v37 }
  0x99   : > { %700 = vmatmul.mubr.bf16.gmra.mrb[32].mxu0 %v459_v7 }
  0x9a   : > { %707 = vmatprep.mubr.bf16.mxu0 %v462_v8  ;;  %v3640_v8 = vld [vmem:[%s4967_s5] ss:$0 sm:$0xff] }
  0xa1   : > { %708 = vmatmul.mubr.bf16.gmra.mrb[36].mxu0 %v461_v13  ;;  %v982_v13 = vld [vmem:[#allocation2 + $0x7] sm:$0xff] }
  0xa2   : > { %715 = vmatprep.mubr.bf16.mxu0 %v464_v14  ;;  %v3649_v14 = vrot.slane %v3627_v2, %v3630_v3 }
  0xa4   : > { %v1119_v34 = vmul.f32 %v3649_v14, %v1083_v21  ;;  %v3694_v21 = vrot.slane %v3627_v2, %v1617_v56 }
  0xa9   : > { %716 = vmatmul.mubr.bf16.gmra.mrb[40].mxu0 %v463_v19  ;;  %v983_v19 = vld [vmem:[#allocation2 + $0xf] sm:$0xff] }
  0xaa   : > { %723 = vmatprep.mubr.bf16.mxu0 %v466_v20  ;;  %v1018_v20 = vmul.f32 %v3644_v10, %v982_v13 }
  0xb1   : > { %724 = vmatmul.mubr.bf16.gmra.mrb[44].mxu0 %v465_v25  ;;  %v1118_v25 = vmul.f32 %v3649_v14, %v1082_v16 }
  0xb2   : > { %731 = vmatprep.mubr.bf16.mxu0 %v468_v26  ;;  %v3658_v26 = vrot.slane %v3627_v2, %v1216_v15 }
  0xb3   : > { %v1150_v40 = vadd.f32 %v1118_v25, %v1018_v20 }
  0xb4   : > { %v1218_v41 = vmul.f32 %v3658_v26, %v1182_v28  ;;  %v1219_v46 = vmul.f32 %v3658_v26, %v1183_v36 }
  0xb6   : > { %v1250_v52 = vadd.f32 %v1218_v41, %v1150_v40 }
  0xb9   : > { %732 = vmatmul.mubr.bf16.gmra.mrb[48].mxu0 %v467_v32 }
  0xba   : > { %739 = vmatprep.mubr.bf16.mxu0 %v470_v33  ;;  %v1019_v33 = vmul.f32 %v3644_v10, %v983_v19 }
  0xc1   : > { %740 = vmatmul.mubr.bf16.gmra.mrb[52].mxu0 %v469_v38 }
  0xc2   : > { %747 = vmatprep.mubr.bf16.mxu0 %v472_v39 }
  0xc9   : > { %748 = vmatmul.mubr.bf16.gmra.mrb[56].mxu0 %v471_v44 }
  0xca   : > { %755 = vmatprep.mubr.bf16.mxu0 %v474_v45  ;;  %v1151_v45 = vadd.f32 %v1119_v34, %v1019_v33 }
  0xcc   : > { %v1251_v62 = vadd.f32 %v1219_v46, %v1151_v45 }
  0xd1   : > { %756 = vmatmul.mubr.bf16.gmra.mrb[60].mxu0 %v473_v54 }
 0x12c   : > { %v2806_v1 = vpop.f32.mrb[0].mxu0 }
 0x12d   : > { %v2807_v4 = vpop.f32.mrb[1].mxu0 }
 0x12e   : > { %v2808_v6 = vadd.f32 %v2807_v4, %v2806_v1  ;;  %v2809_v7 = vpop.f32.mrb[2].mxu0 }
 0x12f   : > { %v2810_v9 = vpop.f32.mrb[3].mxu0 }
 0x130   : > { %v771_v11 = vmul.f32 %v2808_v6, %v3635_v5  ;;  %v2811_v12 = vadd.f32 %v2810_v9, %v2809_v7 }
 0x132   : > { %v810_v17 = vadd.f32 %v3640_v8, %v771_v11  ;;  %v772_v18 = vmul.f32 %v2811_v12, %v3635_v5  ;;  %v3685_v11 = vrot.slane %v3627_v2, %v1516_v48 }
 0x134   : > { %v842_v22 = vmax.f32 %v810_v17, 0.0  ;;  %v811_v23 = vadd.f32 %v3640_v8, %v772_v18  ;;  %v2812_v24 = vpop.f32.mrb[4].mxu0 }
 0x135   : > { %v2813_v27 = vpop.f32.mrb[5].mxu0 }
 0x136   : > { %948 = vst.msk [vmem:[#allocation2 + $0x28] sm:$0xff] %vm874_vm0, %v842_v22  ;;  %v843_v30 = vmax.f32 %v811_v23, 0.0  ;;  %v2814_v31 = vadd.f32 %v2813_v27, %v2812_v24  ;;  %v2815_v32 = vpop.f32.mrb[6].mxu0  ;;  %v3697_v22 = vrot.slane %v3627_v2, %v1717_v57 }
 0x137   : > { %v2816_v35 = vpop.f32.mrb[7].mxu0 }
 0x138   : > { %949 = vst.msk [vmem:[#allocation2 + $0x30] sm:$0xff] %vm874_vm0, %v843_v30  ;;  %v773_v38 = vmul.f32 %v2814_v31, %v3635_v5  ;;  %v2817_v39 = vadd.f32 %v2816_v35, %v2815_v32 }
 0x13a   : > { %v812_v43 = vadd.f32 %v3640_v8, %v773_v38  ;;  %v774_v44 = vmul.f32 %v2817_v39, %v3635_v5 }
 0x13c   : > { %v844_v49 = vmax.f32 %v812_v43, 0.0  ;;  %v813_v50 = vadd.f32 %v3640_v8, %v774_v44  ;;  %v2818_v51 = vpop.f32.mrb[8].mxu0 }
 0x13d   : > { %v2819_v53 = vpop.f32.mrb[9].mxu0  ;;  %v1282_v54 = vld [vmem:[#allocation2 + $0x27] sm:$0xff] }
 0x13e   : > { %v1382_v55 = vld [vmem:[#allocation2 + $0x28] sm:$0xff]  ;;  %950 = vst.msk [vmem:[#allocation2 + $0x48] sm:$0xff] %vm874_vm0, %v844_v49  ;;  %v845_v58 = vmax.f32 %v813_v50, 0.0  ;;  %v2820_v59 = vadd.f32 %v2819_v53, %v2818_v51  ;;  %v2821_v60 = vpop.f32.mrb[10].mxu0  ;;  %v1318_v1 = vmul.f32 %v3669_v42, %v1282_v54  ;;  %v1020_v12 = vmul.f32 %v1282_v54, %v3644_v10 }
 0x13f   : > { %v2822_v4 = vpop.f32.mrb[11].mxu0  ;;  %v1283_v6 = vld [vmem:[#allocation2 + $0x2f] sm:$0xff]  ;;  %v1418_v9 = vmul.f32 %v3675_v47, %v1382_v55  ;;  %v1120_v63 = vmul.f32 %v1382_v55, %v3649_v14  ;;  %v3714_v49 = vld [vmem:[%s4964_s2 + $0x8] ss:$0 sm:$0xff] }
 0x140   : > { %v1383_v7 = vld [vmem:[#allocation2 + $0x30] sm:$0xff]  ;;  %951 = vst.msk [vmem:[#allocation2 + $0x50] sm:$0xff] %vm874_vm0, %v845_v58  ;;  %v775_v13 = vmul.f32 %v2820_v59, %v3635_v5  ;;  %v2823_v15 = vadd.f32 %v2822_v4, %v2821_v60  ;;  %v1319_v16 = vmul.f32 %v3669_v42, %v1283_v6  ;;  %v1350_v17 = vadd.f32 %v1318_v1, %v1250_v52 }
 0x141   : > { %v1482_v18 = vld [vmem:[#allocation2 + $0x29] sm:$0xff]  ;;  %v1419_v19 = vmul.f32 %v3675_v47, %v1383_v7  ;;  %v1483_v20 = vld [vmem:[#allocation2 + $0x31] sm:$0xff]  ;;  %v1021_v23 = vmul.f32 %v1283_v6, %v3644_v10  ;;  %v1121_v30 = vmul.f32 %v1383_v7, %v3649_v14  ;;  %v1152_v31 = vadd.f32 %v1120_v63, %v1020_v12 }
 0x142   : > { %v814_v24 = vadd.f32 %v3640_v8, %v775_v13  ;;  %v776_v25 = vmul.f32 %v2823_v15, %v3635_v5  ;;  %v1351_v27 = vadd.f32 %v1319_v16, %v1251_v62  ;;  %v1450_v28 = vadd.f32 %v1418_v9, %v1350_v17 }
 0x143   : > { %v1518_v29 = vmul.f32 %v3685_v11, %v1482_v18  ;;  %v1220_v32 = vmul.f32 %v1482_v18, %v3658_v26  ;;  %v1519_v36 = vmul.f32 %v3685_v11, %v1483_v20  ;;  %v1153_v41 = vadd.f32 %v1121_v30, %v1021_v23  ;;  %v3747_v18 = vld [vmem:[%s4968_s6] ss:$0 sm:$0xff] }
 0x144   : > { %v846_v33 = vmax.f32 %v814_v24, 0.0  ;;  %v815_v34 = vadd.f32 %v3640_v8, %v776_v25  ;;  %v2824_v2 = vpop.f32.mrb[12].mxu0  ;;  %v1451_v35 = vadd.f32 %v1419_v19, %v1351_v27  ;;  %v1221_v43 = vmul.f32 %v1483_v20, %v3658_v26 }
 0x145   : > { %v2825_v37 = vpop.f32.mrb[13].mxu0  ;;  %v1550_v38 = vadd.f32 %v1518_v29, %v1450_v28  ;;  %v1583_v39 = vld [vmem:[#allocation2 + $0x47] sm:$0xff]  ;;  %v1252_v44 = vadd.f32 %v1220_v32, %v1152_v31  ;;  %v3757_v32 = vld [vmem:[%s4969_s7] ss:$0 sm:$0xff] }
 0x146   : > { %v3707_v40 = vld [vmem:[#allocation2 + $0x48] sm:$0xff]  ;;  %952 = vst.msk [vmem:[#allocation2 + $0x68] sm:$0xff] %vm874_vm0, %v846_v33  ;;  %v847_v45 = vmax.f32 %v815_v34, 0.0  ;;  %v2826_v46 = vadd.f32 %v2825_v37, %v2824_v2  ;;  %v2827_v48 = vpop.f32.mrb[14].mxu0  ;;  %v1551_v50 = vadd.f32 %v1519_v36, %v1451_v35  ;;  %v1619_v51 = vmul.f32 %v3694_v21, %v1583_v39 }
 0x147   : > { %v2828_v52 = vpop.f32.mrb[15].mxu0  ;;  %v3717_v53 = vld [vmem:[#allocation2 + $0x4f] sm:$0xff]  ;;  %v1719_v55 = vmul.f32 %v3697_v22, %v3707_v40  ;;  %v1253_v57 = vadd.f32 %v1221_v43, %v1153_v41  ;;  %v1320_v58 = vmul.f32 %v1583_v39, %v3669_v42  ;;  %v1420_v59 = vmul.f32 %v3707_v40, %v3675_v47 }
 0x148   : > { %v3719_v54 = vld [vmem:[#allocation2 + $0x50] sm:$0xff]  ;;  %953 = vst.msk [vmem:[#allocation2 + $0x70] sm:$0xff] %vm874_vm0, %v847_v45  ;;  %v777_v60 = vmul.f32 %v2826_v46, %v3635_v5  ;;  %v2829_v62 = vadd.f32 %v2828_v52, %v2827_v48  ;;  %v1620_v1 = vmul.f32 %v3694_v21, %v3717_v53  ;;  %v1651_v4 = vadd.f32 %v1619_v51, %v1550_v38 }
 0x149   : > { %v3723_v56 = vld [vmem:[#allocation2 + $0x49] sm:$0xff]  ;;  %v3732_v6 = vld [vmem:[#allocation2 + $0x51] sm:$0xff]  ;;  %v1720_v7 = vmul.f32 %v3697_v22, %v3719_v54  ;;  %v1321_v63 = vmul.f32 %v3717_v53, %v3669_v42  ;;  %v1352_v19 = vadd.f32 %v1320_v58, %v1252_v44  ;;  %v1421_v23 = vmul.f32 %v3719_v54, %v3675_v47 }
 0x14a   : > { %v1819_v9 = vmul.f32 %v3714_v49, %v3723_v56  ;;  %v1820_v12 = vmul.f32 %v3714_v49, %v3732_v6  ;;  %v816_v13 = vadd.f32 %v3640_v8, %v777_v60  ;;  %v778_v15 = vmul.f32 %v2829_v62, %v3635_v5 }
 0x14b   : > { %v1652_v16 = vadd.f32 %v1620_v1, %v1551_v50  ;;  %v1751_v17 = vadd.f32 %v1719_v55, %v1651_v4  ;;  %v1353_v20 = vadd.f32 %v1321_v63, %v1253_v57  ;;  %v1520_v24 = vmul.f32 %v3723_v56, %v3685_v11 }
 0x14c   : > { %v848_v25 = vmax.f32 %v816_v13, 0.0  ;;  %v817_v27 = vadd.f32 %v3640_v8, %v778_v15  ;;  %v2830_v28 = vpop.f32.mrb[16].mxu0  ;;  %v1452_v33 = vadd.f32 %v1420_v59, %v1352_v19  ;;  %v1521_v2 = vmul.f32 %v3732_v6, %v3685_v11 }
 0x14d   : > { %v1752_v29 = vadd.f32 %v1720_v7, %v1652_v16  ;;  %v1851_v30 = vadd.f32 %v1819_v9, %v1751_v17  ;;  %v2831_v31 = vpop.f32.mrb[17].mxu0  ;;  %v1453_v34 = vadd.f32 %v1421_v23, %v1353_v20  ;;  %v3761_v35 = vld [vmem:[#allocation2 + $0x67] sm:$0xff]  ;;  %v1022_v37 = vmul.f32 %v1583_v39, %v3644_v10 }
 0x14e   : > { %v3763_v36 = vld [vmem:[#allocation2 + $0x68] sm:$0xff]  ;;  %954 = vst.msk [vmem:[#allocation2 + $0x88] sm:$0xff] %vm874_vm0, %v848_v25  ;;  %v849_v38 = vmax.f32 %v817_v27, 0.0  ;;  %v2832_v41 = vadd.f32 %v2831_v31, %v2830_v28  ;;  %v2833_v43 = vpop.f32.mrb[18].mxu0  ;;  %v1552_v48 = vadd.f32 %v1520_v24, %v1452_v33  ;;  %v1621_v52 = vmul.f32 %v3694_v21, %v3761_v35 }
 0x14f   : > { %v1852_v44 = vadd.f32 %v1820_v12, %v1752_v29  ;;  %v1890_v45 = vmul.f32 %v3747_v18, %v1851_v30  ;;  %v2834_v46 = vpop.f32.mrb[19].mxu0  ;;  %v1553_v50 = vadd.f32 %v1521_v2, %v1453_v34  ;;  %v3768_v51 = vld [vmem:[#allocation2 + $0x6f] sm:$0xff]  ;;  %v1721_v39 = vmul.f32 %v3697_v22, %v3763_v36 }
 0x150   : > { %v3772_v55 = vld [vmem:[#allocation2 + $0x70] sm:$0xff]  ;;  %955 = vst.msk [vmem:[#allocation2 + $0x90] sm:$0xff] %vm874_vm0, %v849_v38  ;;  %v779_v58 = vmul.f32 %v2832_v41, %v3635_v5  ;;  %v2835_v59 = vadd.f32 %v2834_v46, %v2833_v43  ;;  %v1622_v4 = vmul.f32 %v3694_v21, %v3768_v51  ;;  %v1653_v7 = vadd.f32 %v1621_v52, %v1552_v48 }
 0x151   : > { %v3776_v57 = vld [vmem:[#allocation2 + $0x69] sm:$0xff]  ;;  %v1891_v60 = vmul.f32 %v3747_v18, %v1852_v44  ;;  %v1929_v62 = vadd.f32 %v3757_v32, %v1890_v45  ;;  %v3782_v1 = vld [vmem:[#allocation2 + $0x71] sm:$0xff]  ;;  %v1722_v9 = vmul.f32 %v3697_v22, %v3772_v55  ;;  %v1023_v23 = vmul.f32 %v3717_v53, %v3644_v10 }
 0x152   : > { %v1821_v12 = vmul.f32 %v3714_v49, %v3776_v57  ;;  %v818_v63 = vadd.f32 %v3640_v8, %v779_v58  ;;  %v780_v13 = vmul.f32 %v2835_v59, %v3635_v5  ;;  %v1654_v17 = vadd.f32 %v1622_v4, %v1553_v50 }
 0x153   : > { %v1930_v15 = vadd.f32 %v3757_v32, %v1891_v60  ;;  %v1961_v16 = vmax.f32 %v1929_v62, 0.0  ;;  %v1753_v19 = vadd.f32 %v1721_v39, %v1653_v7  ;;  %v1822_v20 = vmul.f32 %v3714_v49, %v3782_v1 }
 0x154   : > { %v850_v24 = vmax.f32 %v818_v63, 0.0  ;;  %v819_v25 = vadd.f32 %v3640_v8, %v780_v13  ;;  %v2836_v27 = vpop.f32.mrb[20].mxu0  ;;  %v1122_v29 = vmul.f32 %v3707_v40, %v3649_v14  ;;  %v1754_v31 = vadd.f32 %v1722_v9, %v1654_v17 }
 0x155   : > { %v1962_v28 = vmax.f32 %v1930_v15, 0.0  ;;  %v2837_v30 = vpop.f32.mrb[21].mxu0  ;;  %v1853_v33 = vadd.f32 %v1821_v12, %v1753_v19  ;;  %v1123_v34 = vmul.f32 %v3719_v54, %v3649_v14  ;;  %v1222_v2 = vmul.f32 %v3723_v56, %v3658_v26  ;;  %v3822_v9 = vld [vmem:[#allocation2 + $0x87] sm:$0xff] }
 0x156   : > { %956 = vst.msk [vmem:[#allocation2 + $0xa8] sm:$0xff] %vm874_vm0, %v850_v24  ;;  %v851_v53 = vmax.f32 %v819_v25, 0.0  ;;  %v2838_v38 = vadd.f32 %v2837_v30, %v2836_v27  ;;  %v2839_v41 = vpop.f32.mrb[22].mxu0  ;;  %v1154_v44 = vadd.f32 %v1122_v29, %v1022_v37  ;;  %v1854_v46 = vadd.f32 %v1822_v20, %v1754_v31  ;;  %v3832_v25 = vld [vmem:[#allocation2 + $0x88] sm:$0xff] }
 0x157   : > { %v1993_v43 = vpack.c.bf16 %v1962_v28, %v1961_v16  ;;  %v2840_v45 = vpop.f32.mrb[23].mxu0  ;;  %v1892_v40 = vmul.f32 %v3747_v18, %v1853_v33  ;;  %v1155_v48 = vadd.f32 %v1123_v34, %v1023_v23  ;;  %v1223_v50 = vmul.f32 %v3732_v6, %v3658_v26  ;;  %v3827_v16 = vld [vmem:[#allocation2 + $0x8f] sm:$0xff] }
 0x158   : > { %957 = vst.msk [vmem:[#allocation2 + $0xb0] sm:$0xff] %vm874_vm0, %v851_v53  ;;  %v781_v54 = vmul.f32 %v2838_v38, %v3635_v5  ;;  %v2841_v56 = vadd.f32 %v2840_v45, %v2839_v41  ;;  %v1254_v52 = vadd.f32 %v1222_v2, %v1154_v44  ;;  %v1322_v39 = vmul.f32 %v3761_v35, %v3669_v42  ;;  %v3834_v27 = vld [vmem:[#allocation2 + $0x90] sm:$0xff] }
 0x159   : > { %2767 = vmatmul.mubr.msk.bf16.vlgmr.msra.gmra.mrb[0].mxu1 %vm874_vm0, %v1993_v43  ;;  %v1893_v37 = vmul.f32 %v3747_v18, %v1854_v46  ;;  %v1931_v58 = vadd.f32 %v3757_v32, %v1892_v40  ;;  %v1255_v59 = vadd.f32 %v1223_v50, %v1155_v48  ;;  %v1323_v6 = vmul.f32 %v3768_v51, %v3669_v42  ;;  %v3840_v34 = vld [vmem:[#allocation2 + $0x89] sm:$0xff]  ;;  %v3845_v44 = vld [vmem:[#allocation2 + $0x91] sm:$0xff] }
 0x15a   : > { %2147 = vmatprep.mubr.bf16.mxu1 %v3151_v61  ;;  %v820_v60 = vadd.f32 %v3640_v8, %v781_v54  ;;  %v782_v62 = vmul.f32 %v2841_v56, %v3635_v5  ;;  %v1354_v4 = vadd.f32 %v1322_v39, %v1254_v52  ;;  %v1422_v7 = vmul.f32 %v3763_v36, %v3675_v47 }
 0x15b   : > { %v1932_v12 = vadd.f32 %v3757_v32, %v1893_v37  ;;  %v1963_v63 = vmax.f32 %v1931_v58, 0.0  ;;  %v1355_v13 = vadd.f32 %v1323_v6, %v1255_v59  ;;  %v1423_v15 = vmul.f32 %v3772_v55, %v3675_v47 }
 0x15c   : > { %v852_v17 = vmax.f32 %v820_v60, 0.0  ;;  %v821_v19 = vadd.f32 %v3640_v8, %v782_v62  ;;  %v2842_v20 = vpop.f32.mrb[24].mxu0  ;;  %v1454_v23 = vadd.f32 %v1422_v7, %v1354_v4  ;;  %v1522_v24 = vmul.f32 %v3776_v57, %v3685_v11 }
 0x15d   : > { %v2843_v28 = vpop.f32.mrb[25].mxu0  ;;  %v1964_v29 = vmax.f32 %v1932_v12, 0.0  ;;  %v1455_v30 = vadd.f32 %v1423_v15, %v1355_v13  ;;  %v1523_v31 = vmul.f32 %v3782_v1, %v3685_v11  ;;  %v1623_v33 = vmul.f32 %v3694_v21, %v3822_v9 }
 0x15e   : > { %958 = vst.msk [vmem:[#allocation2 + $0xc8] sm:$0xff] %vm874_vm0, %v852_v17  ;;  %v853_v2 = vmax.f32 %v821_v19, 0.0  ;;  %v2844_v53 = vadd.f32 %v2843_v28, %v2842_v20  ;;  %v2845_v38 = vpop.f32.mrb[26].mxu0  ;;  %v1554_v41 = vadd.f32 %v1522_v24, %v1454_v23  ;;  %v1624_v43 = vmul.f32 %v3694_v21, %v3827_v16 }
 0x15f   : > { %v2846_v45 = vpop.f32.mrb[27].mxu0  ;;  %v1994_v46 = vpack.c.bf16 %v1964_v29, %v1963_v63  ;;  %v1555_v40 = vadd.f32 %v1523_v31, %v1455_v30  ;;  %v1723_v48 = vmul.f32 %v3697_v22, %v3832_v25  ;;  %v1724_v50 = vmul.f32 %v3697_v22, %v3834_v27 }
 0x160   : > { %959 = vst.msk [vmem:[#allocation2 + $0xd0] sm:$0xff] %vm874_vm0, %v853_v2  ;;  %v783_v54 = vmul.f32 %v2844_v53, %v3635_v5  ;;  %v2847_v56 = vadd.f32 %v2846_v45, %v2845_v38  ;;  %v1655_v52 = vadd.f32 %v1623_v33, %v1554_v41  ;;  %v1823_v39 = vmul.f32 %v3714_v49, %v3840_v34 }
 0x161   : > { %2768 = vmatmul.mubr.msk.bf16.gmra.mrb[4].mxu1 %vm874_vm0, %v1994_v46  ;;  %v1656_v37 = vadd.f32 %v1624_v43, %v1555_v40  ;;  %v1824_v58 = vmul.f32 %v3714_v49, %v3845_v44  ;;  %v1024_v59 = vmul.f32 %v3761_v35, %v3644_v10  ;;  %v1025_v6 = vmul.f32 %v3768_v51, %v3644_v10 }
 0x162   : > { %v822_v60 = vadd.f32 %v3640_v8, %v783_v54  ;;  %v784_v62 = vmul.f32 %v2847_v56, %v3635_v5  ;;  %2157 = vmatprep.mubr.bf16.mxu1 %v3151_v61  ;;  %v1755_v4 = vadd.f32 %v1723_v48, %v1655_v52  ;;  %v1124_v7 = vmul.f32 %v3763_v36, %v3649_v14  ;;  %v3888_v48 = vld [vmem:[#allocation2 + $0xa7] sm:$0xff] }
 0x163   : > { %v1756_v12 = vadd.f32 %v1724_v50, %v1656_v37  ;;  %v1125_v63 = vmul.f32 %v3772_v55, %v3649_v14  ;;  %v1224_v35 = vmul.f32 %v3776_v57, %v3658_v26  ;;  %v1225_v51 = vmul.f32 %v3782_v1, %v3658_v26  ;;  %v3890_v50 = vld [vmem:[#allocation2 + $0xaf] sm:$0xff] }
 0x164   : > { %v854_v13 = vmax.f32 %v822_v60, 0.0  ;;  %v823_v15 = vadd.f32 %v3640_v8, %v784_v62  ;;  %v2848_v17 = vpop.f32.mrb[28].mxu0  ;;  %v1855_v19 = vadd.f32 %v1823_v39, %v1755_v4  ;;  %v1156_v20 = vadd.f32 %v1124_v7, %v1024_v59  ;;  %v3897_v37 = vld [vmem:[#allocation2 + $0xa8] sm:$0xff]  ;;  %v3901_v62 = vld [vmem:[#allocation2 + $0xb0] sm:$0xff] }
 0x165   : > { %v2849_v23 = vpop.f32.mrb[29].mxu0  ;;  %v1856_v24 = vadd.f32 %v1824_v58, %v1756_v12  ;;  %v1157_v28 = vadd.f32 %v1125_v63, %v1025_v6  ;;  %v1324_v36 = vmul.f32 %v3822_v9, %v3669_v42  ;;  %v1325_v55 = vmul.f32 %v3827_v16, %v3669_v42  ;;  %v3903_v4 = vld [vmem:[#allocation2 + $0xa9] sm:$0xff] }
 0x166   : > { %960 = vst.msk [vmem:[#allocation2 + $0xe8] sm:$0xff] %vm874_vm0, %v854_v13  ;;  %v855_v57 = vmax.f32 %v823_v15, 0.0  ;;  %v2850_v29 = vadd.f32 %v2849_v23, %v2848_v17  ;;  %v2851_v1 = vpop.f32.mrb[30].mxu0  ;;  %v1894_v30 = vmul.f32 %v3747_v18, %v1855_v19  ;;  %v1256_v31 = vadd.f32 %v1224_v35, %v1156_v20 }
 0x167   : > { %v2852_v33 = vpop.f32.mrb[31].mxu0  ;;  %v1895_v2 = vmul.f32 %v3747_v18, %v1856_v24  ;;  %v1257_v53 = vadd.f32 %v1225_v51, %v1157_v28  ;;  %v1424_v38 = vmul.f32 %v3832_v25, %v3675_v47  ;;  %v1425_v41 = vmul.f32 %v3834_v27, %v3675_v47  ;;  %v3909_v51 = vld [vmem:[#allocation2 + $0xb1] sm:$0xff] }
 0x168   : > { %961 = vst.msk [vmem:[#allocation2 + $0xf0] sm:$0xff] %vm874_vm0, %v855_v57  ;;  %v785_v43 = vmul.f32 %v2850_v29, %v3635_v5  ;;  %v2853_v45 = vadd.f32 %v2852_v33, %v2851_v1  ;;  %v1933_v46 = vadd.f32 %v3757_v32, %v1894_v30  ;;  %v1356_v40 = vadd.f32 %v1324_v36, %v1256_v31 }
 0x169   : > { %v1934_v54 = vadd.f32 %v3757_v32, %v1895_v2  ;;  %v1357_v56 = vadd.f32 %v1325_v55, %v1257_v53  ;;  %v1524_v52 = vmul.f32 %v3840_v34, %v3685_v11  ;;  %v1525_v39 = vmul.f32 %v3845_v44, %v3685_v11 }
 0x16a   : > { %v824_v58 = vadd.f32 %v3640_v8, %v785_v43  ;;  %v786_v59 = vmul.f32 %v2853_v45, %v3635_v5  ;;  %v1965_v6 = vmax.f32 %v1933_v46, 0.0  ;;  %v1456_v60 = vadd.f32 %v1424_v38, %v1356_v40 }
 0x16b   : > { %v1966_v7 = vmax.f32 %v1934_v54, 0.0  ;;  %v1457_v12 = vadd.f32 %v1425_v41, %v1357_v56  ;;  %v1625_v63 = vmul.f32 %v3694_v21, %v3888_v48  ;;  %v1626_v35 = vmul.f32 %v3694_v21, %v3890_v50 }
 0x16c   : > { %v856_v13 = vmax.f32 %v824_v58, 0.0  ;;  %v825_v15 = vadd.f32 %v3640_v8, %v786_v59  ;;  %v2854_v17 = vpop.f32.mrb[32].mxu0  ;;  %v1556_v19 = vadd.f32 %v1524_v52, %v1456_v60  ;;  %v1725_v20 = vmul.f32 %v3697_v22, %v3897_v37 }
 0x16d   : > { %v1995_v23 = vpack.c.bf16 %v1966_v7, %v1965_v6  ;;  %v2855_v24 = vpop.f32.mrb[33].mxu0  ;;  %v1557_v28 = vadd.f32 %v1525_v39, %v1457_v12  ;;  %v1726_v36 = vmul.f32 %v3697_v22, %v3901_v62  ;;  %v1825_v55 = vmul.f32 %v3714_v49, %v3903_v4 }
 0x16e   : > { %962 = vst.msk [vmem:[#allocation2 + $0x108] sm:$0xff] %vm874_vm0, %v856_v13  ;;  %v857_v57 = vmax.f32 %v825_v15, 0.0  ;;  %v2856_v29 = vadd.f32 %v2855_v24, %v2854_v17  ;;  %v2857_v1 = vpop.f32.mrb[34].mxu0  ;;  %v1657_v30 = vadd.f32 %v1625_v63, %v1556_v19  ;;  %v1826_v31 = vmul.f32 %v3714_v49, %v3909_v51 }
 0x16f   : > { %2769 = vmatmul.mubr.msk.bf16.gmra.mrb[8].mxu1 %vm874_vm0, %v1995_v23  ;;  %v2858_v33 = vpop.f32.mrb[35].mxu0  ;;  %v1658_v2 = vadd.f32 %v1626_v35, %v1557_v28  ;;  %v1026_v53 = vmul.f32 %v3822_v9, %v3644_v10  ;;  %v1027_v38 = vmul.f32 %v3827_v16, %v3644_v10  ;;  %v1126_v41 = vmul.f32 %v3832_v25, %v3649_v14 }
 0x170   : > { %963 = vst.msk [vmem:[#allocation2 + $0x110] sm:$0xff] %vm874_vm0, %v857_v57  ;;  %v787_v43 = vmul.f32 %v2856_v29, %v3635_v5  ;;  %v2859_v45 = vadd.f32 %v2858_v33, %v2857_v1  ;;  %2167 = vmatprep.mubr.bf16.mxu1 %v3151_v61  ;;  %v1757_v46 = vadd.f32 %v1725_v20, %v1657_v30  ;;  %v3954_v57 = vld [vmem:[#allocation2 + $0xcf] sm:$0xff] }
 0x171   : > { %v1127_v40 = vmul.f32 %v3834_v27, %v3649_v14  ;;  %v1758_v54 = vadd.f32 %v1726_v36, %v1658_v2  ;;  %v1158_v56 = vadd.f32 %v1126_v41, %v1026_v53  ;;  %v1226_v9 = vmul.f32 %v3840_v34, %v3658_v26  ;;  %v3961_v2 = vld [vmem:[#allocation2 + $0xc8] sm:$0xff] }
 0x172   : > { %v1227_v16 = vmul.f32 %v3845_v44, %v3658_v26  ;;  %v826_v25 = vadd.f32 %v3640_v8, %v787_v43  ;;  %v788_v52 = vmul.f32 %v2859_v45, %v3635_v5  ;;  %v1857_v39 = vadd.f32 %v1825_v55, %v1757_v46  ;;  %v3952_v55 = vld [vmem:[#allocation2 + $0xc7] sm:$0xff]  ;;  %v3965_v45 = vld [vmem:[#allocation2 + $0xd0] sm:$0xff] }
 0x173   : > { %v1159_v58 = vadd.f32 %v1127_v40, %v1027_v38  ;;  %v1858_v59 = vadd.f32 %v1826_v31, %v1758_v54  ;;  %v1258_v6 = vadd.f32 %v1226_v9, %v1158_v56  ;;  %v1326_v60 = vmul.f32 %v3888_v48, %v3669_v42  ;;  %v3967_v46 = vld [vmem:[#allocation2 + $0xc9] sm:$0xff] }
 0x174   : > { %v1327_v27 = vmul.f32 %v3890_v50, %v3669_v42  ;;  %v858_v7 = vmax.f32 %v826_v25, 0.0  ;;  %v827_v34 = vadd.f32 %v3640_v8, %v788_v52  ;;  %v1896_v12 = vmul.f32 %v3747_v18, %v1857_v39  ;;  %v2860_v44 = vpop.f32.mrb[36].mxu0 }
 0x175   : > { %v1259_v63 = vadd.f32 %v1227_v16, %v1159_v58  ;;  %v1897_v35 = vmul.f32 %v3747_v18, %v1858_v59  ;;  %v2861_v13 = vpop.f32.mrb[37].mxu0  ;;  %v1358_v15 = vadd.f32 %v1326_v60, %v1258_v6  ;;  %v1426_v17 = vmul.f32 %v3897_v37, %v3675_v47  ;;  %v3973_v16 = vld [vmem:[#allocation2 + $0xd1] sm:$0xff] }
 0x176   : > { %v1427_v19 = vmul.f32 %v3901_v62, %v3675_v47  ;;  %964 = vst.msk [vmem:[#allocation2 + $0x128] sm:$0xff] %vm874_vm0, %v858_v7  ;;  %v859_v20 = vmax.f32 %v827_v34, 0.0  ;;  %v1935_v23 = vadd.f32 %v3757_v32, %v1896_v12  ;;  %v2862_v24 = vadd.f32 %v2861_v13, %v2860_v44  ;;  %v2863_v28 = vpop.f32.mrb[38].mxu0 }
 0x177   : > { %v1359_v36 = vadd.f32 %v1327_v27, %v1259_v63  ;;  %v1936_v29 = vadd.f32 %v3757_v32, %v1897_v35  ;;  %v2864_v1 = vpop.f32.mrb[39].mxu0  ;;  %v1458_v30 = vadd.f32 %v1426_v17, %v1358_v15  ;;  %v1526_v31 = vmul.f32 %v3903_v4, %v3685_v11 }
 0x178   : > { %v1527_v33 = vmul.f32 %v3909_v51, %v3685_v11  ;;  %965 = vst.msk [vmem:[#allocation2 + $0x130] sm:$0xff] %vm874_vm0, %v859_v20  ;;  %v1967_v53 = vmax.f32 %v1935_v23, 0.0  ;;  %v789_v38 = vmul.f32 %v2862_v24, %v3635_v5  ;;  %v2865_v41 = vadd.f32 %v2864_v1, %v2863_v28 }
 0x179   : > { %v1459_v43 = vadd.f32 %v1427_v19, %v1359_v36  ;;  %v1968_v40 = vmax.f32 %v1936_v29, 0.0  ;;  %v1558_v54 = vadd.f32 %v1526_v31, %v1458_v30  ;;  %v1627_v56 = vmul.f32 %v3694_v21, %v3952_v55 }
 0x17a   : > { %v1628_v9 = vmul.f32 %v3694_v21, %v3954_v57  ;;  %v828_v25 = vadd.f32 %v3640_v8, %v789_v38  ;;  %v790_v52 = vmul.f32 %v2865_v41, %v3635_v5  ;;  %v1727_v58 = vmul.f32 %v3697_v22, %v3961_v2 }
 0x17b   : > { %v1559_v39 = vadd.f32 %v1527_v33, %v1459_v43  ;;  %v1996_v59 = vpack.c.bf16 %v1968_v40, %v1967_v53  ;;  %v1659_v6 = vadd.f32 %v1627_v56, %v1558_v54  ;;  %v1728_v60 = vmul.f32 %v3697_v22, %v3965_v45 }
 0x17c   : > { %v1827_v27 = vmul.f32 %v3714_v49, %v3967_v46  ;;  %v860_v7 = vmax.f32 %v828_v25, 0.0  ;;  %v829_v34 = vadd.f32 %v3640_v8, %v790_v52  ;;  %v1828_v44 = vmul.f32 %v3714_v49, %v3973_v16  ;;  %v2866_v63 = vpop.f32.mrb[40].mxu0 }
 0x17d   : > { %v1660_v12 = vadd.f32 %v1628_v9, %v1559_v39  ;;  %2770 = vmatmul.mubr.msk.bf16.gmra.mrb[12].mxu1 %vm874_vm0, %v1996_v59  ;;  %v1759_v35 = vadd.f32 %v1727_v58, %v1659_v6  ;;  %v2867_v13 = vpop.f32.mrb[41].mxu0  ;;  %v1028_v15 = vmul.f32 %v3888_v48, %v3644_v10  ;;  %v1029_v17 = vmul.f32 %v3890_v50, %v3644_v10  ;;  %v4016_v39 = vld [vmem:[#allocation2 + $0xe7] sm:$0xff] }
 0x17e   : > { %v1128_v19 = vmul.f32 %v3897_v37, %v3649_v14  ;;  %966 = vst.msk [vmem:[#allocation2 + $0x148] sm:$0xff] %vm874_vm0, %v860_v7  ;;  %v861_v20 = vmax.f32 %v829_v34, 0.0  ;;  %2177 = vmatprep.mubr.bf16.mxu1 %v3151_v61  ;;  %v2868_v24 = vadd.f32 %v2867_v13, %v2866_v63  ;;  %v2869_v28 = vpop.f32.mrb[42].mxu0  ;;  %v1129_v36 = vmul.f32 %v3901_v62, %v3649_v14  ;;  %v4022_v7 = vld [vmem:[#allocation2 + $0xe8] sm:$0xff]  ;;  %v4024_v34 = vld [vmem:[#allocation2 + $0xf0] sm:$0xff] }
 0x17f   : > { %v1760_v23 = vadd.f32 %v1728_v60, %v1660_v12  ;;  %v1859_v29 = vadd.f32 %v1827_v27, %v1759_v35  ;;  %v2870_v1 = vpop.f32.mrb[43].mxu0  ;;  %v1228_v50 = vmul.f32 %v3903_v4, %v3658_v26  ;;  %v1229_v37 = vmul.f32 %v3909_v51, %v3658_v26  ;;  %v4020_v27 = vld [vmem:[#allocation2 + $0xef] sm:$0xff] }
 0x180   : > { %v1160_v48 = vadd.f32 %v1128_v19, %v1028_v15  ;;  %967 = vst.msk [vmem:[#allocation2 + $0x150] sm:$0xff] %vm874_vm0, %v861_v20  ;;  %v791_v31 = vmul.f32 %v2868_v24, %v3635_v5  ;;  %v2871_v33 = vadd.f32 %v2870_v1, %v2869_v28  ;;  %v1161_v53 = vadd.f32 %v1129_v36, %v1029_v17  ;;  %v4030_v15 = vld [vmem:[#allocation2 + $0xe9] sm:$0xff]  ;;  %v4032_v17 = vld [vmem:[#allocation2 + $0xf1] sm:$0xff] }
 0x181   : > { %v1860_v30 = vadd.f32 %v1828_v44, %v1760_v23  ;;  %v1898_v38 = vmul.f32 %v3747_v18, %v1859_v29  ;;  %v1328_v62 = vmul.f32 %v3952_v55, %v3669_v42  ;;  %v1329_v43 = vmul.f32 %v3954_v57, %v3669_v42 }
 0x182   : > { %v1260_v41 = vadd.f32 %v1228_v50, %v1160_v48  ;;  %v830_v51 = vadd.f32 %v3640_v8, %v791_v31  ;;  %v792_v40 = vmul.f32 %v2871_v33, %v3635_v5  ;;  %v1261_v54 = vadd.f32 %v1229_v37, %v1161_v53 }
 0x183   : > { %v1899_v4 = vmul.f32 %v3747_v18, %v1860_v30  ;;  %v1937_v56 = vadd.f32 %v3757_v32, %v1898_v38  ;;  %v1428_v25 = vmul.f32 %v3961_v2, %v3675_v47  ;;  %v1429_v52 = vmul.f32 %v3965_v45, %v3675_v47 }
 0x184   : > { %v1360_v9 = vadd.f32 %v1328_v62, %v1260_v41  ;;  %v862_v59 = vmax.f32 %v830_v51, 0.0  ;;  %v831_v6 = vadd.f32 %v3640_v8, %v792_v40  ;;  %v1361_v60 = vadd.f32 %v1329_v43, %v1261_v54  ;;  %v2872_v12 = vpop.f32.mrb[44].mxu0 }
 0x185   : > { %v1938_v58 = vadd.f32 %v3757_v32, %v1899_v4  ;;  %v1969_v44 = vmax.f32 %v1937_v56, 0.0  ;;  %v1528_v35 = vmul.f32 %v3967_v46, %v3685_v11  ;;  %v1529_v13 = vmul.f32 %v3973_v16, %v3685_v11  ;;  %v2873_v19 = vpop.f32.mrb[45].mxu0 }
 0x186   : > { %v1460_v63 = vadd.f32 %v1428_v25, %v1360_v9  ;;  %968 = vst.msk [vmem:[#allocation2 + $0x168] sm:$0xff] %vm874_vm0, %v862_v59  ;;  %v863_v23 = vmax.f32 %v831_v6, 0.0  ;;  %v1461_v24 = vadd.f32 %v1429_v52, %v1361_v60  ;;  %v1629_v28 = vmul.f32 %v3694_v21, %v4016_v39  ;;  %v2875_v36 = vpop.f32.mrb[46].mxu0 }
 0x187   : > { %v1970_v20 = vmax.f32 %v1938_v58, 0.0  ;;  %v1630_v1 = vmul.f32 %v3694_v21, %v4020_v27  ;;  %v1729_v48 = vmul.f32 %v3697_v22, %v4022_v7  ;;  %v1730_v50 = vmul.f32 %v3697_v22, %v4024_v34  ;;  %v2876_v37 = vpop.f32.mrb[47].mxu0 }
 0x188   : > { %v1560_v29 = vadd.f32 %v1528_v35, %v1460_v63  ;;  %969 = vst.msk [vmem:[#allocation2 + $0x170] sm:$0xff] %vm874_vm0, %v863_v23  ;;  %v1561_v31 = vadd.f32 %v1529_v13, %v1461_v24  ;;  %v1829_v33 = vmul.f32 %v3714_v49, %v4030_v15  ;;  %v1830_v53 = vmul.f32 %v3714_v49, %v4032_v17  ;;  %v4070_v13 = vld [vmem:[#allocation2 + $0x107] sm:$0xff]  ;;  %v4075_v24 = vld [vmem:[#allocation2 + $0x10f] sm:$0xff] }
 0x189   : > { %v1997_v30 = vpack.c.bf16 %v1970_v20, %v1969_v44  ;;  %v2874_v41 = vadd.f32 %v2873_v19, %v2872_v12  ;;  %v2877_v62 = vadd.f32 %v2876_v37, %v2875_v36  ;;  %v1030_v43 = vmul.f32 %v3952_v55, %v3644_v10  ;;  %v4082_v37 = vld [vmem:[#allocation2 + $0x110] sm:$0xff] }
 0x18a   : > { %v1661_v38 = vadd.f32 %v1629_v28, %v1560_v29  ;;  %v1662_v4 = vadd.f32 %v1630_v1, %v1561_v31  ;;  %v1031_v51 = vmul.f32 %v3954_v57, %v3644_v10  ;;  %v1130_v40 = vmul.f32 %v3961_v2, %v3649_v14 }
 0x18b   : > { %2771 = vmatmul.mubr.msk.bf16.gmra.mrb[16].mxu1 %vm874_vm0, %v1997_v30  ;;  %v1131_v54 = vmul.f32 %v3965_v45, %v3649_v14  ;;  %v793_v9 = vmul.f32 %v2874_v41, %v3635_v5  ;;  %v794_v25 = vmul.f32 %v2877_v62, %v3635_v5  ;;  %v1230_v55 = vmul.f32 %v3967_v46, %v3658_v26  ;;  %v4084_v30 = vld [vmem:[#allocation2 + $0x109] sm:$0xff]  ;;  %v4095_v41 = vld [vmem:[#allocation2 + $0x111] sm:$0xff] }
 0x18c   : > { %2187 = vmatprep.mubr.bf16.mxu1 %v3151_v61  ;;  %v1761_v56 = vadd.f32 %v1729_v48, %v1661_v38  ;;  %v1762_v52 = vadd.f32 %v1730_v50, %v1662_v4  ;;  %v1162_v58 = vadd.f32 %v1130_v40, %v1030_v43  ;;  %v1231_v57 = vmul.f32 %v3973_v16, %v3658_v26  ;;  %v2878_v2 = vpop.f32.mrb[48].mxu0  ;;  %v4080_v50 = vld [vmem:[#allocation2 + $0x108] sm:$0xff] }
 0x18d   : > { %v1163_v59 = vadd.f32 %v1131_v54, %v1031_v51  ;;  %v832_v45 = vadd.f32 %v3640_v8, %v793_v9  ;;  %v833_v60 = vadd.f32 %v3640_v8, %v794_v25  ;;  %v1330_v12 = vmul.f32 %v4016_v39, %v3669_v42  ;;  %v2879_v44 = vpop.f32.mrb[49].mxu0 }
 0x18e   : > { %v1861_v6 = vadd.f32 %v1829_v33, %v1761_v56  ;;  %v1862_v5 = vadd.f32 %v1830_v53, %v1762_v52  ;;  %v1262_v63 = vadd.f32 %v1230_v55, %v1162_v58  ;;  %v1331_v46 = vmul.f32 %v4020_v27, %v3669_v42  ;;  %v2881_v19 = vpop.f32.mrb[50].mxu0 }
 0x18f   : > { %v1263_v35 = vadd.f32 %v1231_v57, %v1163_v59  ;;  %v864_v20 = vmax.f32 %v832_v45, 0.0  ;;  %v865_v23 = vmax.f32 %v833_v60, 0.0  ;;  %v1430_v8 = vmul.f32 %v4022_v7, %v3675_v47  ;;  %v2882_v28 = vpop.f32.mrb[51].mxu0 }
 0x190   : > { %v1900_v16 = vmul.f32 %v3747_v18, %v1861_v6  ;;  %v1901_v36 = vmul.f32 %v3747_v18, %v1862_v5  ;;  %v1362_v29 = vadd.f32 %v1330_v12, %v1262_v63  ;;  %v1431_v48 = vmul.f32 %v4024_v34, %v3675_v47 }
 0x191   : > { %v1363_v1 = vadd.f32 %v1331_v46, %v1263_v35  ;;  %970 = vst.msk [vmem:[#allocation2 + $0x188] sm:$0xff] %vm874_vm0, %v864_v20  ;;  %971 = vst.msk [vmem:[#allocation2 + $0x190] sm:$0xff] %vm874_vm0, %v865_v23  ;;  %v1530_v33 = vmul.f32 %v4030_v15, %v3685_v11  ;;  %v1531_v53 = vmul.f32 %v4032_v17, %v3685_v11 }
 0x192   : > { %v1939_v31 = vadd.f32 %v3757_v32, %v1900_v16  ;;  %v1631_v38 = vmul.f32 %v3694_v21, %v4070_v13  ;;  %v1940_v62 = vadd.f32 %v3757_v32, %v1901_v36  ;;  %v1462_v43 = vadd.f32 %v1430_v8, %v1362_v29  ;;  %v4136_v36 = vld [vmem:[%s4967_s5] ss:$0 sm:$0xff] }
 0x193   : > { %v1463_v4 = vadd.f32 %v1431_v48, %v1363_v1  ;;  %v1632_v51 = vmul.f32 %v3694_v21, %v4075_v24  ;;  %v1731_v54 = vmul.f32 %v3697_v22, %v4080_v50  ;;  %v1732_v56 = vmul.f32 %v3697_v22, %v4082_v37 }
 0x194   : > { %v1971_v40 = vmax.f32 %v1939_v31, 0.0  ;;  %v1831_v9 = vmul.f32 %v3714_v49, %v4084_v30  ;;  %v1972_v25 = vmax.f32 %v1940_v62, 0.0  ;;  %v1562_v55 = vadd.f32 %v1530_v33, %v1462_v43  ;;  %v4108_v59 = vpop.f32.mrb[52].mxu0 }
 0x195   : > { %v1563_v52 = vadd.f32 %v1531_v53, %v1463_v4  ;;  %v1832_v58 = vmul.f32 %v3714_v49, %v4095_v41  ;;  %v2880_v57 = vadd.f32 %v2879_v44, %v2878_v2  ;;  %v2883_v6 = vadd.f32 %v2882_v28, %v2881_v19  ;;  %v4114_v12 = vpop.f32.mrb[53].mxu0  ;;  %v4121_v2 = vld [vmem:[%s4966_s4] ss:$0 sm:$0xff]  ;;  %v4144_v53 = vld [vmem:[#allocation2 + $0x127] sm:$0xff] }
 0x196   : > { %v1032_v45 = vmul.f32 %v4016_v39, %v3644_v10  ;;  %v1033_v60 = vmul.f32 %v4020_v27, %v3644_v10  ;;  %v1998_v5 = vpack.c.bf16 %v1972_v25, %v1971_v40  ;;  %v1663_v63 = vadd.f32 %v1631_v38, %v1562_v55  ;;  %v2887_v16 = vpop.f32.mrb[54].mxu0  ;;  %v4154_v25 = vld [vmem:[#allocation2 + $0x128] sm:$0xff]  ;;  %v4156_v55 = vld [vmem:[#allocation2 + $0x130] sm:$0xff] }
 0x197   : > { %v1664_v35 = vadd.f32 %v1632_v51, %v1563_v52  ;;  %v1132_v46 = vmul.f32 %v4022_v7, %v3649_v14  ;;  %v795_v44 = vmul.f32 %v4121_v2, %v2880_v57  ;;  %v796_v39 = vmul.f32 %v4121_v2, %v2883_v6  ;;  %v2888_v20 = vpop.f32.mrb[55].mxu0  ;;  %v4148_v51 = vld [vmem:[#allocation2 + $0x12f] sm:$0xff] }
 0x198   : > { %v1133_v27 = vmul.f32 %v4024_v34, %v3649_v14  ;;  %v1232_v19 = vmul.f32 %v4030_v15, %v3658_v26  ;;  %2772 = vmatmul.mubr.msk.bf16.gmra.mrb[20].mxu1 %vm874_vm0, %v1998_v5  ;;  %v1763_v7 = vadd.f32 %v1731_v54, %v1663_v63  ;;  %v1233_v28 = vmul.f32 %v4032_v17, %v3658_v26  ;;  %v4158_v52 = vld [vmem:[#allocation2 + $0x129] sm:$0xff]  ;;  %v4170_v5 = vld [vmem:[#allocation2 + $0x131] sm:$0xff] }
 0x199   : > { %v1764_v23 = vadd.f32 %v1732_v56, %v1664_v35  ;;  %v1164_v8 = vadd.f32 %v1132_v46, %v1032_v45  ;;  %2197 = vmatprep.mubr.bf16.mxu1 %v3151_v61  ;;  %v834_v34 = vadd.f32 %v4136_v36, %v795_v44  ;;  %v835_v15 = vadd.f32 %v4136_v36, %v796_v39 }
 0x19a   : > { %v1165_v29 = vadd.f32 %v1133_v27, %v1033_v60  ;;  %v1332_v1 = vmul.f32 %v4070_v13, %v3669_v42  ;;  %v1863_v48 = vadd.f32 %v1831_v9, %v1763_v7  ;;  %v1333_v17 = vmul.f32 %v4075_v24, %v3669_v42 }
 0x19b   : > { %v1864_v31 = vadd.f32 %v1832_v58, %v1764_v23  ;;  %v1264_v33 = vadd.f32 %v1232_v19, %v1164_v8  ;;  %v866_v38 = vmax.f32 %v834_v34, 0.0  ;;  %v867_v62 = vmax.f32 %v835_v15, 0.0 }
 0x19c   : > { %v1265_v43 = vadd.f32 %v1233_v28, %v1165_v29  ;;  %v1432_v4 = vmul.f32 %v4080_v50, %v3675_v47  ;;  %v1902_v40 = vmul.f32 %v3747_v18, %v1863_v48  ;;  %v1433_v9 = vmul.f32 %v4082_v37, %v3675_v47  ;;  %v4160_v58 = vpop.f32.mrb[56].mxu0 }
 0x19d   : > { %v1903_v54 = vmul.f32 %v3747_v18, %v1864_v31  ;;  %v1364_v56 = vadd.f32 %v1332_v1, %v1264_v33  ;;  %972 = vst.msk [vmem:[#allocation2 + $0x1a8] sm:$0xff] %vm874_vm0, %v866_v38  ;;  %973 = vst.msk [vmem:[#allocation2 + $0x1b0] sm:$0xff] %vm874_vm0, %v867_v62  ;;  %v1532_v6 = vmul.f32 %v4084_v30, %v3685_v11  ;;  %v4172_v63 = vpop.f32.mrb[57].mxu0 }
 0x19e   : > { %v1365_v57 = vadd.f32 %v1333_v17, %v1265_v43  ;;  %v1533_v45 = vmul.f32 %v4095_v41, %v3685_v11  ;;  %v1633_v60 = vmul.f32 %v3694_v21, %v4144_v53  ;;  %v1941_v35 = vadd.f32 %v3757_v32, %v1902_v40  ;;  %v4178_v27 = vpop.f32.mrb[58].mxu0 }
 0x19f   : > { %v1942_v46 = vadd.f32 %v3757_v32, %v1903_v54  ;;  %v1464_v44 = vadd.f32 %v1432_v4, %v1364_v56  ;;  %v1634_v39 = vmul.f32 %v3694_v21, %v4148_v51  ;;  %v1733_v7 = vmul.f32 %v3697_v22, %v4154_v25  ;;  %v4186_v28 = vpop.f32.mrb[59].mxu0 }
 0x1a0   : > { %v1465_v19 = vadd.f32 %v1433_v9, %v1365_v57  ;;  %v1734_v23 = vmul.f32 %v3697_v22, %v4156_v55  ;;  %v1833_v8 = vmul.f32 %v3714_v49, %v4158_v52  ;;  %v1973_v34 = vmax.f32 %v1941_v35, 0.0 }
 0x1a1   : > { %v1974_v15 = vmax.f32 %v1942_v46, 0.0  ;;  %v1564_v29 = vadd.f32 %v1532_v6, %v1464_v44  ;;  %v1834_v1 = vmul.f32 %v3714_v49, %v4170_v5  ;;  %v2886_v31 = vadd.f32 %v4114_v12, %v4108_v59 }
 0x1a2   : > { %v1565_v48 = vadd.f32 %v1533_v45, %v1465_v19  ;;  %v2889_v33 = vadd.f32 %v2888_v20, %v2887_v16  ;;  %v1034_v17 = vmul.f32 %v4070_v13, %v3644_v10  ;;  %v1035_v43 = vmul.f32 %v4075_v24, %v3644_v10  ;;  %v4220_v19 = vld [vmem:[#allocation2 + $0x147] sm:$0xff] }
 0x1a3   : > { %v1999_v38 = vpack.c.bf16 %v1974_v15, %v1973_v34  ;;  %v1665_v62 = vadd.f32 %v1633_v60, %v1564_v29  ;;  %v1134_v4 = vmul.f32 %v4080_v50, %v3649_v14  ;;  %v797_v54 = vmul.f32 %v4121_v2, %v2886_v31 }
 0x1a4   : > { %v1666_v40 = vadd.f32 %v1634_v39, %v1565_v48  ;;  %v798_v49 = vmul.f32 %v4121_v2, %v2889_v33  ;;  %v1135_v59 = vmul.f32 %v4082_v37, %v3649_v14  ;;  %v1234_v16 = vmul.f32 %v4084_v30, %v3658_v26  ;;  %v4207_v20 = vpop.f32.mrb[60].mxu0  ;;  %v4231_v48 = vld [vmem:[#allocation2 + $0x148] sm:$0xff] }
 0x1a5   : > { %2773 = vmatmul.mubr.msk.bf16.gmra.mrb[24].mxu1 %vm874_vm0, %v1999_v38  ;;  %v1765_v12 = vadd.f32 %v1733_v7, %v1665_v62  ;;  %v1166_v13 = vadd.f32 %v1134_v4, %v1034_v17  ;;  %v1235_v24 = vmul.f32 %v4095_v41, %v3658_v26  ;;  %v836_v56 = vadd.f32 %v4136_v36, %v797_v54  ;;  %v4212_v57 = vpop.f32.mrb[61].mxu0  ;;  %v4222_v7 = vld [vmem:[#allocation2 + $0x14f] sm:$0xff] }
 0x1a6   : > { %2207 = vmatprep.mubr.bf16.mxu1 %v3151_v61  ;;  %v1766_v50 = vadd.f32 %v1734_v23, %v1666_v40  ;;  %v837_v9 = vadd.f32 %v4136_v36, %v798_v49  ;;  %v1167_v37 = vadd.f32 %v1135_v59, %v1035_v43  ;;  %v1334_v30 = vmul.f32 %v4144_v53, %v3669_v42  ;;  %v4218_v60 = vpop.f32.mrb[62].mxu0  ;;  %v4242_v62 = vld [vmem:[#allocation2 + $0x149] sm:$0xff]  ;;  %v4244_v43 = vld [vmem:[#allocation2 + $0x151] sm:$0xff] }
 0x1a7   : > { %v1865_v6 = vadd.f32 %v1833_v8, %v1765_v12  ;;  %v1266_v45 = vadd.f32 %v1234_v16, %v1166_v13  ;;  %v1335_v41 = vmul.f32 %v4148_v51, %v3669_v42  ;;  %v868_v46 = vmax.f32 %v836_v56, 0.0  ;;  %v4224_v23 = vpop.f32.mrb[63].mxu0 }
 0x1a8   : > { %v1866_v35 = vadd.f32 %v1834_v1, %v1766_v50  ;;  %v869_v44 = vmax.f32 %v837_v9, 0.0  ;;  %v1267_v39 = vadd.f32 %v1235_v24, %v1167_v37  ;;  %v1434_v15 = vmul.f32 %v4154_v25, %v3675_v47  ;;  %v4233_v1 = vld [vmem:[#allocation2 + $0x150] sm:$0xff]  ;;  %v4259_v50 = vld [vmem:[%s4964_s2 + $0x8] ss:$0 sm:$0xff] }
 0x1a9   : > { %v1904_v8 = vmul.f32 %v3747_v18, %v1865_v6  ;;  %v1366_v34 = vadd.f32 %v1334_v30, %v1266_v45  ;;  %v1435_v29 = vmul.f32 %v4156_v55, %v3675_v47  ;;  %974 = vst.msk [vmem:[#allocation2 + $0x1c8] sm:$0xff] %vm874_vm0, %v868_v46  ;;  %v1534_v17 = vmul.f32 %v4158_v52, %v3685_v11 }
 0x1aa   : > { %v1905_v31 = vmul.f32 %v3747_v18, %v1866_v35  ;;  %975 = vst.msk [vmem:[#allocation2 + $0x1d0] sm:$0xff] %vm874_vm0, %v869_v44  ;;  %v1367_v33 = vadd.f32 %v1335_v41, %v1267_v39  ;;  %v1535_v38 = vmul.f32 %v4170_v5, %v3685_v11  ;;  %v1635_v18 = vmul.f32 %v3694_v21, %v4220_v19 }
 0x1ab   : > { %v1943_v4 = vadd.f32 %v3757_v32, %v1904_v8  ;;  %v1466_v40 = vadd.f32 %v1434_v15, %v1366_v34  ;;  %v1636_v54 = vmul.f32 %v3694_v21, %v4222_v7  ;;  %v1735_v12 = vmul.f32 %v3697_v22, %v4231_v48 }
 0x1ac   : > { %v1944_v49 = vadd.f32 %v3757_v32, %v1905_v31  ;;  %v1467_v59 = vadd.f32 %v1435_v29, %v1367_v33  ;;  %v1736_v13 = vmul.f32 %v3697_v22, %v4233_v1  ;;  %v1835_v56 = vmul.f32 %v4259_v50, %v4242_v62 }
 0x1ad   : > { %v1975_v16 = vmax.f32 %v1943_v4, 0.0  ;;  %v1566_v24 = vadd.f32 %v1534_v17, %v1466_v40  ;;  %v1836_v32 = vmul.f32 %v4259_v50, %v4244_v43  ;;  %v2892_v6 = vadd.f32 %v4172_v63, %v4160_v58  ;;  %v4291_v40 = vld [vmem:[#allocation2 + $0x167] sm:$0xff] }
 0x1ae   : > { %v1976_v9 = vmax.f32 %v1944_v49, 0.0  ;;  %v1567_v37 = vadd.f32 %v1535_v38, %v1467_v59  ;;  %v2895_v45 = vadd.f32 %v4186_v28, %v4178_v27  ;;  %v1036_v41 = vmul.f32 %v4144_v53, %v3644_v10 }
 0x1af   : > { %v1667_v30 = vadd.f32 %v1635_v18, %v1566_v24  ;;  %v1037_v35 = vmul.f32 %v4148_v51, %v3644_v10  ;;  %v1136_v46 = vmul.f32 %v4154_v25, %v3649_v14  ;;  %v799_v8 = vmul.f32 %v4121_v2, %v2892_v6  ;;  %v4321_v6 = vld [vmem:[%s4969_s7] ss:$0 sm:$0xff] }
 0x1b0   : > { %v2000_v44 = vpack.c.bf16 %v1976_v9, %v1975_v16  ;;  %v1668_v39 = vadd.f32 %v1636_v54, %v1567_v37  ;;  %v800_v34 = vmul.f32 %v4121_v2, %v2895_v45  ;;  %v1137_v63 = vmul.f32 %v4156_v55, %v3649_v14  ;;  %v4305_v16 = vld [vmem:[#allocation2 + $0x170] sm:$0xff] }
 0x1b1   : > { %v1767_v58 = vadd.f32 %v1735_v12, %v1667_v30  ;;  %v1168_v27 = vadd.f32 %v1136_v46, %v1036_v41  ;;  %v1236_v53 = vmul.f32 %v4158_v52, %v3658_v26  ;;  %v838_v28 = vadd.f32 %v4136_v36, %v799_v8  ;;  %v4301_v12 = vld [vmem:[#allocation2 + $0x16f] sm:$0xff] }
 0x1b2   : > { %2774 = vmatmul.mubr.msk.bf16.gmra.mrb[28].mxu1 %vm874_vm0, %v2000_v44  ;;  %v1768_v51 = vadd.f32 %v1736_v13, %v1668_v39  ;;  %v839_v25 = vadd.f32 %v4136_v36, %v800_v34  ;;  %v1237_v15 = vmul.f32 %v4170_v5, %v3658_v26  ;;  %v1169_v31 = vadd.f32 %v1137_v63, %v1037_v35  ;;  %v4296_v5 = vld [vmem:[%s4968_s6] ss:$0 sm:$0xff]  ;;  %v4303_v13 = vld [vmem:[#allocation2 + $0x168] sm:$0xff]  ;;  %v4326_v46 = vld [vmem:[#allocation2 + $0x171] sm:$0xff] }
 0x1b3   : > { %2217 = vmatprep.mubr.bf16.mxu1 %v3151_v61  ;;  %v1867_v29 = vadd.f32 %v1835_v56, %v1767_v58  ;;  %v1268_v33 = vadd.f32 %v1236_v53, %v1168_v27  ;;  %v1336_v55 = vmul.f32 %v4220_v19, %v3669_v42  ;;  %v870_v52 = vmax.f32 %v838_v28, 0.0  ;;  %v4316_v37 = vld [vmem:[#allocation2 + $0x169] sm:$0xff] }
 0x1b4   : > { %v1868_v17 = vadd.f32 %v1836_v32, %v1768_v51  ;;  %v871_v38 = vmax.f32 %v839_v25, 0.0  ;;  %v1337_v4 = vmul.f32 %v4222_v7, %v3669_v42  ;;  %v1269_v54 = vadd.f32 %v1237_v15, %v1169_v31 }
 0x1b5   : > { %v1906_v18 = vmul.f32 %v4296_v5, %v1867_v29  ;;  %v1368_v49 = vadd.f32 %v1336_v55, %v1268_v33  ;;  %v1436_v59 = vmul.f32 %v4231_v48, %v3675_v47  ;;  %976 = vst.msk [vmem:[#allocation2 + $0x1e8] sm:$0xff] %vm874_vm0, %v870_v52  ;;  %v1437_v56 = vmul.f32 %v4233_v1, %v3675_v47 }
 0x1b6   : > { %v1907_v24 = vmul.f32 %v4296_v5, %v1868_v17  ;;  %977 = vst.msk [vmem:[#allocation2 + $0x1f0] sm:$0xff] %vm874_vm0, %v871_v38  ;;  %v1536_v32 = vmul.f32 %v4242_v62, %v3685_v11  ;;  %v1537_v9 = vmul.f32 %v4244_v43, %v3685_v11  ;;  %v1369_v30 = vadd.f32 %v1337_v4, %v1269_v54 }
 0x1b7   : > { %v1945_v45 = vadd.f32 %v4321_v6, %v1906_v18  ;;  %v1468_v41 = vadd.f32 %v1436_v59, %v1368_v49  ;;  %v1637_v35 = vmul.f32 %v3694_v21, %v4291_v40  ;;  %v1638_v39 = vmul.f32 %v3694_v21, %v4301_v12 }
 0x1b8   : > { %v1946_v44 = vadd.f32 %v4321_v6, %v1907_v24  ;;  %v1737_v8 = vmul.f32 %v3697_v22, %v4303_v13  ;;  %v1738_v34 = vmul.f32 %v3697_v22, %v4305_v16  ;;  %v1469_v63 = vadd.f32 %v1437_v56, %v1369_v30  ;;  %v4370_v30 = vld [vmem:[#allocation2 + $0x18f] sm:$0xff] }
 0x1b9   : > { %v1977_v58 = vmax.f32 %v1945_v45, 0.0  ;;  %v1568_v27 = vadd.f32 %v1536_v32, %v1468_v41  ;;  %v1837_v53 = vmul.f32 %v4259_v50, %v4316_v37  ;;  %v1838_v28 = vmul.f32 %v4259_v50, %v4326_v46  ;;  %v4365_v32 = vld [vmem:[#allocation2 + $0x187] sm:$0xff] }
 0x1ba   : > { %v1978_v51 = vmax.f32 %v1946_v44, 0.0  ;;  %v2898_v25 = vadd.f32 %v4212_v57, %v4207_v20  ;;  %v2901_v15 = vadd.f32 %v4224_v23, %v4218_v60  ;;  %v1569_v29 = vadd.f32 %v1537_v9, %v1469_v63  ;;  %v4372_v41 = vld [vmem:[#allocation2 + $0x188] sm:$0xff] }
 0x1bb   : > { %v1669_v31 = vadd.f32 %v1637_v35, %v1568_v27  ;;  %v1038_v33 = vmul.f32 %v4220_v19, %v3644_v10  ;;  %v1039_v55 = vmul.f32 %v4222_v7, %v3644_v10  ;;  %v1138_v4 = vmul.f32 %v4231_v48, %v3649_v14  ;;  %v4374_v35 = vld [vmem:[#allocation2 + $0x190] sm:$0xff] }
 0x1bc   : > { %v2001_v17 = vpack.c.bf16 %v1978_v51, %v1977_v58  ;;  %v801_v52 = vmul.f32 %v4121_v2, %v2898_v25  ;;  %v802_v38 = vmul.f32 %v4121_v2, %v2901_v15  ;;  %v1670_v20 = vadd.f32 %v1638_v39, %v1569_v29  ;;  %v4384_v58 = vld [vmem:[#allocation2 + $0x189] sm:$0xff] }
 0x1bd   : > { %v1769_v57 = vadd.f32 %v1737_v8, %v1669_v31  ;;  %v1139_v60 = vmul.f32 %v4233_v1, %v3649_v14  ;;  %v1238_v23 = vmul.f32 %v4242_v62, %v3658_v26  ;;  %v1170_v18 = vadd.f32 %v1138_v4, %v1038_v33 }
 0x1be   : > { %2775 = vmatmul.mubr.msk.bf16.gmra.mrb[32].mxu1 %vm874_vm0, %v2001_v17  ;;  %v840_v19 = vadd.f32 %v4136_v36, %v801_v52  ;;  %v841_v7 = vadd.f32 %v4136_v36, %v802_v38  ;;  %v1239_v2 = vmul.f32 %v4244_v43, %v3658_v26  ;;  %v1770_v48 = vadd.f32 %v1738_v34, %v1670_v20 }
 0x1bf   : > { %2227 = vmatprep.mubr.bf16.mxu1 %v3151_v61  ;;  %v1869_v54 = vadd.f32 %v1837_v53, %v1769_v57  ;;  %v1171_v49 = vadd.f32 %v1139_v60, %v1039_v55  ;;  %v1338_v1 = vmul.f32 %v4291_v40, %v3669_v42  ;;  %v1270_v24 = vadd.f32 %v1238_v23, %v1170_v18 }
 0x1c0   : > { %v872_v59 = vmax.f32 %v840_v19, 0.0  ;;  %v873_v62 = vmax.f32 %v841_v7, 0.0  ;;  %v1339_v56 = vmul.f32 %v4301_v12, %v3669_v42  ;;  %v1870_v36 = vadd.f32 %v1838_v28, %v1770_v48  ;;  %v4390_v28 = vld [vmem:[#allocation2 + $0x191] sm:$0xff] }
 0x1c1   : > { %v1908_v9 = vmul.f32 %v4296_v5, %v1869_v54  ;;  %v1271_v43 = vadd.f32 %v1239_v2, %v1171_v49  ;;  %v1438_v45 = vmul.f32 %v4303_v13, %v3675_v47  ;;  %v1370_v44 = vadd.f32 %v1338_v1, %v1270_v24  ;;  %v4427_v24 = vld [vmem:[#allocation2 + $0x1a8] sm:$0xff] }
 0x1c2   : > { %978 = vst.msk [vmem:[#allocation2 + $0x208] sm:$0xff] %vm874_vm0, %v872_v59  ;;  %979 = vst.msk [vmem:[#allocation2 + $0x210] sm:$0xff] %vm874_vm0, %v873_v62  ;;  %v1439_v39 = vmul.f32 %v4305_v16, %v3675_v47  ;;  %v1538_v8 = vmul.f32 %v4316_v37, %v3685_v11  ;;  %v1539_v34 = vmul.f32 %v4326_v46, %v3685_v11  ;;  %v4417_v59 = vld [vmem:[#allocation2 + $0x1a7] sm:$0xff] }
 0x1c3   : > { %v1909_v63 = vmul.f32 %v4296_v5, %v1870_v36  ;;  %v1947_v27 = vadd.f32 %v4321_v6, %v1908_v9  ;;  %v1371_v53 = vadd.f32 %v1339_v56, %v1271_v43  ;;  %v1639_v51 = vmul.f32 %v3694_v21, %v4365_v32 }
 0x1c4   : > { %v1470_v25 = vadd.f32 %v1438_v45, %v1370_v44  ;;  %v1640_v15 = vmul.f32 %v3694_v21, %v4370_v30  ;;  %v1739_v29 = vmul.f32 %v3697_v22, %v4372_v41  ;;  %v1740_v31 = vmul.f32 %v3697_v22, %v4374_v35  ;;  %v4432_v45 = vld [vmem:[#allocation2 + $0x1b0] sm:$0xff] }
 0x1c5   : > { %v1948_v33 = vadd.f32 %v4321_v6, %v1909_v63  ;;  %v1979_v55 = vmax.f32 %v1947_v27, 0.0  ;;  %v1471_v17 = vadd.f32 %v1439_v39, %v1371_v53  ;;  %v1839_v52 = vmul.f32 %v4259_v50, %v4384_v58  ;;  %v4434_v44 = vld [vmem:[#allocation2 + $0x1a9] sm:$0xff]  ;;  %v4436_v39 = vld [vmem:[#allocation2 + $0x1b1] sm:$0xff] }
 0x1c6   : > { %v1570_v38 = vadd.f32 %v1538_v8, %v1470_v25  ;;  %v1840_v4 = vmul.f32 %v4259_v50, %v4390_v28  ;;  %v1040_v20 = vmul.f32 %v4291_v40, %v3644_v10  ;;  %v1041_v57 = vmul.f32 %v4301_v12, %v3644_v10 }
 0x1c7   : > { %v1980_v60 = vmax.f32 %v1948_v33, 0.0  ;;  %v1571_v23 = vadd.f32 %v1539_v34, %v1471_v17  ;;  %v1140_v19 = vmul.f32 %v4303_v13, %v3649_v14  ;;  %v1141_v7 = vmul.f32 %v4305_v16, %v3649_v14  ;;  %v4419_v13 = vld [vmem:[#allocation2 + $0x1af] sm:$0xff] }
 0x1c8   : > { %v1671_v18 = vadd.f32 %v1639_v51, %v1570_v38  ;;  %v1240_v2 = vmul.f32 %v4316_v37, %v3658_v26  ;;  %v1241_v48 = vmul.f32 %v4326_v46, %v3658_v26  ;;  %v1340_v40 = vmul.f32 %v4365_v32, %v3669_v42 }
 0x1c9   : > { %v2002_v54 = vpack.c.bf16 %v1980_v60, %v1979_v55  ;;  %v1672_v12 = vadd.f32 %v1640_v15, %v1571_v23  ;;  %v1172_v49 = vadd.f32 %v1140_v19, %v1040_v20  ;;  %v1173_v1 = vadd.f32 %v1141_v7, %v1041_v57 }
 0x1ca   : > { %v1771_v62 = vadd.f32 %v1739_v29, %v1671_v18  ;;  %v1341_v16 = vmul.f32 %v4370_v30, %v3669_v42  ;;  %v1440_v37 = vmul.f32 %v4372_v41, %v3675_v47  ;;  %v1441_v46 = vmul.f32 %v4374_v35, %v3675_v47 }
 0x1cb   : > { %2776 = vmatmul.mubr.msk.bf16.gmra.mrb[36].mxu1 %vm874_vm0, %v2002_v54  ;;  %v1772_v56 = vadd.f32 %v1740_v31, %v1672_v12  ;;  %v1272_v36 = vadd.f32 %v1240_v2, %v1172_v49  ;;  %v1273_v9 = vadd.f32 %v1241_v48, %v1173_v1  ;;  %v1540_v43 = vmul.f32 %v4384_v58, %v3685_v11 }
 0x1cc   : > { %2237 = vmatprep.mubr.bf16.mxu1 %v3151_v61  ;;  %v1871_v8 = vadd.f32 %v1839_v52, %v1771_v62  ;;  %v1541_v34 = vmul.f32 %v4390_v28, %v3685_v11  ;;  %v1641_v63 = vmul.f32 %v3694_v21, %v4417_v59  ;;  %v1642_v27 = vmul.f32 %v3694_v21, %v4419_v13 }
 0x1cd   : > { %v1872_v53 = vadd.f32 %v1840_v4, %v1772_v56  ;;  %v1372_v51 = vadd.f32 %v1340_v40, %v1272_v36  ;;  %v1373_v25 = vadd.f32 %v1341_v16, %v1273_v9  ;;  %v1741_v15 = vmul.f32 %v3697_v22, %v4427_v24  ;;  %v4475_v16 = vld [vmem:[#allocation2 + $0x1c7] sm:$0xff] }
 0x1ce   : > { %v1910_v29 = vmul.f32 %v4296_v5, %v1871_v8  ;;  %v1742_v31 = vmul.f32 %v3697_v22, %v4432_v45  ;;  %v1841_v33 = vmul.f32 %v4259_v50, %v4434_v44  ;;  %v1842_v55 = vmul.f32 %v4259_v50, %v4436_v39  ;;  %v4481_v9 = vld [vmem:[#allocation2 + $0x1c8] sm:$0xff] }
 0x1cf   : > { %v1911_v17 = vmul.f32 %v4296_v5, %v1872_v53  ;;  %v1472_v52 = vadd.f32 %v1440_v37, %v1372_v51  ;;  %v1473_v38 = vadd.f32 %v1441_v46, %v1373_v25  ;;  %v1042_v4 = vmul.f32 %v4365_v32, %v3644_v10  ;;  %v4477_v37 = vld [vmem:[#allocation2 + $0x1cf] sm:$0xff] }
 0x1d0   : > { %v1949_v20 = vadd.f32 %v4321_v6, %v1910_v29  ;;  %v1043_v57 = vmul.f32 %v4370_v30, %v3644_v10  ;;  %v1142_v60 = vmul.f32 %v4372_v41, %v3649_v14  ;;  %v1143_v23 = vmul.f32 %v4374_v35, %v3649_v14  ;;  %v4489_v53 = vld [vmem:[#allocation2 + $0x1c9] sm:$0xff]  ;;  %v4491_v51 = vld [vmem:[#allocation2 + $0x1d1] sm:$0xff] }
 0x1d1   : > { %v1950_v19 = vadd.f32 %v4321_v6, %v1911_v17  ;;  %v1572_v7 = vadd.f32 %v1540_v43, %v1472_v52  ;;  %v1573_v18 = vadd.f32 %v1541_v34, %v1473_v38  ;;  %v1242_v2 = vmul.f32 %v4384_v58, %v3658_v26  ;;  %v4483_v43 = vld [vmem:[#allocation2 + $0x1d0] sm:$0xff] }
 0x1d2   : > { %v1981_v48 = vmax.f32 %v1949_v20, 0.0  ;;  %v1174_v32 = vadd.f32 %v1142_v60, %v1042_v4  ;;  %v1175_v40 = vadd.f32 %v1143_v23, %v1043_v57  ;;  %v1243_v54 = vmul.f32 %v4390_v28, %v3658_v26 }
 0x1d3   : > { %v1982_v30 = vmax.f32 %v1950_v19, 0.0  ;;  %v1673_v12 = vadd.f32 %v1641_v63, %v1572_v7  ;;  %v1674_v49 = vadd.f32 %v1642_v27, %v1573_v18  ;;  %v1342_v41 = vmul.f32 %v4417_v59, %v3669_v42 }
 0x1d4   : > { %v1274_v35 = vadd.f32 %v1242_v2, %v1174_v32  ;;  %v1275_v1 = vadd.f32 %v1243_v54, %v1175_v40  ;;  %v1343_v62 = vmul.f32 %v4419_v13, %v3669_v42  ;;  %v1442_v58 = vmul.f32 %v4427_v24, %v3675_v47 }
 0x1d5   : > { %v2003_v46 = vpack.c.bf16 %v1982_v30, %v1981_v48  ;;  %v1773_v28 = vadd.f32 %v1741_v15, %v1673_v12  ;;  %v1774_v56 = vadd.f32 %v1742_v31, %v1674_v49  ;;  %v1443_v36 = vmul.f32 %v4432_v45, %v3675_v47 }
 0x1d6   : > { %v1374_v8 = vadd.f32 %v1342_v41, %v1274_v35  ;;  %v1375_v34 = vadd.f32 %v1343_v62, %v1275_v1  ;;  %v1542_v63 = vmul.f32 %v4434_v44, %v3685_v11  ;;  %v1543_v27 = vmul.f32 %v4436_v39, %v3685_v11 }
 0x1d7   : > { %2777 = vmatmul.mubr.msk.bf16.gmra.mrb[40].mxu1 %vm874_vm0, %v2003_v46  ;;  %v1873_v25 = vadd.f32 %v1841_v33, %v1773_v28  ;;  %v1874_v15 = vadd.f32 %v1842_v55, %v1774_v56  ;;  %v1643_v29 = vmul.f32 %v3694_v21, %v4475_v16  ;;  %v1644_v31 = vmul.f32 %v3694_v21, %v4477_v37  ;;  %v4527_v28 = vld [vmem:[#allocation2 + $0x1e7] sm:$0xff] }
 0x1d8   : > { %2247 = vmatprep.mubr.bf16.mxu1 %v3151_v61  ;;  %v1474_v17 = vadd.f32 %v1442_v58, %v1374_v8  ;;  %v1475_v52 = vadd.f32 %v1443_v36, %v1375_v34  ;;  %v1743_v38 = vmul.f32 %v3697_v22, %v4481_v9  ;;  %v1744_v4 = vmul.f32 %v3697_v22, %v4483_v43  ;;  %v4535_v34 = vld [vmem:[#allocation2 + $0x1e8] sm:$0xff] }
 0x1d9   : > { %v1912_v20 = vmul.f32 %v4296_v5, %v1873_v25  ;;  %v1913_v33 = vmul.f32 %v4296_v5, %v1874_v15  ;;  %v1843_v55 = vmul.f32 %v4259_v50, %v4489_v53  ;;  %v1844_v57 = vmul.f32 %v4259_v50, %v4491_v51 }
 0x1da   : > { %v1574_v60 = vadd.f32 %v1542_v63, %v1474_v17  ;;  %v1575_v23 = vadd.f32 %v1543_v27, %v1475_v52  ;;  %v1044_v19 = vmul.f32 %v4417_v59, %v3644_v10  ;;  %v1045_v7 = vmul.f32 %v4419_v13, %v3644_v10  ;;  %v4537_v63 = vld [vmem:[#allocation2 + $0x1f0] sm:$0xff] }
 0x1db   : > { %v1951_v18 = vadd.f32 %v4321_v6, %v1912_v20  ;;  %v1952_v2 = vadd.f32 %v4321_v6, %v1913_v33  ;;  %v1144_v48 = vmul.f32 %v4427_v24, %v3649_v14  ;;  %v1145_v32 = vmul.f32 %v4432_v45, %v3649_v14 }
 0x1dc   : > { %v1675_v40 = vadd.f32 %v1643_v29, %v1574_v60  ;;  %v1676_v54 = vadd.f32 %v1644_v31, %v1575_v23  ;;  %v1244_v30 = vmul.f32 %v4434_v44, %v3658_v26  ;;  %v1245_v59 = vmul.f32 %v4436_v39, %v3658_v26  ;;  %v4529_v44 = vld [vmem:[#allocation2 + $0x1ef] sm:$0xff] }
 0x1dd   : > { %v1983_v12 = vmax.f32 %v1951_v18, 0.0  ;;  %v1984_v13 = vmax.f32 %v1952_v2, 0.0  ;;  %v1176_v49 = vadd.f32 %v1144_v48, %v1044_v19  ;;  %v1177_v41 = vadd.f32 %v1145_v32, %v1045_v7  ;;  %v4544_v31 = vld [vmem:[#allocation2 + $0x1e9] sm:$0xff] }
 0x1de   : > { %v1775_v35 = vadd.f32 %v1743_v38, %v1675_v40  ;;  %v1776_v1 = vadd.f32 %v1744_v4, %v1676_v54  ;;  %v1344_v24 = vmul.f32 %v4475_v16, %v3669_v42  ;;  %v1345_v45 = vmul.f32 %v4477_v37, %v3669_v42 }
 0x1df   : > { %v2004_v62 = vpack.c.bf16 %v1984_v13, %v1983_v12  ;;  %v1276_v58 = vadd.f32 %v1244_v30, %v1176_v49  ;;  %v1277_v46 = vadd.f32 %v1245_v59, %v1177_v41  ;;  %v1444_v36 = vmul.f32 %v4481_v9, %v3675_v47  ;;  %v1810_v30 = vld [vmem:[#allocation2 + $0x1f1] sm:$0xff] }
 0x1e0   : > { %v1875_v39 = vadd.f32 %v1843_v55, %v1775_v35  ;;  %v1876_v56 = vadd.f32 %v1844_v57, %v1776_v1  ;;  %v1445_v8 = vmul.f32 %v4483_v43, %v3675_v47  ;;  %v1544_v15 = vmul.f32 %v4489_v53, %v3685_v11 }
 0x1e1   : > { %2778 = vmatmul.mubr.msk.bf16.gmra.mrb[44].mxu1 %vm874_vm0, %v2004_v62  ;;  %v1376_v27 = vadd.f32 %v1344_v24, %v1276_v58  ;;  %v1377_v25 = vadd.f32 %v1345_v45, %v1277_v46  ;;  %v1545_v29 = vmul.f32 %v4491_v51, %v3685_v11  ;;  %v1645_v38 = vmul.f32 %v3694_v21, %v4527_v28  ;;  %v1612_v58 = vld [vmem:[#allocation2 + $0x20f] sm:$0xff] }
 0x1e2   : > { %2257 = vmatprep.mubr.bf16.mxu1 %v3151_v61  ;;  %v1914_v17 = vmul.f32 %v4296_v5, %v1875_v39  ;;  %v1915_v52 = vmul.f32 %v4296_v5, %v1876_v56  ;;  %v1646_v4 = vmul.f32 %v3694_v21, %v4529_v44  ;;  %v1745_v55 = vmul.f32 %v3697_v22, %v4535_v34  ;;  %v1711_v56 = vld [vmem:[#allocation2 + $0x208] sm:$0xff] }
 0x1e3   : > { %v1476_v20 = vadd.f32 %v1444_v36, %v1376_v27  ;;  %v1477_v33 = vadd.f32 %v1445_v8, %v1377_v25  ;;  %v1746_v57 = vmul.f32 %v3697_v22, %v4537_v63  ;;  %v1845_v19 = vmul.f32 %v4259_v50, %v4544_v31 }
 0x1e4   : > { %v1953_v60 = vadd.f32 %v4321_v6, %v1914_v17  ;;  %v1954_v23 = vadd.f32 %v4321_v6, %v1915_v52  ;;  %v1046_v7 = vmul.f32 %v4475_v16, %v3644_v10  ;;  %v1047_v48 = vmul.f32 %v4477_v37, %v3644_v10 }
 0x1e5   : > { %v1576_v18 = vadd.f32 %v1544_v15, %v1476_v20  ;;  %v1577_v2 = vadd.f32 %v1545_v29, %v1477_v33  ;;  %v1146_v32 = vmul.f32 %v4481_v9, %v3649_v14  ;;  %v1147_v59 = vmul.f32 %v4483_v43, %v3649_v14  ;;  %v1712_v15 = vld [vmem:[#allocation2 + $0x210] sm:$0xff] }
 0x1e6   : > { %v1985_v40 = vmax.f32 %v1953_v60, 0.0  ;;  %v1986_v54 = vmax.f32 %v1954_v23, 0.0  ;;  %v1246_v12 = vmul.f32 %v4489_v53, %v3658_v26  ;;  %v1247_v41 = vmul.f32 %v4491_v51, %v3658_v26  ;;  %v1611_v53 = vld [vmem:[#allocation2 + $0x207] sm:$0xff] }
 0x1e7   : > { %v1677_v13 = vadd.f32 %v1645_v38, %v1576_v18  ;;  %v1678_v49 = vadd.f32 %v1646_v4, %v1577_v2  ;;  %v1178_v16 = vadd.f32 %v1146_v32, %v1046_v7  ;;  %v1179_v37 = vadd.f32 %v1147_v59, %v1047_v48 }
 0x1e8   : > { %v2005_v35 = vpack.c.bf16 %v1986_v54, %v1985_v40  ;;  %v1346_v9 = vmul.f32 %v4527_v28, %v3669_v42  ;;  %v1347_v1 = vmul.f32 %v4529_v44, %v3669_v42  ;;  %v1846_v43 = vmul.f32 %v4259_v50, %v1810_v30  ;;  %v1811_v40 = vld [vmem:[#allocation2 + $0x209] sm:$0xff] }
 0x1e9   : > { %v1777_v24 = vadd.f32 %v1745_v55, %v1677_v13  ;;  %v1778_v45 = vadd.f32 %v1746_v57, %v1678_v49  ;;  %v1278_v62 = vadd.f32 %v1246_v12, %v1178_v16  ;;  %v1279_v46 = vadd.f32 %v1247_v41, %v1179_v37  ;;  %v1812_v13 = vld [vmem:[#allocation2 + $0x211] sm:$0xff] }
 0x1ea   : > { %2779 = vmatmul.mubr.msk.bf16.gmra.mrb[48].mxu1 %vm874_vm0, %v2005_v35  ;;  %v1446_v51 = vmul.f32 %v4535_v34, %v3675_v47  ;;  %v1447_v39 = vmul.f32 %v4537_v63, %v3675_v47  ;;  %v1546_v25 = vmul.f32 %v4544_v31, %v3685_v11  ;;  %v1547_v17 = vmul.f32 %v1810_v30, %v3685_v11 }
 0x1eb   : > { %2267 = vmatprep.mubr.bf16.mxu1 %v3151_v61  ;;  %v1877_v36 = vadd.f32 %v1845_v19, %v1777_v24  ;;  %v1878_v8 = vadd.f32 %v1846_v43, %v1778_v45  ;;  %v1378_v27 = vadd.f32 %v1346_v9, %v1278_v62  ;;  %v1379_v29 = vadd.f32 %v1347_v1, %v1279_v46  ;;  %v1614_v62 = vld [vmem:[#allocation2 + $0x22f] sm:$0xff] }
 0x1ec   : > { %v1647_v52 = vmul.f32 %v3694_v21, %v1611_v53  ;;  %v1648_v38 = vmul.f32 %v3694_v21, %v1612_v58  ;;  %v1747_v55 = vmul.f32 %v3697_v22, %v1711_v56  ;;  %v1748_v60 = vmul.f32 %v3697_v22, %v1712_v15  ;;  %v1713_v46 = vld [vmem:[#allocation2 + $0x228] sm:$0xff] }
 0x1ed   : > { %v1916_v4 = vmul.f32 %v4296_v5, %v1877_v36  ;;  %v1917_v20 = vmul.f32 %v4296_v5, %v1878_v8  ;;  %v1478_v33 = vadd.f32 %v1446_v51, %v1378_v27  ;;  %v1479_v57 = vadd.f32 %v1447_v39, %v1379_v29  ;;  %v1714_v27 = vld [vmem:[#allocation2 + $0x230] sm:$0xff] }
 0x1ee   : > { %v1048_v23 = vmul.f32 %v4527_v28, %v3644_v10  ;;  %v1049_v19 = vmul.f32 %v4529_v44, %v3644_v10  ;;  %v1148_v48 = vmul.f32 %v4535_v34, %v3649_v14  ;;  %v1149_v54 = vmul.f32 %v4537_v63, %v3649_v14 }
 0x1ef   : > { %v1955_v7 = vadd.f32 %v4321_v6, %v1916_v4  ;;  %v1956_v18 = vadd.f32 %v4321_v6, %v1917_v20  ;;  %v1578_v2 = vadd.f32 %v1546_v25, %v1478_v33  ;;  %v1579_v32 = vadd.f32 %v1547_v17, %v1479_v57  ;;  %v1814_v4 = vld [vmem:[#allocation2 + $0x231] sm:$0xff] }
 0x1f0   : > { %v1248_v59 = vmul.f32 %v4544_v31, %v3658_v26  ;;  %v1249_v28 = vmul.f32 %v1810_v30, %v3658_v26  ;;  %v1180_v49 = vadd.f32 %v1148_v48, %v1048_v23  ;;  %v1181_v41 = vadd.f32 %v1149_v54, %v1049_v19  ;;  %v1613_v30 = vld [vmem:[#allocation2 + $0x227] sm:$0xff] }
 0x1f1   : > { %v1987_v12 = vmax.f32 %v1955_v7, 0.0  ;;  %v1988_v10 = vmax.f32 %v1956_v18, 0.0  ;;  %v1679_v44 = vadd.f32 %v1647_v52, %v1578_v2  ;;  %v1680_v16 = vadd.f32 %v1648_v38, %v1579_v32  ;;  %v1813_v52 = vld [vmem:[#allocation2 + $0x229] sm:$0xff] }
 0x1f2   : > { %v1348_v35 = vmul.f32 %v1611_v53, %v3669_v42  ;;  %v1349_v34 = vmul.f32 %v1612_v58, %v3669_v42  ;;  %v1847_v14 = vmul.f32 %v4259_v50, %v1811_v40  ;;  %v1280_v63 = vadd.f32 %v1248_v59, %v1180_v49 }
 0x1f3   : > { %v2006_v37 = vpack.c.bf16 %v1988_v10, %v1987_v12  ;;  %v1779_v9 = vadd.f32 %v1747_v55, %v1679_v44  ;;  %v1780_v1 = vadd.f32 %v1748_v60, %v1680_v16  ;;  %v1848_v31 = vmul.f32 %v4259_v50, %v1812_v13  ;;  %v2298_v10 = vld [vmem:[%s4970_s8] sm:$0x3] }
 0x1f4   : > { %v1281_v26 = vadd.f32 %v1249_v28, %v1181_v41  ;;  %v1380_v45 = vadd.f32 %v1348_v35, %v1280_v63  ;;  %v1448_v43 = vmul.f32 %v1711_v56, %v3675_v47  ;;  %v1449_v58 = vmul.f32 %v1712_v15, %v3675_v47 }
 0x1f5   : > { %2780 = vmatmul.mubr.msk.bf16.gmra.mrb[52].mxu1 %vm874_vm0, %v2006_v37  ;;  %v1879_v24 = vadd.f32 %v1847_v14, %v1779_v9  ;;  %v1880_v42 = vadd.f32 %v1848_v31, %v1780_v1  ;;  %v1548_v36 = vmul.f32 %v1811_v40, %v3685_v11  ;;  %v1649_v8 = vmul.f32 %v3694_v21, %v1613_v30 }
 0x1f6   : > { %2277 = vmatprep.mubr.bf16.mxu1 %v3151_v61  ;;  %v1381_v53 = vadd.f32 %v1349_v34, %v1281_v26  ;;  %v1480_v39 = vadd.f32 %v1448_v43, %v1380_v45  ;;  %v1549_v56 = vmul.f32 %v1812_v13, %v3685_v11  ;;  %v1650_v17 = vmul.f32 %v3694_v21, %v1614_v62  ;;  %v2986_v26 = vld [vmem:[%s3320_s23 + $0x8] sm:$0xff]  ;;  %v2987_v43 = vld [vmem:[%s3320_s23 + $0x10] sm:$0xff] }
 0x1f7   : > { %v1918_v51 = vmul.f32 %v4296_v5, %v1879_v24  ;;  %v1919_v25 = vmul.f32 %v4296_v5, %v1880_v42  ;;  %v1749_v15 = vmul.f32 %v3697_v22, %v1713_v46  ;;  %v1750_v55 = vmul.f32 %v3697_v22, %v1714_v27 }
 0x1f8   : > { %v1481_v29 = vadd.f32 %v1449_v58, %v1381_v53  ;;  %v1580_v47 = vadd.f32 %v1548_v36, %v1480_v39  ;;  %v1849_v60 = vmul.f32 %v4259_v50, %v1813_v52  ;;  %v1850_v21 = vmul.f32 %v4259_v50, %v1814_v4  ;;  %v2988_v53 = vld [vmem:[%s3320_s23 + $0x18] sm:$0xff] }
 0x1f9   : > { %v1957_v38 = vadd.f32 %v4321_v6, %v1918_v51  ;;  %v1958_v20 = vadd.f32 %v4321_v6, %v1919_v25  ;;  %v4643_v44 = vrot.slane %v2298_v10, %v3630_v3 }
 0x1fa   : > { %v1581_v33 = vadd.f32 %v1549_v56, %v1481_v29  ;;  %v1681_v57 = vadd.f32 %v1649_v8, %v1580_v47  ;;  %v2989_v47 = vld [vmem:[%s3320_s23 + $0x20] sm:$0xff] }
 0x1fb   : > { %v1989_v23 = vmax.f32 %v1957_v38, 0.0  ;;  %v1990_v19 = vmax.f32 %v1958_v20, 0.0  ;;  %v2990_v20 = vld [vmem:[%s3320_s23 + $0x28] sm:$0xff] }
 0x1fc   : > { %v1682_v11 = vadd.f32 %v1650_v17, %v1581_v33  ;;  %v1781_v7 = vadd.f32 %v1749_v15, %v1681_v57 }
 0x1fd   : > { %v2007_v18 = vpack.c.bf16 %v1990_v19, %v1989_v23 }
 0x1fe   : > { %v1782_v2 = vadd.f32 %v1750_v55, %v1682_v11  ;;  %v1881_v48 = vadd.f32 %v1849_v60, %v1781_v7  ;;  %v2991_v60 = vld [vmem:[%s3320_s23 + $0x30] sm:$0xff]  ;;  %v2992_v11 = vld [vmem:[%s3320_s23 + $0x38] sm:$0xff] }
 0x1ff   : > { %2781 = vmatmul.mubr.msk.bf16.gmra.mrb[56].mxu1 %vm874_vm0, %v2007_v18 }
 0x200   : > { %v1882_v32 = vadd.f32 %v1850_v21, %v1782_v2  ;;  %2287 = vmatprep.mubr.bf16.mxu1 %v3151_v61  ;;  %v1920_v40 = vmul.f32 %v4296_v5, %v1881_v48  ;;  %v2374_v61 = vld [vmem:[%s4971_s9] sm:$0x3] }
 0x201   : > { %v4649_v49 = vrot.slane %v2374_v61, %v3630_v3  ;;  %v2985_v3 = vld [vmem:[%s3320_s23] sm:$0xff] }
 0x202   : > { %v1921_v22 = vmul.f32 %v4296_v5, %v1882_v32  ;;  %v1959_v54 = vadd.f32 %v4321_v6, %v1920_v40  ;;  %v4640_v5 = vrot.slane %v2298_v10, %v3622_v0  ;;  %v2993_v10 = vld [vmem:[%s3320_s23 + $0x40] sm:$0xff] }
 0x204   : > { %v1960_v59 = vadd.f32 %v4321_v6, %v1921_v22  ;;  %v1991_v28 = vmax.f32 %v1959_v54, 0.0  ;;  %v4646_v6 = vrot.slane %v2374_v61, %v3622_v0 }
 0x206   : > { %v1992_v12 = vmax.f32 %v1960_v59, 0.0 }
 0x208   : > { %v2008_v50 = vpack.c.bf16 %v1992_v12, %v1991_v28 }
 0x20a   : > { %2782 = vmatmul.mubr.msk.bf16.gmra.mrb[60].mxu1 %vm874_vm0, %v2008_v50 }
 0x22c   : > { %v2139_v13 = vpop.f32.mrb[0].mxu1 }
 0x22d   : > { %v2310_v16 = vmul.f32 %v4640_v5, %v2139_v13  ;;  %v2141_v41 = vpop.f32.mrb[1].mxu1 }
 0x22e   : > { %v2311_v35 = vmul.f32 %v4643_v44, %v2141_v41  ;;  %v2143_v34 = vpop.f32.mrb[2].mxu1 }
 0x22f   : > { %v2386_v37 = vadd.f32 %v4646_v6, %v2310_v16  ;;  %v2312_v9 = vmul.f32 %v4640_v5, %v2143_v34  ;;  %v2145_v14 = vpop.f32.mrb[3].mxu1  ;;  %v2994_v16 = vld [vmem:[%s3320_s23 + $0x48] sm:$0xff] }
 0x230   : > { %v2387_v0 = vadd.f32 %v4649_v49, %v2311_v35  ;;  %v2313_v63 = vmul.f32 %v4643_v44, %v2145_v14 }
 0x231   : > { %v2450_v1 = vadd.f32 %v2985_v3, %v2386_v37  ;;  %v2388_v31 = vadd.f32 %v4646_v6, %v2312_v9  ;;  %v2995_v37 = vld [vmem:[%s3320_s23 + $0x50] sm:$0xff] }
 0x232   : > { %v2451_v30 = vadd.f32 %v2986_v26, %v2387_v0  ;;  %v2389_v24 = vadd.f32 %v4649_v49, %v2313_v63  ;;  %v2996_v0 = vld [vmem:[%s3320_s23 + $0x58] sm:$0xff] }
 0x233   : > { %v2514_v45 = vmax.f32 %v2450_v1, 0.0  ;;  %v2452_v62 = vadd.f32 %v2987_v43, %v2388_v31 }
 0x234   : > { %v2515_v42 = vmax.f32 %v2451_v30, 0.0  ;;  %v2453_v58 = vadd.f32 %v2988_v53, %v2389_v24  ;;  %v2149_v51 = vpop.f32.mrb[4].mxu1 }
 0x235   : > { %2578 = vst [vmem:[%s4665_s28] sm:$0xff] %v2514_v45  ;;  %v2516_v46 = vmax.f32 %v2452_v62, 0.0  ;;  %v2314_v36 = vmul.f32 %v4640_v5, %v2149_v51  ;;  %v2151_v8 = vpop.f32.mrb[5].mxu1 }
 0x236   : > { %2579 = vst [vmem:[%s4665_s28 + $0x8] sm:$0xff] %v2515_v42  ;;  %v2517_v39 = vmax.f32 %v2453_v58, 0.0  ;;  %v2315_v27 = vmul.f32 %v4643_v44, %v2151_v8  ;;  %v2153_v25 = vpop.f32.mrb[6].mxu1 }
 0x237   : > { %2580 = vst [vmem:[%s4665_s28 + $0x10] sm:$0xff] %v2516_v46  ;;  %v2390_v29 = vadd.f32 %v4646_v6, %v2314_v36  ;;  %v2316_v56 = vmul.f32 %v4640_v5, %v2153_v25  ;;  %v2155_v17 = vpop.f32.mrb[7].mxu1  ;;  %v2997_v46 = vld [vmem:[%s3320_s23 + $0x60] sm:$0xff]  ;;  %v2998_v36 = vld [vmem:[%s3320_s23 + $0x68] sm:$0xff] }
 0x238   : > { %2581 = vst [vmem:[%s4665_s28 + $0x18] sm:$0xff] %v2517_v39  ;;  %v2391_v52 = vadd.f32 %v4649_v49, %v2315_v27  ;;  %v2317_v38 = vmul.f32 %v4643_v44, %v2155_v17 }
 0x239   : > { %v2454_v15 = vadd.f32 %v2989_v47, %v2390_v29  ;;  %v2392_v4 = vadd.f32 %v4646_v6, %v2316_v56  ;;  %v2999_v29 = vld [vmem:[%s3320_s23 + $0x70] sm:$0xff] }
 0x23a   : > { %v2455_v33 = vadd.f32 %v2990_v20, %v2391_v52  ;;  %v2393_v55 = vadd.f32 %v4649_v49, %v2317_v38  ;;  %v3000_v52 = vld [vmem:[%s3320_s23 + $0x78] sm:$0xff] }
 0x23b   : > { %v2518_v57 = vmax.f32 %v2454_v15, 0.0  ;;  %v2456_v23 = vadd.f32 %v2991_v60, %v2392_v4 }
 0x23c   : > { %v2519_v19 = vmax.f32 %v2455_v33, 0.0  ;;  %v2457_v21 = vadd.f32 %v2992_v11, %v2393_v55 }
 0x23d   : > { %2582 = vst [vmem:[%s4665_s28 + $0x20] sm:$0xff] %v2518_v57  ;;  %v2520_v7 = vmax.f32 %v2456_v23, 0.0 }
 0x23e   : > { %2583 = vst [vmem:[%s4665_s28 + $0x28] sm:$0xff] %v2519_v19  ;;  %v2521_v18 = vmax.f32 %v2457_v21, 0.0 }
 0x23f   : > { %2584 = vst [vmem:[%s4665_s28 + $0x30] sm:$0xff] %v2520_v7  ;;  %v3001_v7 = vld [vmem:[%s3320_s23 + $0x80] sm:$0xff] }
 0x240   : > { %2585 = vst [vmem:[%s4665_s28 + $0x38] sm:$0xff] %v2521_v18 }
 0x242   : > { %v2159_v2 = vpop.f32.mrb[8].mxu1 }
 0x243   : > { %v2318_v48 = vmul.f32 %v4640_v5, %v2159_v2  ;;  %v2161_v32 = vpop.f32.mrb[9].mxu1 }
 0x244   : > { %v2319_v40 = vmul.f32 %v4643_v44, %v2161_v32  ;;  %v2163_v22 = vpop.f32.mrb[10].mxu1 }
 0x245   : > { %v2394_v54 = vadd.f32 %v4646_v6, %v2318_v48  ;;  %v2320_v59 = vmul.f32 %v4640_v5, %v2163_v22  ;;  %v2165_v28 = vpop.f32.mrb[11].mxu1  ;;  %v3002_v48 = vld [vmem:[%s3320_s23 + $0x88] sm:$0xff] }
 0x246   : > { %v2395_v12 = vadd.f32 %v4649_v49, %v2319_v40  ;;  %v2321_v50 = vmul.f32 %v4643_v44, %v2165_v28 }
 0x247   : > { %v2458_v61 = vadd.f32 %v2993_v10, %v2394_v54  ;;  %v2396_v13 = vadd.f32 %v4646_v6, %v2320_v59  ;;  %v3003_v54 = vld [vmem:[%s3320_s23 + $0x90] sm:$0xff] }
 0x248   : > { %v2459_v41 = vadd.f32 %v2994_v16, %v2395_v12  ;;  %v2397_v35 = vadd.f32 %v4649_v49, %v2321_v50  ;;  %v3004_v12 = vld [vmem:[%s3320_s23 + $0x98] sm:$0xff] }
 0x249   : > { %v2522_v34 = vmax.f32 %v2458_v61, 0.0  ;;  %v2460_v9 = vadd.f32 %v2995_v37, %v2396_v13 }
 0x24a   : > { %v2523_v14 = vmax.f32 %v2459_v41, 0.0  ;;  %v2461_v63 = vadd.f32 %v2996_v0, %v2397_v35 }
 0x24b   : > { %2586 = vst [vmem:[%s4665_s28 + $0x40] sm:$0xff] %v2522_v34  ;;  %v2524_v3 = vmax.f32 %v2460_v9, 0.0 }
 0x24c   : > { %2587 = vst [vmem:[%s4665_s28 + $0x48] sm:$0xff] %v2523_v14  ;;  %v2525_v1 = vmax.f32 %v2461_v63, 0.0 }
 0x24d   : > { %2588 = vst [vmem:[%s4665_s28 + $0x50] sm:$0xff] %v2524_v3  ;;  %v3005_v3 = vld [vmem:[%s3320_s23 + $0xa0] sm:$0xff] }
 0x24e   : > { %2589 = vst [vmem:[%s4665_s28 + $0x58] sm:$0xff] %v2525_v1 }
 0x250   : > { %v2169_v31 = vpop.f32.mrb[12].mxu1 }
 0x251   : > { %v2322_v26 = vmul.f32 %v4640_v5, %v2169_v31  ;;  %v2171_v30 = vpop.f32.mrb[13].mxu1 }
 0x252   : > { %v2323_v24 = vmul.f32 %v4643_v44, %v2171_v30  ;;  %v2173_v45 = vpop.f32.mrb[14].mxu1 }
 0x253   : > { %v2398_v43 = vadd.f32 %v4646_v6, %v2322_v26  ;;  %v2324_v62 = vmul.f32 %v4640_v5, %v2173_v45  ;;  %v2175_v42 = vpop.f32.mrb[15].mxu1  ;;  %v3006_v26 = vld [vmem:[%s3320_s23 + $0xa8] sm:$0xff] }
 0x254   : > { %v2399_v53 = vadd.f32 %v4649_v49, %v2323_v24  ;;  %v2325_v58 = vmul.f32 %v4643_v44, %v2175_v42 }
 0x255   : > { %v2462_v51 = vadd.f32 %v2997_v46, %v2398_v43  ;;  %v2400_v39 = vadd.f32 %v4646_v6, %v2324_v62  ;;  %v3007_v43 = vld [vmem:[%s3320_s23 + $0xb0] sm:$0xff] }
 0x256   : > { %v2463_v8 = vadd.f32 %v2998_v36, %v2399_v53  ;;  %v2401_v27 = vadd.f32 %v4649_v49, %v2325_v58  ;;  %v3008_v53 = vld [vmem:[%s3320_s23 + $0xb8] sm:$0xff] }
 0x257   : > { %v2526_v25 = vmax.f32 %v2462_v51, 0.0  ;;  %v2464_v56 = vadd.f32 %v2999_v29, %v2400_v39 }
 0x258   : > { %v2527_v17 = vmax.f32 %v2463_v8, 0.0  ;;  %v2465_v38 = vadd.f32 %v3000_v52, %v2401_v27 }
 0x259   : > { %2590 = vst [vmem:[%s4665_s28 + $0x60] sm:$0xff] %v2526_v25  ;;  %v2528_v47 = vmax.f32 %v2464_v56, 0.0 }
 0x25a   : > { %2591 = vst [vmem:[%s4665_s28 + $0x68] sm:$0xff] %v2527_v17  ;;  %v2529_v15 = vmax.f32 %v2465_v38, 0.0 }
 0x25b   : > { %2592 = vst [vmem:[%s4665_s28 + $0x70] sm:$0xff] %v2528_v47  ;;  %v3009_v47 = vld [vmem:[%s3320_s23 + $0xc0] sm:$0xff] }
 0x25c   : > { %2593 = vst [vmem:[%s4665_s28 + $0x78] sm:$0xff] %v2529_v15 }
 0x25e   : > { %v2179_v4 = vpop.f32.mrb[16].mxu1 }
 0x25f   : > { %v2326_v20 = vmul.f32 %v4640_v5, %v2179_v4  ;;  %v2181_v33 = vpop.f32.mrb[17].mxu1 }
 0x260   : > { %v2327_v55 = vmul.f32 %v4643_v44, %v2181_v33  ;;  %v2183_v57 = vpop.f32.mrb[18].mxu1 }
 0x261   : > { %v2402_v60 = vadd.f32 %v4646_v6, %v2326_v20  ;;  %v2328_v23 = vmul.f32 %v4640_v5, %v2183_v57  ;;  %v2185_v19 = vpop.f32.mrb[19].mxu1  ;;  %v3010_v20 = vld [vmem:[%s3320_s23 + $0xc8] sm:$0xff] }
 0x262   : > { %v2403_v11 = vadd.f32 %v4649_v49, %v2327_v55  ;;  %v2329_v21 = vmul.f32 %v4643_v44, %v2185_v19 }
 0x263   : > { %v2466_v18 = vadd.f32 %v3001_v7, %v2402_v60  ;;  %v2404_v2 = vadd.f32 %v4646_v6, %v2328_v23  ;;  %v3011_v60 = vld [vmem:[%s3320_s23 + $0xd0] sm:$0xff] }
 0x264   : > { %v2467_v32 = vadd.f32 %v3002_v48, %v2403_v11  ;;  %v2405_v40 = vadd.f32 %v4649_v49, %v2329_v21  ;;  %v3012_v11 = vld [vmem:[%s3320_s23 + $0xd8] sm:$0xff] }
 0x265   : > { %v2530_v22 = vmax.f32 %v2466_v18, 0.0  ;;  %v2468_v59 = vadd.f32 %v3003_v54, %v2404_v2 }
 0x266   : > { %v2531_v28 = vmax.f32 %v2467_v32, 0.0  ;;  %v2469_v50 = vadd.f32 %v3004_v12, %v2405_v40 }
 0x267   : > { %2594 = vst [vmem:[%s4665_s28 + $0x80] sm:$0xff] %v2530_v22  ;;  %v2532_v10 = vmax.f32 %v2468_v59, 0.0 }
 0x268   : > { %2595 = vst [vmem:[%s4665_s28 + $0x88] sm:$0xff] %v2531_v28  ;;  %v2533_v61 = vmax.f32 %v2469_v50, 0.0 }
 0x269   : > { %2596 = vst [vmem:[%s4665_s28 + $0x90] sm:$0xff] %v2532_v10  ;;  %v3013_v10 = vld [vmem:[%s3320_s23 + $0xe0] sm:$0xff] }
 0x26a   : > { %2597 = vst [vmem:[%s4665_s28 + $0x98] sm:$0xff] %v2533_v61 }
 0x26b   : > { %v2189_v13 = vpop.f32.mrb[20].mxu1 }
 0x26c   : > { %v2330_v16 = vmul.f32 %v4640_v5, %v2189_v13  ;;  %v2191_v41 = vpop.f32.mrb[21].mxu1 }
 0x26d   : > { %v2331_v35 = vmul.f32 %v4643_v44, %v2191_v41  ;;  %v2193_v34 = vpop.f32.mrb[22].mxu1 }
 0x26e   : > { %v2406_v37 = vadd.f32 %v4646_v6, %v2330_v16  ;;  %v2332_v9 = vmul.f32 %v4640_v5, %v2193_v34  ;;  %v2195_v14 = vpop.f32.mrb[23].mxu1  ;;  %v3014_v16 = vld [vmem:[%s3320_s23 + $0xe8] sm:$0xff] }
 0x26f   : > { %v2407_v0 = vadd.f32 %v4649_v49, %v2331_v35  ;;  %v2333_v63 = vmul.f32 %v4643_v44, %v2195_v14 }
 0x270   : > { %v2470_v1 = vadd.f32 %v3005_v3, %v2406_v37  ;;  %v2408_v31 = vadd.f32 %v4646_v6, %v2332_v9  ;;  %v3015_v37 = vld [vmem:[%s3320_s23 + $0xf0] sm:$0xff] }
 0x271   : > { %v2471_v30 = vadd.f32 %v3006_v26, %v2407_v0  ;;  %v2409_v24 = vadd.f32 %v4649_v49, %v2333_v63  ;;  %v3016_v0 = vld [vmem:[%s3320_s23 + $0xf8] sm:$0xff] }
 0x272   : > { %v2534_v45 = vmax.f32 %v2470_v1, 0.0  ;;  %v2472_v62 = vadd.f32 %v3007_v43, %v2408_v31 }
 0x273   : > { %v2535_v42 = vmax.f32 %v2471_v30, 0.0  ;;  %v2473_v58 = vadd.f32 %v3008_v53, %v2409_v24 }
 0x274   : > { %2598 = vst [vmem:[%s4665_s28 + $0xa0] sm:$0xff] %v2534_v45  ;;  %v2536_v46 = vmax.f32 %v2472_v62, 0.0 }
 0x275   : > { %2599 = vst [vmem:[%s4665_s28 + $0xa8] sm:$0xff] %v2535_v42  ;;  %v2537_v51 = vmax.f32 %v2473_v58, 0.0 }
 0x276   : > { %2600 = vst [vmem:[%s4665_s28 + $0xb0] sm:$0xff] %v2536_v46  ;;  %v3017_v46 = vld [vmem:[%s3320_s23 + $0x100] sm:$0xff] }
 0x277   : > { %2601 = vst [vmem:[%s4665_s28 + $0xb8] sm:$0xff] %v2537_v51 }
 0x278   : > { %v2199_v39 = vpop.f32.mrb[24].mxu1 }
 0x279   : > { %v2334_v36 = vmul.f32 %v4640_v5, %v2199_v39  ;;  %v2201_v8 = vpop.f32.mrb[25].mxu1 }
 0x27a   : > { %v2335_v27 = vmul.f32 %v4643_v44, %v2201_v8  ;;  %v2203_v25 = vpop.f32.mrb[26].mxu1 }
 0x27b   : > { %v2410_v29 = vadd.f32 %v4646_v6, %v2334_v36  ;;  %v2336_v56 = vmul.f32 %v4640_v5, %v2203_v25  ;;  %v2205_v17 = vpop.f32.mrb[27].mxu1  ;;  %v3018_v36 = vld [vmem:[%s3320_s23 + $0x108] sm:$0xff] }
 0x27c   : > { %v2411_v52 = vadd.f32 %v4649_v49, %v2335_v27  ;;  %v2337_v38 = vmul.f32 %v4643_v44, %v2205_v17 }
 0x27d   : > { %v2474_v15 = vadd.f32 %v3009_v47, %v2410_v29  ;;  %v2412_v4 = vadd.f32 %v4646_v6, %v2336_v56  ;;  %v3019_v29 = vld [vmem:[%s3320_s23 + $0x110] sm:$0xff] }
 0x27e   : > { %v2475_v33 = vadd.f32 %v3010_v20, %v2411_v52  ;;  %v2413_v55 = vadd.f32 %v4649_v49, %v2337_v38  ;;  %v3020_v52 = vld [vmem:[%s3320_s23 + $0x118] sm:$0xff] }
 0x27f   : > { %v2538_v57 = vmax.f32 %v2474_v15, 0.0  ;;  %v2476_v23 = vadd.f32 %v3011_v60, %v2412_v4 }
 0x280   : > { %v2539_v19 = vmax.f32 %v2475_v33, 0.0  ;;  %v2477_v21 = vadd.f32 %v3012_v11, %v2413_v55 }
 0x281   : > { %2602 = vst [vmem:[%s4665_s28 + $0xc0] sm:$0xff] %v2538_v57  ;;  %v2540_v7 = vmax.f32 %v2476_v23, 0.0 }
 0x282   : > { %2603 = vst [vmem:[%s4665_s28 + $0xc8] sm:$0xff] %v2539_v19  ;;  %v2541_v18 = vmax.f32 %v2477_v21, 0.0 }
 0x283   : > { %2604 = vst [vmem:[%s4665_s28 + $0xd0] sm:$0xff] %v2540_v7  ;;  %v3021_v7 = vld [vmem:[%s3320_s23 + $0x120] sm:$0xff] }
 0x284   : > { %2605 = vst [vmem:[%s4665_s28 + $0xd8] sm:$0xff] %v2541_v18 }
 0x285   : > { %v2209_v2 = vpop.f32.mrb[28].mxu1 }
 0x286   : > { %v2338_v48 = vmul.f32 %v4640_v5, %v2209_v2  ;;  %v2211_v32 = vpop.f32.mrb[29].mxu1 }
 0x287   : > { %v2339_v40 = vmul.f32 %v4643_v44, %v2211_v32  ;;  %v2213_v22 = vpop.f32.mrb[30].mxu1 }
 0x288   : > { %v2414_v54 = vadd.f32 %v4646_v6, %v2338_v48  ;;  %v2340_v59 = vmul.f32 %v4640_v5, %v2213_v22  ;;  %v2215_v28 = vpop.f32.mrb[31].mxu1  ;;  %v3022_v48 = vld [vmem:[%s3320_s23 + $0x128] sm:$0xff] }
 0x289   : > { %v2415_v12 = vadd.f32 %v4649_v49, %v2339_v40  ;;  %v2341_v50 = vmul.f32 %v4643_v44, %v2215_v28 }
 0x28a   : > { %v2478_v61 = vadd.f32 %v3013_v10, %v2414_v54  ;;  %v2416_v13 = vadd.f32 %v4646_v6, %v2340_v59  ;;  %v3023_v54 = vld [vmem:[%s3320_s23 + $0x130] sm:$0xff] }
 0x28b   : > { %v2479_v41 = vadd.f32 %v3014_v16, %v2415_v12  ;;  %v2417_v35 = vadd.f32 %v4649_v49, %v2341_v50  ;;  %v3024_v12 = vld [vmem:[%s3320_s23 + $0x138] sm:$0xff] }
 0x28c   : > { %v2542_v34 = vmax.f32 %v2478_v61, 0.0  ;;  %v2480_v9 = vadd.f32 %v3015_v37, %v2416_v13 }
 0x28d   : > { %v2543_v14 = vmax.f32 %v2479_v41, 0.0  ;;  %v2481_v63 = vadd.f32 %v3016_v0, %v2417_v35 }
 0x28e   : > { %2606 = vst [vmem:[%s4665_s28 + $0xe0] sm:$0xff] %v2542_v34  ;;  %v2544_v3 = vmax.f32 %v2480_v9, 0.0 }
 0x28f   : > { %2607 = vst [vmem:[%s4665_s28 + $0xe8] sm:$0xff] %v2543_v14  ;;  %v2545_v1 = vmax.f32 %v2481_v63, 0.0 }
 0x290   : > { %2608 = vst [vmem:[%s4665_s28 + $0xf0] sm:$0xff] %v2544_v3  ;;  %v3025_v3 = vld [vmem:[%s3320_s23 + $0x140] sm:$0xff] }
 0x291   : > { %2609 = vst [vmem:[%s4665_s28 + $0xf8] sm:$0xff] %v2545_v1  ;;  %v2219_v31 = vpop.f32.mrb[32].mxu1 }
 0x292   : > { %v2342_v26 = vmul.f32 %v4640_v5, %v2219_v31  ;;  %v2221_v30 = vpop.f32.mrb[33].mxu1 }
 0x293   : > { %v2343_v24 = vmul.f32 %v4643_v44, %v2221_v30  ;;  %v2223_v45 = vpop.f32.mrb[34].mxu1 }
 0x294   : > { %v2418_v43 = vadd.f32 %v4646_v6, %v2342_v26  ;;  %v2344_v62 = vmul.f32 %v4640_v5, %v2223_v45  ;;  %v2225_v42 = vpop.f32.mrb[35].mxu1  ;;  %v3026_v26 = vld [vmem:[%s3320_s23 + $0x148] sm:$0xff] }
 0x295   : > { %v2419_v53 = vadd.f32 %v4649_v49, %v2343_v24  ;;  %v2345_v58 = vmul.f32 %v4643_v44, %v2225_v42 }
 0x296   : > { %v2482_v51 = vadd.f32 %v3017_v46, %v2418_v43  ;;  %v2420_v39 = vadd.f32 %v4646_v6, %v2344_v62  ;;  %v3027_v43 = vld [vmem:[%s3320_s23 + $0x150] sm:$0xff] }
 0x297   : > { %v2483_v8 = vadd.f32 %v3018_v36, %v2419_v53  ;;  %v2421_v27 = vadd.f32 %v4649_v49, %v2345_v58  ;;  %v3028_v53 = vld [vmem:[%s3320_s23 + $0x158] sm:$0xff] }
 0x298   : > { %v2546_v25 = vmax.f32 %v2482_v51, 0.0  ;;  %v2484_v56 = vadd.f32 %v3019_v29, %v2420_v39 }
 0x299   : > { %v2547_v17 = vmax.f32 %v2483_v8, 0.0  ;;  %v2485_v38 = vadd.f32 %v3020_v52, %v2421_v27 }
 0x29a   : > { %2610 = vst [vmem:[%s4665_s28 + $0x100] sm:$0xff] %v2546_v25  ;;  %v2548_v47 = vmax.f32 %v2484_v56, 0.0 }
 0x29b   : > { %2611 = vst [vmem:[%s4665_s28 + $0x108] sm:$0xff] %v2547_v17  ;;  %v2549_v15 = vmax.f32 %v2485_v38, 0.0 }
 0x29c   : > { %2612 = vst [vmem:[%s4665_s28 + $0x110] sm:$0xff] %v2548_v47  ;;  %v3029_v47 = vld [vmem:[%s3320_s23 + $0x160] sm:$0xff] }
 0x29d   : > { %2613 = vst [vmem:[%s4665_s28 + $0x118] sm:$0xff] %v2549_v15 }
 0x29e   : > { %v2229_v4 = vpop.f32.mrb[36].mxu1 }
 0x29f   : > { %v2346_v20 = vmul.f32 %v4640_v5, %v2229_v4  ;;  %v2231_v33 = vpop.f32.mrb[37].mxu1 }
 0x2a0   : > { %v2347_v55 = vmul.f32 %v4643_v44, %v2231_v33  ;;  %v2233_v57 = vpop.f32.mrb[38].mxu1 }
 0x2a1   : > { %v2422_v60 = vadd.f32 %v4646_v6, %v2346_v20  ;;  %v2348_v23 = vmul.f32 %v4640_v5, %v2233_v57  ;;  %v2235_v19 = vpop.f32.mrb[39].mxu1  ;;  %v3030_v20 = vld [vmem:[%s3320_s23 + $0x168] sm:$0xff] }
 0x2a2   : > { %v2423_v11 = vadd.f32 %v4649_v49, %v2347_v55  ;;  %v2349_v21 = vmul.f32 %v4643_v44, %v2235_v19 }
 0x2a3   : > { %v2486_v18 = vadd.f32 %v3021_v7, %v2422_v60  ;;  %v2424_v2 = vadd.f32 %v4646_v6, %v2348_v23  ;;  %v3031_v60 = vld [vmem:[%s3320_s23 + $0x170] sm:$0xff] }
 0x2a4   : > { %v2487_v32 = vadd.f32 %v3022_v48, %v2423_v11  ;;  %v2425_v40 = vadd.f32 %v4649_v49, %v2349_v21  ;;  %v3032_v11 = vld [vmem:[%s3320_s23 + $0x178] sm:$0xff] }
 0x2a5   : > { %v2550_v22 = vmax.f32 %v2486_v18, 0.0  ;;  %v2488_v59 = vadd.f32 %v3023_v54, %v2424_v2 }
 0x2a6   : > { %v2551_v28 = vmax.f32 %v2487_v32, 0.0  ;;  %v2489_v50 = vadd.f32 %v3024_v12, %v2425_v40 }
 0x2a7   : > { %2614 = vst [vmem:[%s4665_s28 + $0x120] sm:$0xff] %v2550_v22  ;;  %v2552_v10 = vmax.f32 %v2488_v59, 0.0 }
 0x2a8   : > { %2615 = vst [vmem:[%s4665_s28 + $0x128] sm:$0xff] %v2551_v28  ;;  %v2553_v61 = vmax.f32 %v2489_v50, 0.0 }
 0x2a9   : > { %2616 = vst [vmem:[%s4665_s28 + $0x130] sm:$0xff] %v2552_v10  ;;  %v3033_v10 = vld [vmem:[%s3320_s23 + $0x180] sm:$0xff] }
 0x2aa   : > { %2617 = vst [vmem:[%s4665_s28 + $0x138] sm:$0xff] %v2553_v61  ;;  %v2239_v13 = vpop.f32.mrb[40].mxu1 }
 0x2ab   : > { %v2350_v16 = vmul.f32 %v4640_v5, %v2239_v13  ;;  %v2241_v41 = vpop.f32.mrb[41].mxu1 }
 0x2ac   : > { %v2351_v35 = vmul.f32 %v4643_v44, %v2241_v41  ;;  %v2243_v34 = vpop.f32.mrb[42].mxu1 }
 0x2ad   : > { %v2426_v37 = vadd.f32 %v4646_v6, %v2350_v16  ;;  %v2352_v9 = vmul.f32 %v4640_v5, %v2243_v34  ;;  %v2245_v14 = vpop.f32.mrb[43].mxu1  ;;  %v3034_v16 = vld [vmem:[%s3320_s23 + $0x188] sm:$0xff] }
 0x2ae   : > { %v2427_v0 = vadd.f32 %v4649_v49, %v2351_v35  ;;  %v2353_v63 = vmul.f32 %v4643_v44, %v2245_v14 }
 0x2af   : > { %v2490_v1 = vadd.f32 %v3025_v3, %v2426_v37  ;;  %v2428_v31 = vadd.f32 %v4646_v6, %v2352_v9  ;;  %v3035_v37 = vld [vmem:[%s3320_s23 + $0x190] sm:$0xff] }
 0x2b0   : > { %v2491_v30 = vadd.f32 %v3026_v26, %v2427_v0  ;;  %v2429_v24 = vadd.f32 %v4649_v49, %v2353_v63  ;;  %v3036_v0 = vld [vmem:[%s3320_s23 + $0x198] sm:$0xff] }
 0x2b1   : > { %v2554_v45 = vmax.f32 %v2490_v1, 0.0  ;;  %v2492_v62 = vadd.f32 %v3027_v43, %v2428_v31 }
 0x2b2   : > { %v2555_v42 = vmax.f32 %v2491_v30, 0.0  ;;  %v2493_v58 = vadd.f32 %v3028_v53, %v2429_v24 }
 0x2b3   : > { %2618 = vst [vmem:[%s4665_s28 + $0x140] sm:$0xff] %v2554_v45  ;;  %v2556_v46 = vmax.f32 %v2492_v62, 0.0 }
 0x2b4   : > { %2619 = vst [vmem:[%s4665_s28 + $0x148] sm:$0xff] %v2555_v42  ;;  %v2557_v51 = vmax.f32 %v2493_v58, 0.0  ;;  %v2249_v39 = vpop.f32.mrb[44].mxu1 }
 0x2b5   : > { %2620 = vst [vmem:[%s4665_s28 + $0x150] sm:$0xff] %v2556_v46  ;;  %v2354_v36 = vmul.f32 %v4640_v5, %v2249_v39  ;;  %v2251_v8 = vpop.f32.mrb[45].mxu1  ;;  %v3037_v46 = vld [vmem:[%s3320_s23 + $0x1a0] sm:$0xff] }
 0x2b6   : > { %2621 = vst [vmem:[%s4665_s28 + $0x158] sm:$0xff] %v2557_v51  ;;  %v2355_v27 = vmul.f32 %v4643_v44, %v2251_v8  ;;  %v2253_v25 = vpop.f32.mrb[46].mxu1 }
 0x2b7   : > { %v2430_v29 = vadd.f32 %v4646_v6, %v2354_v36  ;;  %v2356_v56 = vmul.f32 %v4640_v5, %v2253_v25  ;;  %v2255_v17 = vpop.f32.mrb[47].mxu1  ;;  %v3038_v36 = vld [vmem:[%s3320_s23 + $0x1a8] sm:$0xff] }
 0x2b8   : > { %v2431_v52 = vadd.f32 %v4649_v49, %v2355_v27  ;;  %v2357_v38 = vmul.f32 %v4643_v44, %v2255_v17 }
 0x2b9   : > { %v2494_v15 = vadd.f32 %v3029_v47, %v2430_v29  ;;  %v2432_v4 = vadd.f32 %v4646_v6, %v2356_v56  ;;  %v3039_v29 = vld [vmem:[%s3320_s23 + $0x1b0] sm:$0xff] }
 0x2ba   : > { %v2495_v33 = vadd.f32 %v3030_v20, %v2431_v52  ;;  %v2433_v55 = vadd.f32 %v4649_v49, %v2357_v38  ;;  %v3040_v52 = vld [vmem:[%s3320_s23 + $0x1b8] sm:$0xff] }
 0x2bb   : > { %v2558_v57 = vmax.f32 %v2494_v15, 0.0  ;;  %v2496_v23 = vadd.f32 %v3031_v60, %v2432_v4 }
 0x2bc   : > { %v2559_v19 = vmax.f32 %v2495_v33, 0.0  ;;  %v2497_v21 = vadd.f32 %v3032_v11, %v2433_v55 }
 0x2bd   : > { %2622 = vst [vmem:[%s4665_s28 + $0x160] sm:$0xff] %v2558_v57  ;;  %v2560_v7 = vmax.f32 %v2496_v23, 0.0  ;;  %v2259_v18 = vpop.f32.mrb[48].mxu1 }
 0x2be   : > { %2623 = vst [vmem:[%s4665_s28 + $0x168] sm:$0xff] %v2559_v19  ;;  %v2561_v2 = vmax.f32 %v2497_v21, 0.0  ;;  %v2358_v48 = vmul.f32 %v4640_v5, %v2259_v18  ;;  %v2261_v32 = vpop.f32.mrb[49].mxu1 }
 0x2bf   : > { %2624 = vst [vmem:[%s4665_s28 + $0x170] sm:$0xff] %v2560_v7  ;;  %v2359_v40 = vmul.f32 %v4643_v44, %v2261_v32  ;;  %v2263_v22 = vpop.f32.mrb[50].mxu1  ;;  %v3041_v7 = vld [vmem:[%s3320_s23 + $0x1c0] sm:$0xff] }
 0x2c0   : > { %2625 = vst [vmem:[%s4665_s28 + $0x178] sm:$0xff] %v2561_v2  ;;  %v2434_v54 = vadd.f32 %v4646_v6, %v2358_v48  ;;  %v2360_v59 = vmul.f32 %v4640_v5, %v2263_v22  ;;  %v2265_v28 = vpop.f32.mrb[51].mxu1  ;;  %v3042_v48 = vld [vmem:[%s3320_s23 + $0x1c8] sm:$0xff] }
 0x2c1   : > { %v2435_v12 = vadd.f32 %v4649_v49, %v2359_v40  ;;  %v2361_v50 = vmul.f32 %v4643_v44, %v2265_v28 }
 0x2c2   : > { %v2498_v61 = vadd.f32 %v3033_v10, %v2434_v54  ;;  %v2436_v13 = vadd.f32 %v4646_v6, %v2360_v59  ;;  %v3043_v54 = vld [vmem:[%s3320_s23 + $0x1d0] sm:$0xff] }
 0x2c3   : > { %v2499_v41 = vadd.f32 %v3034_v16, %v2435_v12  ;;  %v2437_v35 = vadd.f32 %v4649_v49, %v2361_v50  ;;  %v3044_v12 = vld [vmem:[%s3320_s23 + $0x1d8] sm:$0xff] }
 0x2c4   : > { %v2562_v34 = vmax.f32 %v2498_v61, 0.0  ;;  %v2500_v9 = vadd.f32 %v3035_v37, %v2436_v13 }
 0x2c5   : > { %v2563_v14 = vmax.f32 %v2499_v41, 0.0  ;;  %v2501_v63 = vadd.f32 %v3036_v0, %v2437_v35 }
 0x2c6   : > { %2626 = vst [vmem:[%s4665_s28 + $0x180] sm:$0xff] %v2562_v34  ;;  %v2564_v3 = vmax.f32 %v2500_v9, 0.0 }
 0x2c7   : > { %2627 = vst [vmem:[%s4665_s28 + $0x188] sm:$0xff] %v2563_v14  ;;  %v2565_v1 = vmax.f32 %v2501_v63, 0.0 }
 0x2c8   : > { %2628 = vst [vmem:[%s4665_s28 + $0x190] sm:$0xff] %v2564_v3  ;;  %v2269_v31 = vpop.f32.mrb[52].mxu1  ;;  %v3045_v3 = vld [vmem:[%s3320_s23 + $0x1e0] sm:$0xff] }
 0x2c9   : > { %2629 = vst [vmem:[%s4665_s28 + $0x198] sm:$0xff] %v2565_v1  ;;  %v2362_v26 = vmul.f32 %v4640_v5, %v2269_v31  ;;  %v2271_v30 = vpop.f32.mrb[53].mxu1 }
 0x2ca   : > { %v2363_v24 = vmul.f32 %v4643_v44, %v2271_v30  ;;  %v2273_v45 = vpop.f32.mrb[54].mxu1 }
 0x2cb   : > { %v2438_v43 = vadd.f32 %v4646_v6, %v2362_v26  ;;  %v2364_v62 = vmul.f32 %v4640_v5, %v2273_v45  ;;  %v2275_v42 = vpop.f32.mrb[55].mxu1  ;;  %v3046_v26 = vld [vmem:[%s3320_s23 + $0x1e8] sm:$0xff]  ;;  %v3047_v45 = vld [vmem:[%s3320_s23 + $0x1f0] sm:$0xff] }
 0x2cc   : > { %v2439_v53 = vadd.f32 %v4649_v49, %v2363_v24  ;;  %v2365_v58 = vmul.f32 %v4643_v44, %v2275_v42 }
 0x2cd   : > { %v2502_v51 = vadd.f32 %v3037_v46, %v2438_v43  ;;  %v2440_v39 = vadd.f32 %v4646_v6, %v2364_v62 }
 0x2ce   : > { %v2503_v8 = vadd.f32 %v3038_v36, %v2439_v53  ;;  %v2441_v27 = vadd.f32 %v4649_v49, %v2365_v58 }
 0x2cf   : > { %v2566_v25 = vmax.f32 %v2502_v51, 0.0  ;;  %v2504_v56 = vadd.f32 %v3039_v29, %v2440_v39 }
 0x2d0   : > { %v2567_v17 = vmax.f32 %v2503_v8, 0.0  ;;  %v2505_v38 = vadd.f32 %v3040_v52, %v2441_v27 }
 0x2d1   : > { %2630 = vst [vmem:[%s4665_s28 + $0x1a0] sm:$0xff] %v2566_v25  ;;  %v2568_v47 = vmax.f32 %v2504_v56, 0.0 }
 0x2d2   : > { %2631 = vst [vmem:[%s4665_s28 + $0x1a8] sm:$0xff] %v2567_v17  ;;  %v2569_v15 = vmax.f32 %v2505_v38, 0.0  ;;  %v2279_v4 = vpop.f32.mrb[56].mxu1 }
 0x2d3   : > { %2632 = vst [vmem:[%s4665_s28 + $0x1b0] sm:$0xff] %v2568_v47  ;;  %v2366_v20 = vmul.f32 %v4640_v5, %v2279_v4  ;;  %v2281_v33 = vpop.f32.mrb[57].mxu1 }
 0x2d4   : > { %2633 = vst [vmem:[%s4665_s28 + $0x1b8] sm:$0xff] %v2569_v15  ;;  %v2367_v55 = vmul.f32 %v4643_v44, %v2281_v33  ;;  %v2283_v57 = vpop.f32.mrb[58].mxu1 }
 0x2d5   : > { %v2442_v60 = vadd.f32 %v4646_v6, %v2366_v20  ;;  %v2368_v23 = vmul.f32 %v4640_v5, %v2283_v57  ;;  %v2285_v19 = vpop.f32.mrb[59].mxu1 }
 0x2d6   : > { %v2443_v11 = vadd.f32 %v4649_v49, %v2367_v55  ;;  %v2369_v21 = vmul.f32 %v4643_v44, %v2285_v19 }
 0x2d7   : > { %v2506_v18 = vadd.f32 %v3041_v7, %v2442_v60  ;;  %v2444_v2 = vadd.f32 %v4646_v6, %v2368_v23 }
 0x2d8   : > { %v2507_v32 = vadd.f32 %v3042_v48, %v2443_v11  ;;  %v2445_v40 = vadd.f32 %v4649_v49, %v2369_v21 }
 0x2d9   : > { %v2570_v22 = vmax.f32 %v2506_v18, 0.0  ;;  %v2508_v59 = vadd.f32 %v3043_v54, %v2444_v2 }
 0x2da   : > { %v2571_v28 = vmax.f32 %v2507_v32, 0.0  ;;  %v2509_v50 = vadd.f32 %v3044_v12, %v2445_v40 }
 0x2db   : > { %2634 = vst [vmem:[%s4665_s28 + $0x1c0] sm:$0xff] %v2570_v22  ;;  %v2572_v10 = vmax.f32 %v2508_v59, 0.0 }
 0x2dc   : > { %2635 = vst [vmem:[%s4665_s28 + $0x1c8] sm:$0xff] %v2571_v28  ;;  %v2573_v61 = vmax.f32 %v2509_v50, 0.0 }
 0x2dd   : > { %v2289_v13 = vpop.f32.mrb[60].mxu1  ;;  %2636 = vst [vmem:[%s4665_s28 + $0x1d0] sm:$0xff] %v2572_v10 }
 0x2de   : > { %v2370_v16 = vmul.f32 %v4640_v5, %v2289_v13  ;;  %v2291_v41 = vpop.f32.mrb[61].mxu1  ;;  %2637 = vst [vmem:[%s4665_s28 + $0x1d8] sm:$0xff] %v2573_v61 }
 0x2df   : > { %v2371_v35 = vmul.f32 %v4643_v44, %v2291_v41  ;;  %v2293_v34 = vpop.f32.mrb[62].mxu1 }
 0x2e0   : > { %v2446_v37 = vadd.f32 %v4646_v6, %v2370_v16  ;;  %v2372_v9 = vmul.f32 %v4640_v5, %v2293_v34  ;;  %v2295_v14 = vpop.f32.mrb[63].mxu1 }
 0x2e1   : > { %v2447_v0 = vadd.f32 %v4649_v49, %v2371_v35  ;;  %v2373_v63 = vmul.f32 %v4643_v44, %v2295_v14  ;;  %v3048_v44 = vld [vmem:[%s3320_s23 + $0x1f8] sm:$0xff]  ;;  %s3152_s23 = smov [#allocation6]  }
 0x2e2   : > { %v2510_v1 = vadd.f32 %v3045_v3, %v2446_v37  ;;  %v2448_v31 = vadd.f32 %v4646_v6, %v2372_v9  ;;  %s3083_s30 = sshll.u32 %s3152_s23, 4  ;;  %s3084_s30 = int_to_ptr.vmem [resolvable:$false] %s3083_s30 }
 0x2e3   : > { %v2511_v30 = vadd.f32 %v3046_v26, %v2447_v0  ;;  %v2449_v24 = vadd.f32 %v4649_v49, %v2373_v63  ;;  %s3085_s29 = scalar_lea.vmem %s3084_s30, 16384  ;;  %p3086_p8 = scmp.lt.s32.totalorder %s4915_s12, %s3084_s30 }
 0x2e4   : > { %v2574_v5 = vmax.f32 %v2510_v1, 0.0  ;;  %v2512_v43 = vadd.f32 %v3047_v45, %v2448_v31  ;;  %p3087_p10 = scmp.lt.s32.totalorder %s3085_s29, %s3079_s11 }
 0x2e5   : > { %v2575_v62 = vmax.f32 %v2511_v30, 0.0  ;;  %v2513_v42 = vadd.f32 %v3048_v44, %v2449_v24 }
 0x2e6   : > { %2638 = vst [vmem:[%s4665_s28 + $0x1e0] sm:$0xff] %v2574_v5  ;;  %v2576_v53 = vmax.f32 %v2512_v43, 0.0  ;;  %p3088_p0 = por %p3087_p10, %p3086_p8 }
 0x2e7   : > { %2639 = vst [vmem:[%s4665_s28 + $0x1e8] sm:$0xff] %v2575_v62  ;;  %v2577_v6 = vmax.f32 %v2513_v42, 0.0 }
 0x2e8   : > { %2640 = vst [vmem:[%s4665_s28 + $0x1f0] sm:$0xff] %v2576_v53  ;;  %p3089_p2 = pnand %p3088_p0, %p3082_p13 }
 0x2e9   : > { %2641 = vst [vmem:[%s4665_s28 + $0x1f8] sm:$0xff] %v2577_v6 }
 0x2ea   : > { %3092 = shalt.err (!%p3089_p2)
}
 0x2eb   : > { %s3093_s24 = scalar_lea.hbm %s4913_s27, 8192  ;;  %s3097_s20 = scalar_lea.hbm %s4972_s10, 16384 }
 0x2ec   : > { %p3094_p4 = scmp.ne.s32.totalorder %s4913_s27, %s3093_s24  ;;  %p3098_p9 = scmp.lt.u32.totalorder %s4913_s27, %s4972_s10 }
 0x2ed   : > { %p3099_p1 = scmp.lt.u32.totalorder %s3097_s20, %s3093_s24  ;;  %p3101_p6 = scmp.lt.u32.totalorder %s3093_s24, %s4913_s27 }
 0x2ee   : > { %p3095_p5 = pnand %p3094_p4, %p4982_p11 }
 0x2ef   : > { %p3100_p3 = por %p3099_p1, %p3098_p9 }
 0x2f0   : > { %p3096_p7 = pneg %p3095_p5 }
 0x2f1   : > { %p3102_p12 = por %p3101_p6, %p3100_p3 }
 0x2f3   : > { %p3103_p13 = pnand %p3102_p12, %p3096_p7 }
 0x2f5   : > { %3106 = shalt.err (!%p3103_p13)
}
 0x2f6   : > { %s3153_s11 = smov 256   ;;  %s3154_s30 = smov 16  }
 0x2f7   : > { %2904 = dma.vmem_to_hbm [thread:$0]  (%p4982_p11), %s4915_s12, 8192, %s4913_s27, %s2643_s17, %s3153_s11, %s3153_s11, %s3154_s30  }
 0x2f8 PF: > { %s2671_s29 = sand.u32 1, %s3133_s13   ;;  %p4983_p8 = scmp.ne.s32.totalorder %s4979_s26, 0 }
 0x2f9   : > { %p4984_p10 = scmp.ge.s32.totalorder %s3145_s16, 2  ;;  %s2672_s24 = scalar_lea.sflag [#allocation5], %s2671_s29 }
 0x2fb   : > { %p2911_p0 = pnand %p4984_p10, %p4983_p8 }
 0x2fd   : > { %3128 = dma.done.wait (!%p2911_p0), %s2672_s24, 8192  }
 0x2fe   : > { %3130 = vsyncadd (!%p2911_p0), %s2672_s24, 4294959104  ;;  %s4985_s28 = sld [smem:[#allocation9_spill]]  ;;  %p23_p2 = scmp.ge.s32.totalorder %s3235_s19, 4  }
 0x2ff   : > { %s4986_s13 = smov %s3137_s14  ;;  %s4987_s14 = smov %s3141_s15 }
 0x300   : > { %s4989_s16 = smov %s3235_s19  ;;  %25 = sbr.rel (!%p23_p2) target bundleno = 5 (0x5), region = 107 }
 0x304   : > { %s4988_s15 = smov %s4985_s28 }
 0x307   :  { %2677 = vsyncpa [#allocation4], 1 }
 0x308   :  { %2679 = vsyncpa [#allocation4 + $0x1], 1 }
 0x309   :  { %2680 = vsyncpa [#allocation5], 1 }
 0x30a   :  { %2682 = vsyncpa [#allocation5 + $0x1], 1 }

</bundles_post_ra>
